<compile_context>
chip_gen: v6e
topology: v6e:2x2x1
jax: 0.10.0
libtpu: 0.0.40
codegen_flags: <defaults>
</compile_context>

<pallas_src>
import jax
import jax.numpy as jnp
from jax.experimental import pallas as pl
from jax.experimental.pallas import tpu as pltpu


def conv_block_kernel(x_ref, w1_ref, s1_ref, b1_ref, w2_ref, s2_ref, b2_ref,
                      o_ref, xpad1_ref, xpad2_ref):
    """Fused ConvBlock, one image per grid step.

    x_ref:   (1, H, W, Cin)       NHWC input tile (un-padded)
    w1_ref:  (9*Cin, C1)   bf16   layer-1 weights, rows ordered (kh, kw, ci)
    s1_ref:  (1, C1)       f32    folded BN scale, layer 1
    b1_ref:  (1, C1)       f32    folded BN bias,  layer 1
    w2_ref:  (C2, 9*C1)    bf16   layer-2 weights, cols ordered (kh, kw, ci)
    s2_ref:  (C2, 1)       f32
    b2_ref:  (C2, 1)       f32
    o_ref:   (1, C2, H*W)  f32    NCHW(-flattened) output, lane-dense store
    xpad1_ref: VMEM (H+2, W+2, Cin) f32   zero-padded layer-1 input
    xpad2_ref: VMEM (H+2, W+2, C1)  f32   zero-padded layer-1 activation
    """
    H = x_ref.shape[1]
    W = x_ref.shape[2]
    cin = x_ref.shape[3]
    c1 = w1_ref.shape[1]

    def im2col(xpad_ref, c):
        # (H*W, 9*c) patch matrix. Each tap reshape only merges leading dims
        # (the lane/channel dim is untouched); concat is along the lane dim.
        cols = []
        for kh in range(3):
            for kw in range(3):
                cols.append(
                    xpad_ref[kh:kh + H, kw:kw + W, :].reshape(H * W, c))
        return jnp.concatenate(cols, axis=1).astype(jnp.bfloat16)

    # ---- layer 1: conv3x3 + BN + ReLU, result orientation (H*W, C1) --------
    xpad1_ref[...] = jnp.zeros_like(xpad1_ref)        # halo handled in-kernel
    xpad1_ref[1:H + 1, 1:W + 1, :] = x_ref[0]
    p1 = im2col(xpad1_ref, cin)                                   # (H*W, 9*Cin)
    y1 = jnp.dot(p1, w1_ref[...], preferred_element_type=jnp.float32)
    y1 = jnp.maximum(y1 * s1_ref[...] + b1_ref[...], 0.0)         # (H*W, C1) f32

    # ---- layer 2: intermediate stays in VMEM; output written lane-dense ----
    xpad2_ref[...] = jnp.zeros_like(xpad2_ref)
    xpad2_ref[1:H + 1, 1:W + 1, :] = y1.reshape(H, W, c1)
    p2 = im2col(xpad2_ref, c1)                                    # (H*W, 9*C1)
    # (C2, 9*C1) . (H*W, 9*C1) contracting dim 1 of both ("NT" matmul, same
    # dimension_numbers the official flash-attention TPU kernel uses) so the
    # result comes out directly as (C2, H*W): lane dim = H*W (multiple of 128).
    y2 = jax.lax.dot_general(
        w2_ref[...], p2, dimension_numbers=(((1,), (1,)), ((), ())),
        preferred_element_type=jnp.float32)
    y2 = jnp.maximum(y2 * s2_ref[...] + b2_ref[...], 0.0)         # (C2, H*W)

    o_ref[0] = y2.astype(o_ref.dtype)


def conv_block(x_nchw, w1_2d, s1, b1, w2_2d, s2, b2):
    N, Cin, H, W = x_nchw.shape
    C1 = w1_2d.shape[1]
    C2 = w2_2d.shape[0]
    # NCHW -> NHWC (small relayout) for channels-last patch construction.
    # The output side needs no transpose: the kernel writes NCHW directly.
    x_nhwc = jnp.transpose(x_nchw, (0, 2, 3, 1))
    out = pl.pallas_call(
        conv_block_kernel,
        out_shape=jax.ShapeDtypeStruct((N, C2, H * W), jnp.float32),
        grid=(N,),
        in_specs=[
            pl.BlockSpec((1, H, W, Cin), lambda n: (n, 0, 0, 0)),
            pl.BlockSpec((9 * Cin, C1), lambda n: (0, 0)),   # constant -> no
            pl.BlockSpec((1, C1), lambda n: (0, 0)),         # per-step refetch
            pl.BlockSpec((1, C1), lambda n: (0, 0)),
            pl.BlockSpec((C2, 9 * C1), lambda n: (0, 0)),
            pl.BlockSpec((C2, 1), lambda n: (0, 0)),
            pl.BlockSpec((C2, 1), lambda n: (0, 0)),
        ],
        out_specs=pl.BlockSpec((1, C2, H * W), lambda n: (n, 0, 0)),
        scratch_shapes=[
            pltpu.VMEM((H + 2, W + 2, Cin), jnp.float32),
            pltpu.VMEM((H + 2, W + 2, C1), jnp.float32),
        ],
        compiler_params=pltpu.CompilerParams(
            dimension_semantics=("parallel",)),
    )(x_nhwc, w1_2d, s1, b1, w2_2d, s2, b2)
    # metadata-only reshape: (N, C2, H*W) is already NCHW-contiguous
    return out.reshape(N, C2, H, W)


def fold_bn(conv_bias, gamma, beta, running_mean, running_var, eps=1e-5):
    scale = gamma / jnp.sqrt(running_var + eps)
    bias = beta + (conv_bias - running_mean) * scale
    return scale, bias


def init_conv_params(key, in_channels, out_channels):
    """Deterministic synthetic init for Conv2d(3x3) + BatchNorm2d (OIHW, f32)."""
    k_w, k_b, k_g, k_be, k_m, k_v = jax.random.split(key, 6)
    w_oihw = jax.random.normal(k_w, (out_channels, in_channels, 3, 3),
                               jnp.float32) * 0.1
    conv_bias = jax.random.normal(k_b, (out_channels,), jnp.float32) * 0.1
    gamma = 1.0 + 0.1 * jax.random.normal(k_g, (out_channels,), jnp.float32)
    beta = 0.1 * jax.random.normal(k_be, (out_channels,), jnp.float32)
    running_mean = 0.1 * jax.random.normal(k_m, (out_channels,), jnp.float32)
    running_var = jnp.abs(1.0 + 0.1 * jax.random.normal(
        k_v, (out_channels,), jnp.float32))
    scale, bias = fold_bn(conv_bias, gamma, beta, running_mean, running_var)
    return w_oihw, scale, bias


def pack_layer1(w_oihw, scale, bias):
    o, i, _, _ = w_oihw.shape
    # rows ordered (kh, kw, ci) to match the kernel's patch concat order
    w2d = jnp.transpose(w_oihw, (2, 3, 1, 0)).reshape(9 * i, o)
    return w2d.astype(jnp.bfloat16), scale.reshape(1, o), bias.reshape(1, o)


def pack_layer2(w_oihw, scale, bias):
    o, i, _, _ = w_oihw.shape
    # cols ordered (kh, kw, ci); layer-2 result orientation is (C2, H*W)
    w2d = jnp.transpose(w_oihw, (0, 2, 3, 1)).reshape(o, 9 * i)
    return w2d.astype(jnp.bfloat16), scale.reshape(o, 1), bias.reshape(o, 1)


def _reference(x_nchw, w1_oihw, s1, b1, w2_oihw, s2, b2, mxu_bf16=True):
    """Pure-JAX reference (lax conv). mxu_bf16=True mirrors the kernel's
    bf16-input / f32-accumulate matmuls."""
    def block(x, w_oihw, s, b):
        w_hwio = jnp.transpose(w_oihw, (2, 3, 1, 0))
        if mxu_bf16:
            x = x.astype(jnp.bfloat16)
            w_hwio = w_hwio.astype(jnp.bfloat16)
        y = jax.lax.conv_general_dilated(
            x, w_hwio, window_strides=(1, 1), padding=((1, 1), (1, 1)),
            dimension_numbers=("NHWC", "HWIO", "NHWC"),
            preferred_element_type=jnp.float32)
        return jnp.maximum(y * s + b, 0.0)
    x = jnp.transpose(x_nchw, (0, 2, 3, 1))
    x = block(x, w1_oihw, s1, b1)
    x = block(x, w2_oihw, s2, b2)
    return jnp.transpose(x, (0, 3, 1, 2))


if __name__ == "__main__":
    key = jax.random.PRNGKey(0)
    k_x, k_p1, k_p2 = jax.random.split(key, 3)

    in_channels, num_filters = 4, 8
    N, H, W = 2, 16, 16

    x = jax.random.normal(k_x, (N, in_channels, H, W), jnp.float32)
    w1_oihw, s1, b1 = init_conv_params(k_p1, in_channels, num_filters)
    w2_oihw, s2, b2 = init_conv_params(k_p2, num_filters, num_filters)

    w1k, s1k, b1k = pack_layer1(w1_oihw, s1, b1)
    w2k, s2k, b2k = pack_layer2(w2_oihw, s2, b2)

    fwd = jax.jit(conv_block)
    out = jax.block_until_ready(fwd(x, w1k, s1k, b1k, w2k, s2k, b2k))
    assert out.shape == (N, num_filters, H, W)

    # exact-semantics check (reference uses the same bf16-in / f32-acc matmul)
    ref_bf16 = _reference(x, w1_oihw, s1, b1, w2_oihw, s2, b2, mxu_bf16=True)
    assert jnp.allclose(out, ref_bf16, atol=1e-2, rtol=1e-2), \
        float(jnp.max(jnp.abs(out - ref_bf16)))

    # loose sanity check against the full-f32 reference (bf16 drift only)
    ref_f32 = _reference(x, w1_oihw, s1, b1, w2_oihw, s2, b2, mxu_bf16=False)
    assert jnp.allclose(out, ref_f32, atol=1e-1, rtol=1e-1)

    print("KERNEL_OK")
</pallas_src>

<mosaic_0001>
module attributes {stable_mosaic.version = 11 : i64} {
  func.func @conv_block_kernel(%arg0: i32, %arg1: memref<1x16x16x4xf32, #tpu.memory_space<vmem>>, %arg2: memref<36x8xbf16, #tpu.memory_space<vmem>>, %arg3: memref<1x8xf32, #tpu.memory_space<vmem>>, %arg4: memref<1x8xf32, #tpu.memory_space<vmem>>, %arg5: memref<8x72xbf16, #tpu.memory_space<vmem>>, %arg6: memref<8x1xf32, #tpu.memory_space<vmem>>, %arg7: memref<8x1xf32, #tpu.memory_space<vmem>>, %arg8: memref<1x8x256xf32, #tpu.memory_space<vmem>>, %arg9: memref<18x18x4xf32, #tpu.memory_space<vmem>>, %arg10: memref<18x18x8xf32, #tpu.memory_space<vmem>>) attributes {dimension_semantics = [#tpu.dimension_semantics<parallel>], iteration_bounds = array<i64: 2>, scalar_prefetch = 0 : i64, scratch_operands = 2 : i64, tpu.core_type = #tpu.core_type<tc>, window_params = [{transform_indices = @transform_0, window_bounds = array<i64: 1, 16, 16, 4>}, {pipeline_mode = #tpu.pipeline_mode<synchronous>, transform_indices = @transform_1, window_bounds = array<i64: 36, 8>}, {pipeline_mode = #tpu.pipeline_mode<synchronous>, transform_indices = @transform_2, window_bounds = array<i64: 1, 8>}, {pipeline_mode = #tpu.pipeline_mode<synchronous>, transform_indices = @transform_3, window_bounds = array<i64: 1, 8>}, {pipeline_mode = #tpu.pipeline_mode<synchronous>, transform_indices = @transform_4, window_bounds = array<i64: 8, 72>}, {pipeline_mode = #tpu.pipeline_mode<synchronous>, transform_indices = @transform_5, window_bounds = array<i64: 8, 1>}, {pipeline_mode = #tpu.pipeline_mode<synchronous>, transform_indices = @transform_6, window_bounds = array<i64: 8, 1>}, {transform_indices = @transform_7, window_bounds = array<i64: 1, 8, 256>}]} {
    %cst = arith.constant 0.000000e+00 : f32
    %0 = vector.broadcast %cst : f32 to vector<18x18x4xf32>
    %c0 = arith.constant 0 : index
    %c0_0 = arith.constant 0 : index
    %c0_1 = arith.constant 0 : index
    %1 = vector.load %arg9[%c0, %c0_0, %c0_1] : memref<18x18x4xf32, #tpu.memory_space<vmem>>, vector<18x18x4xf32>
    tpu.vector_store %arg9[%c0, %c0_0, %c0_1], %0 {strides = array<i32>} : memref<18x18x4xf32, #tpu.memory_space<vmem>>, vector<18x18x4xf32>,
    %c0_2 = arith.constant 0 : index
    %c0_3 = arith.constant 0 : index
    %c0_4 = arith.constant 0 : index
    %c0_5 = arith.constant 0 : index
    %2 = vector.load %arg1[%c0_2, %c0_3, %c0_4, %c0_5] : memref<1x16x16x4xf32, #tpu.memory_space<vmem>>, vector<1x16x16x4xf32>
    %3 = vector.shape_cast %2 : vector<1x16x16x4xf32> to vector<16x16x4xf32>
    %c1 = arith.constant 1 : index
    %c1_6 = arith.constant 1 : index
    %c0_7 = arith.constant 0 : index
    %4 = vector.load %arg9[%c1, %c1_6, %c0_7] : memref<18x18x4xf32, #tpu.memory_space<vmem>>, vector<16x16x4xf32>
    tpu.vector_store %arg9[%c1, %c1_6, %c0_7], %3 {strides = array<i32>} : memref<18x18x4xf32, #tpu.memory_space<vmem>>, vector<16x16x4xf32>,
    %c0_8 = arith.constant 0 : index
    %c0_9 = arith.constant 0 : index
    %c0_10 = arith.constant 0 : index
    %5 = vector.load %arg9[%c0_8, %c0_9, %c0_10] : memref<18x18x4xf32, #tpu.memory_space<vmem>>, vector<16x16x4xf32>
    %6 = vector.shape_cast %5 : vector<16x16x4xf32> to vector<256x4xf32>
    %c0_11 = arith.constant 0 : index
    %c1_12 = arith.constant 1 : index
    %c0_13 = arith.constant 0 : index
    %7 = vector.load %arg9[%c0_11, %c1_12, %c0_13] : memref<18x18x4xf32, #tpu.memory_space<vmem>>, vector<16x16x4xf32>
    %8 = vector.shape_cast %7 : vector<16x16x4xf32> to vector<256x4xf32>
    %c0_14 = arith.constant 0 : index
    %c2 = arith.constant 2 : index
    %c0_15 = arith.constant 0 : index
    %9 = vector.load %arg9[%c0_14, %c2, %c0_15] : memref<18x18x4xf32, #tpu.memory_space<vmem>>, vector<16x16x4xf32>
    %10 = vector.shape_cast %9 : vector<16x16x4xf32> to vector<256x4xf32>
    %c1_16 = arith.constant 1 : index
    %c0_17 = arith.constant 0 : index
    %c0_18 = arith.constant 0 : index
    %11 = vector.load %arg9[%c1_16, %c0_17, %c0_18] : memref<18x18x4xf32, #tpu.memory_space<vmem>>, vector<16x16x4xf32>
    %12 = vector.shape_cast %11 : vector<16x16x4xf32> to vector<256x4xf32>
    %c1_19 = arith.constant 1 : index
    %c1_20 = arith.constant 1 : index
    %c0_21 = arith.constant 0 : index
    %13 = vector.load %arg9[%c1_19, %c1_20, %c0_21] : memref<18x18x4xf32, #tpu.memory_space<vmem>>, vector<16x16x4xf32>
    %14 = vector.shape_cast %13 : vector<16x16x4xf32> to vector<256x4xf32>
    %c1_22 = arith.constant 1 : index
    %c2_23 = arith.constant 2 : index
    %c0_24 = arith.constant 0 : index
    %15 = vector.load %arg9[%c1_22, %c2_23, %c0_24] : memref<18x18x4xf32, #tpu.memory_space<vmem>>, vector<16x16x4xf32>
    %16 = vector.shape_cast %15 : vector<16x16x4xf32> to vector<256x4xf32>
    %c2_25 = arith.constant 2 : index
    %c0_26 = arith.constant 0 : index
    %c0_27 = arith.constant 0 : index
    %17 = vector.load %arg9[%c2_25, %c0_26, %c0_27] : memref<18x18x4xf32, #tpu.memory_space<vmem>>, vector<16x16x4xf32>
    %18 = vector.shape_cast %17 : vector<16x16x4xf32> to vector<256x4xf32>
    %c2_28 = arith.constant 2 : index
    %c1_29 = arith.constant 1 : index
    %c0_30 = arith.constant 0 : index
    %19 = vector.load %arg9[%c2_28, %c1_29, %c0_30] : memref<18x18x4xf32, #tpu.memory_space<vmem>>, vector<16x16x4xf32>
    %20 = vector.shape_cast %19 : vector<16x16x4xf32> to vector<256x4xf32>
    %c2_31 = arith.constant 2 : index
    %c2_32 = arith.constant 2 : index
    %c0_33 = arith.constant 0 : index
    %21 = vector.load %arg9[%c2_31, %c2_32, %c0_33] : memref<18x18x4xf32, #tpu.memory_space<vmem>>, vector<16x16x4xf32>
    %22 = vector.shape_cast %21 : vector<16x16x4xf32> to vector<256x4xf32>
    %23 = tpu.concatenate %6, %8, %10, %12, %14, %16, %18, %20, %22 in 1 : vector<256x4xf32>, vector<256x4xf32>, vector<256x4xf32>, vector<256x4xf32>, vector<256x4xf32>, vector<256x4xf32>, vector<256x4xf32>, vector<256x4xf32>, vector<256x4xf32> -> vector<256x36xf32>
    %24 = arith.truncf %23 : vector<256x36xf32> to vector<256x36xbf16>
    %c0_34 = arith.constant 0 : index
    %c0_35 = arith.constant 0 : index
    %25 = vector.load %arg2[%c0_34, %c0_35] : memref<36x8xbf16, #tpu.memory_space<vmem>>, vector<36x8xbf16>
    %cst_36 = arith.constant dense<0.000000e+00> : vector<256x8xf32>
    %26 = tpu.matmul %24, %25, %cst_36 {dimension_numbers = #tpu.dot_dimension_numbers<[1], [0], [0], [1], [0, 0, 1, 1], [], []>} : vector<256x36xbf16>, vector<36x8xbf16>, vector<256x8xf32> -> vector<256x8xf32>
    %c0_37 = arith.constant 0 : index
    %c0_38 = arith.constant 0 : index
    %27 = vector.load %arg3[%c0_37, %c0_38] : memref<1x8xf32, #tpu.memory_space<vmem>>, vector<1x8xf32>
    %28 = vector.broadcast %27 : vector<1x8xf32> to vector<256x8xf32>
    %29 = arith.mulf %26, %28 : vector<256x8xf32>
    %c0_39 = arith.constant 0 : index
    %c0_40 = arith.constant 0 : index
    %30 = vector.load %arg4[%c0_39, %c0_40] : memref<1x8xf32, #tpu.memory_space<vmem>>, vector<1x8xf32>
    %31 = vector.broadcast %30 : vector<1x8xf32> to vector<256x8xf32>
    %32 = arith.addf %29, %31 : vector<256x8xf32>
    %cst_41 = arith.constant 0.000000e+00 : f32
    %33 = vector.broadcast %cst_41 : f32 to vector<256x8xf32>
    %34 = arith.maximumf %32, %33 : vector<256x8xf32>
    %cst_42 = arith.constant 0.000000e+00 : f32
    %35 = vector.broadcast %cst_42 : f32 to vector<18x18x8xf32>
    %c0_43 = arith.constant 0 : index
    %c0_44 = arith.constant 0 : index
    %c0_45 = arith.constant 0 : index
    %36 = vector.load %arg10[%c0_43, %c0_44, %c0_45] : memref<18x18x8xf32, #tpu.memory_space<vmem>>, vector<18x18x8xf32>
    tpu.vector_store %arg10[%c0_43, %c0_44, %c0_45], %35 {strides = array<i32>} : memref<18x18x8xf32, #tpu.memory_space<vmem>>, vector<18x18x8xf32>,
    %37 = vector.shape_cast %34 : vector<256x8xf32> to vector<16x16x8xf32>
    %c1_46 = arith.constant 1 : index
    %c1_47 = arith.constant 1 : index
    %c0_48 = arith.constant 0 : index
    %38 = vector.load %arg10[%c1_46, %c1_47, %c0_48] : memref<18x18x8xf32, #tpu.memory_space<vmem>>, vector<16x16x8xf32>
    tpu.vector_store %arg10[%c1_46, %c1_47, %c0_48], %37 {strides = array<i32>} : memref<18x18x8xf32, #tpu.memory_space<vmem>>, vector<16x16x8xf32>,
    %c0_49 = arith.constant 0 : index
    %c0_50 = arith.constant 0 : index
    %c0_51 = arith.constant 0 : index
    %39 = vector.load %arg10[%c0_49, %c0_50, %c0_51] : memref<18x18x8xf32, #tpu.memory_space<vmem>>, vector<16x16x8xf32>
    %40 = vector.shape_cast %39 : vector<16x16x8xf32> to vector<256x8xf32>
    %c0_52 = arith.constant 0 : index
    %c1_53 = arith.constant 1 : index
    %c0_54 = arith.constant 0 : index
    %41 = vector.load %arg10[%c0_52, %c1_53, %c0_54] : memref<18x18x8xf32, #tpu.memory_space<vmem>>, vector<16x16x8xf32>
    %42 = vector.shape_cast %41 : vector<16x16x8xf32> to vector<256x8xf32>
    %c0_55 = arith.constant 0 : index
    %c2_56 = arith.constant 2 : index
    %c0_57 = arith.constant 0 : index
    %43 = vector.load %arg10[%c0_55, %c2_56, %c0_57] : memref<18x18x8xf32, #tpu.memory_space<vmem>>, vector<16x16x8xf32>
    %44 = vector.shape_cast %43 : vector<16x16x8xf32> to vector<256x8xf32>
    %c1_58 = arith.constant 1 : index
    %c0_59 = arith.constant 0 : index
    %c0_60 = arith.constant 0 : index
    %45 = vector.load %arg10[%c1_58, %c0_59, %c0_60] : memref<18x18x8xf32, #tpu.memory_space<vmem>>, vector<16x16x8xf32>
    %46 = vector.shape_cast %45 : vector<16x16x8xf32> to vector<256x8xf32>
    %c1_61 = arith.constant 1 : index
    %c1_62 = arith.constant 1 : index
    %c0_63 = arith.constant 0 : index
    %47 = vector.load %arg10[%c1_61, %c1_62, %c0_63] : memref<18x18x8xf32, #tpu.memory_space<vmem>>, vector<16x16x8xf32>
    %48 = vector.shape_cast %47 : vector<16x16x8xf32> to vector<256x8xf32>
    %c1_64 = arith.constant 1 : index
    %c2_65 = arith.constant 2 : index
    %c0_66 = arith.constant 0 : index
    %49 = vector.load %arg10[%c1_64, %c2_65, %c0_66] : memref<18x18x8xf32, #tpu.memory_space<vmem>>, vector<16x16x8xf32>
    %50 = vector.shape_cast %49 : vector<16x16x8xf32> to vector<256x8xf32>
    %c2_67 = arith.constant 2 : index
    %c0_68 = arith.constant 0 : index
    %c0_69 = arith.constant 0 : index
    %51 = vector.load %arg10[%c2_67, %c0_68, %c0_69] : memref<18x18x8xf32, #tpu.memory_space<vmem>>, vector<16x16x8xf32>
    %52 = vector.shape_cast %51 : vector<16x16x8xf32> to vector<256x8xf32>
    %c2_70 = arith.constant 2 : index
    %c1_71 = arith.constant 1 : index
    %c0_72 = arith.constant 0 : index
    %53 = vector.load %arg10[%c2_70, %c1_71, %c0_72] : memref<18x18x8xf32, #tpu.memory_space<vmem>>, vector<16x16x8xf32>
    %54 = vector.shape_cast %53 : vector<16x16x8xf32> to vector<256x8xf32>
    %c2_73 = arith.constant 2 : index
    %c2_74 = arith.constant 2 : index
    %c0_75 = arith.constant 0 : index
    %55 = vector.load %arg10[%c2_73, %c2_74, %c0_75] : memref<18x18x8xf32, #tpu.memory_space<vmem>>, vector<16x16x8xf32>
    %56 = vector.shape_cast %55 : vector<16x16x8xf32> to vector<256x8xf32>
    %57 = tpu.concatenate %40, %42, %44, %46, %48, %50, %52, %54, %56 in 1 : vector<256x8xf32>, vector<256x8xf32>, vector<256x8xf32>, vector<256x8xf32>, vector<256x8xf32>, vector<256x8xf32>, vector<256x8xf32>, vector<256x8xf32>, vector<256x8xf32> -> vector<256x72xf32>
    %58 = arith.truncf %57 : vector<256x72xf32> to vector<256x72xbf16>
    %c0_76 = arith.constant 0 : index
    %c0_77 = arith.constant 0 : index
    %59 = vector.load %arg5[%c0_76, %c0_77] : memref<8x72xbf16, #tpu.memory_space<vmem>>, vector<8x72xbf16>
    %cst_78 = arith.constant dense<0.000000e+00> : vector<8x256xf32>
    %60 = tpu.matmul %59, %58, %cst_78 {dimension_numbers = #tpu.dot_dimension_numbers<[1], [1], [0], [0], [0, 0, 1, 0], [], []>} : vector<8x72xbf16>, vector<256x72xbf16>, vector<8x256xf32> -> vector<8x256xf32>
    %c0_79 = arith.constant 0 : index
    %c0_80 = arith.constant 0 : index
    %61 = vector.load %arg6[%c0_79, %c0_80] : memref<8x1xf32, #tpu.memory_space<vmem>>, vector<8x1xf32>
    %62 = vector.broadcast %61 : vector<8x1xf32> to vector<8x256xf32>
    %63 = arith.mulf %60, %62 : vector<8x256xf32>
    %c0_81 = arith.constant 0 : index
    %c0_82 = arith.constant 0 : index
    %64 = vector.load %arg7[%c0_81, %c0_82] : memref<8x1xf32, #tpu.memory_space<vmem>>, vector<8x1xf32>
    %65 = vector.broadcast %64 : vector<8x1xf32> to vector<8x256xf32>
    %66 = arith.addf %63, %65 : vector<8x256xf32>
    %cst_83 = arith.constant 0.000000e+00 : f32
    %67 = vector.broadcast %cst_83 : f32 to vector<8x256xf32>
    %68 = arith.maximumf %66, %67 : vector<8x256xf32>
    %c0_84 = arith.constant 0 : index
    %c0_85 = arith.constant 0 : index
    %c0_86 = arith.constant 0 : index
    %69 = vector.load %arg8[%c0_84, %c0_85, %c0_86] : memref<1x8x256xf32, #tpu.memory_space<vmem>>, vector<1x8x256xf32>
    %70 = vector.shape_cast %69 : vector<1x8x256xf32> to vector<8x256xf32>
    %71 = vector.shape_cast %68 : vector<8x256xf32> to vector<1x8x256xf32>
    tpu.vector_store %arg8[%c0_84, %c0_85, %c0_86], %71 {strides = array<i32>} : memref<1x8x256xf32, #tpu.memory_space<vmem>>, vector<1x8x256xf32>,
    return
  }
  func.func @transform_0(%arg0: i32) -> (i32, i32, i32, i32) {
    %c0_i32 = arith.constant 0 : i32
    %c0_i32_0 = arith.constant 0 : i32
    %c0_i32_1 = arith.constant 0 : i32
    %c0_i32_2 = arith.constant 0 : i32
    return %arg0, %c0_i32, %c0_i32_0, %c0_i32_1 : i32, i32, i32, i32
  }
  func.func @transform_1(%arg0: i32) -> (i32, i32) {
    %c0_i32 = arith.constant 0 : i32
    %c0_i32_0 = arith.constant 0 : i32
    %c0_i32_1 = arith.constant 0 : i32
    return %c0_i32, %c0_i32_0 : i32, i32
  }
  func.func @transform_2(%arg0: i32) -> (i32, i32) {
    %c0_i32 = arith.constant 0 : i32
    %c0_i32_0 = arith.constant 0 : i32
    %c0_i32_1 = arith.constant 0 : i32
    return %c0_i32, %c0_i32_0 : i32, i32
  }
  func.func @transform_3(%arg0: i32) -> (i32, i32) {
    %c0_i32 = arith.constant 0 : i32
    %c0_i32_0 = arith.constant 0 : i32
    %c0_i32_1 = arith.constant 0 : i32
    return %c0_i32, %c0_i32_0 : i32, i32
  }
  func.func @transform_4(%arg0: i32) -> (i32, i32) {
    %c0_i32 = arith.constant 0 : i32
    %c0_i32_0 = arith.constant 0 : i32
    %c0_i32_1 = arith.constant 0 : i32
    return %c0_i32, %c0_i32_0 : i32, i32
  }
  func.func @transform_5(%arg0: i32) -> (i32, i32) {
    %c0_i32 = arith.constant 0 : i32
    %c0_i32_0 = arith.constant 0 : i32
    %c0_i32_1 = arith.constant 0 : i32
    return %c0_i32, %c0_i32_0 : i32, i32
  }
  func.func @transform_6(%arg0: i32) -> (i32, i32) {
    %c0_i32 = arith.constant 0 : i32
    %c0_i32_0 = arith.constant 0 : i32
    %c0_i32_1 = arith.constant 0 : i32
    return %c0_i32, %c0_i32_0 : i32, i32
  }
  func.func @transform_7(%arg0: i32) -> (i32, i32, i32) {
    %c0_i32 = arith.constant 0 : i32
    %c0_i32_0 = arith.constant 0 : i32
    %c0_i32_1 = arith.constant 0 : i32
    return %arg0, %c0_i32, %c0_i32_0 : i32, i32, i32
  }
}

</mosaic_0001>

<bundles_post_ra>
// kernel: conv_block.1
= control target key start
LH: loop header
LB: loop body
LE: loop exit
PB: predicated region body
PF: predicated region fallthrough
CT: control target
= control target key end

     0   :  { %s5681_s24 = smov 0   ;;  %s8393_s0 = inlined_call_operand.vmem [shape: f32[2,16,16,4], index: 0, kind: input, shape index: {}]   ;;  %s8394_s1 = inlined_call_operand.vmem [shape: bf16[36,8], index: 1, kind: input, shape index: {}]   ;;  %s8395_s2 = inlined_call_operand.vmem [shape: f32[1,8], index: 2, kind: input, shape index: {}]   ;;  %s8396_s3 = inlined_call_operand.vmem [shape: f32[1,8], index: 3, kind: input, shape index: {}]   ;;  %s8397_s4 = inlined_call_operand.vmem [shape: bf16[8,72], index: 4, kind: input, shape index: {}]   ;;  %s8398_s5 = inlined_call_operand.vmem [shape: f32[8,1], index: 5, kind: input, shape index: {}]   ;;  %s8399_s6 = inlined_call_operand.vmem [shape: f32[8,1], index: 6, kind: input, shape index: {}]   ;;  %s8400_s7 = inlined_call_operand.vmem [shape: f32[2,8,256], index: 7, kind: output, shape index: {}]  }
   0x1 LB: > { %s4183_s25 = sadd.s32 4294967295, %s5625_s24   ;;  %p4187_p0 = scmp.ge.s32.totalorder %s5625_s24, 1  ;;  %s5625_s24 = sphi %s5681_s24, %s17_s24  }
   0x2   : > { %p237_p1 = scmp.lt.s32.totalorder %s5625_s24, 3 }
   0x4   : > { %p238_p2 = pnand %p4187_p0, %p237_p1 }
   0x6   : > { %241 = sbr.rel (%p238_p2) target bundleno = 1145 (0x479), region = 48 }
   0xb   : > { %vm280_vm0 = vcmask 31744   ;;  %vm283_vm1 = vcmask 25600   ;;  %p5691_p3 = scmp.lt.s32.totalorder %s4183_s25, 1  ;;  %v8401_v0 = vmov 0.0   ;;  %s5628_s8 = smov 4   ;;  %vm1746_vm2 = vcmask 64512  }
   0xc   : > { %281 = vst.msk [vmem:[#allocation2] sm:$0xff] %vm280_vm0, %v8401_v0  ;;  %282 = vst.msk [vmem:[#allocation2 + $0x8] sm:$0xff] %vm280_vm0, %v8401_v0  ;;  %s5629_s9 = smov 8   ;;  %s5630_s10 = smov 12   ;;  %vm2062_vm3 = vcmask 1041408   ;;  %vm1779_vm4 = vcmask 97280  }
   0xd   : > { %284 = vst.msk [vmem:[#allocation2 + $0x10] sm:$0x3] %vm283_vm1, %v8401_v0  ;;  %287 = vst.msk [vmem:[#allocation2 + $0x28] sm:$0x3] %vm283_vm1, %v8401_v0  ;;  %s8657_s25 = smov (!%p5691_p3, %s4183_s25), 1  ;;  %s5631_s11 = smov 16  }
   0xe   : > { %285 = vst.msk [vmem:[#allocation2 + $0x18] sm:$0xff] %vm280_vm0, %v8401_v0  ;;  %286 = vst.msk [vmem:[#allocation2 + $0x20] sm:$0xff] %vm280_vm0, %v8401_v0  ;;  %s4216_s27 = sshll.u32 %s8657_s25, 8  ;;  %s5632_s12 = smov 20   ;;  %vm1812_vm5 = vcmask 130048   ;;  %vm1845_vm6 = vcmask 162816  }
   0xf   : > { %288 = vst.msk [vmem:[#allocation2 + $0x30] sm:$0xff] %vm280_vm0, %v8401_v0  ;;  %289 = vst.msk [vmem:[#allocation2 + $0x38] sm:$0xff] %vm280_vm0, %v8401_v0  ;;  %s5813_s30 = scalar_lea.vmem %s8393_s0, %s4216_s27  ;;  %s5633_s13 = smov 24   ;;  %vm1878_vm7 = vcmask 195584   ;;  %vm1911_vm8 = vcmask 228352   ;;  %vm1944_vm9 = vcmask 261120  }
  0x10   : > { %290 = vst.msk [vmem:[#allocation2 + $0x40] sm:$0x3] %vm283_vm1, %v8401_v0  ;;  %293 = vst.msk [vmem:[#allocation2 + $0x58] sm:$0x3] %vm283_vm1, %v8401_v0  ;;  %v338_v1 = vld [vmem:[%s5813_s30 + $0x10] sm:$0xff]  ;;  %v339_v2 = vld [vmem:[%s5813_s30 + $0x18] sm:$0xff] }
  0x11   : > { %291 = vst.msk [vmem:[#allocation2 + $0x48] sm:$0xff] %vm280_vm0, %v8401_v0  ;;  %292 = vst.msk [vmem:[#allocation2 + $0x50] sm:$0xff] %vm280_vm0, %v8401_v0  ;;  %v336_v3 = vld [vmem:[%s5813_s30] sm:$0xff]  ;;  %v337_v4 = vld [vmem:[%s5813_s30 + $0x8] sm:$0xff]  ;;  %s5634_s20 = smov 28   ;;  %s5635_s21 = smov 32  }
  0x12   : > { %294 = vst.msk [vmem:[#allocation2 + $0x60] sm:$0xff] %vm280_vm0, %v8401_v0  ;;  %295 = vst.msk [vmem:[#allocation2 + $0x68] sm:$0xff] %vm280_vm0, %v8401_v0  ;;  %v340_v5 = vld [vmem:[%s5813_s30 + $0x20] sm:$0xff]  ;;  %v341_v6 = vld [vmem:[%s5813_s30 + $0x28] sm:$0xff]  ;;  %vm2013_vm10 = vcmask 293888   ;;  %vm2339_vm11 = vcmask 58368  }
  0x13   : > { %296 = vst.msk [vmem:[#allocation2 + $0x70] sm:$0x3] %vm283_vm1, %v8401_v0  ;;  %299 = vst.msk [vmem:[#allocation2 + $0x88] sm:$0x3] %vm283_vm1, %v8401_v0  ;;  %v433_v7 = vld [vmem:[#allocation2 + $0x1] sm:$0xff]  ;;  %v342_v9 = vld [vmem:[%s5813_s30 + $0x30] sm:$0xff] }
  0x14   : > { %297 = vst.msk [vmem:[#allocation2 + $0x78] sm:$0xff] %vm280_vm0, %v8401_v0  ;;  %298 = vst.msk [vmem:[#allocation2 + $0x80] sm:$0xff] %vm280_vm0, %v8401_v0  ;;  %v434_v8 = vld [vmem:[#allocation2 + $0x9] sm:$0xff]  ;;  %v343_v11 = vld [vmem:[%s5813_s30 + $0x38] sm:$0xff]  ;;  %s5636_s22 = smov 48   ;;  %s5637_s23 = smov 56  }
  0x15   : > { %300 = vst.msk [vmem:[#allocation2 + $0x90] sm:$0xff] %vm280_vm0, %v8401_v0  ;;  %301 = vst.msk [vmem:[#allocation2 + $0x98] sm:$0xff] %vm280_vm0, %v8401_v0  ;;  %v4324_v10 = vpack.i.bf16 %v434_v8, %v433_v7  ;;  %v344_v12 = vld [vmem:[%s5813_s30 + $0x40] sm:$0xff]  ;;  %v345_v13 = vld [vmem:[%s5813_s30 + $0x48] sm:$0xff]  ;;  %s5638_s26 = smov 64   ;;  %vm3866_vm12 = vcmask 326656  }
  0x16   : > { %302 = vst.msk [vmem:[#allocation2 + $0xa0] sm:$0x3] %vm283_vm1, %v8401_v0  ;;  %305 = vst.msk [vmem:[#allocation2 + $0xb8] sm:$0x3] %vm283_vm1, %v8401_v0  ;;  %v346_v14 = vld [vmem:[%s5813_s30 + $0x50] sm:$0xff]  ;;  %v347_v15 = vld [vmem:[%s5813_s30 + $0x58] sm:$0xff] }
  0x17   : > { %303 = vst.msk [vmem:[#allocation2 + $0xa8] sm:$0xff] %vm280_vm0, %v8401_v0  ;;  %304 = vst.msk [vmem:[#allocation2 + $0xb0] sm:$0xff] %vm280_vm0, %v8401_v0  ;;  %v348_v16 = vld [vmem:[%s5813_s30 + $0x60] sm:$0xff]  ;;  %4325 = vrot.lane.b32.xlu0 %v4324_v10, %s5628_s8  ;;  %v349_v17 = vld [vmem:[%s5813_s30 + $0x68] sm:$0xff]  ;;  %vm3899_vm13 = vcmask 392192   ;;  %vm3932_vm14 = vcmask 457728  }
  0x18   : > { %306 = vst.msk [vmem:[#allocation2 + $0xc0] sm:$0xff] %vm280_vm0, %v8401_v0  ;;  %307 = vst.msk [vmem:[#allocation2 + $0xc8] sm:$0xff] %vm280_vm0, %v8401_v0  ;;  %v350_v18 = vld [vmem:[%s5813_s30 + $0x70] sm:$0xff]  ;;  %v351_v19 = vld [vmem:[%s5813_s30 + $0x78] sm:$0xff]  ;;  %vm3965_vm15 = vcmask 523264   ;;  %s4217_s15 = sshll.u32 %s8657_s25, 4 }
  0x19   : > { %308 = vst.msk [vmem:[#allocation2 + $0xd0] sm:$0x3] %vm283_vm1, %v8401_v0  ;;  %311 = vst.msk [vmem:[#allocation2 + $0xe8] sm:$0x3] %vm283_vm1, %v8401_v0  ;;  %v352_v20 = vld [vmem:[%s5813_s30 + $0x80] sm:$0xff]  ;;  %v353_v21 = vld [vmem:[%s5813_s30 + $0x88] sm:$0xff]  ;;  %s278_s18 = scalar_lea.vmem %s8400_s7, %s4217_s15 }
  0x1a   : > { %309 = vst.msk [vmem:[#allocation2 + $0xd8] sm:$0xff] %vm280_vm0, %v8401_v0  ;;  %310 = vst.msk [vmem:[#allocation2 + $0xe0] sm:$0xff] %vm280_vm0, %v8401_v0  ;;  %v354_v22 = vld [vmem:[%s5813_s30 + $0x90] sm:$0xff]  ;;  %v355_v23 = vld [vmem:[%s5813_s30 + $0x98] sm:$0xff] }
  0x1b   : > { %312 = vst.msk [vmem:[#allocation2 + $0xf0] sm:$0xff] %vm280_vm0, %v8401_v0  ;;  %313 = vst.msk [vmem:[#allocation2 + $0xf8] sm:$0xff] %vm280_vm0, %v8401_v0  ;;  %v356_v24 = vld [vmem:[%s5813_s30 + $0xa0] sm:$0xff]  ;;  %v357_v25 = vld [vmem:[%s5813_s30 + $0xa8] sm:$0xff] }
  0x1c   : > { %314 = vst.msk [vmem:[#allocation2 + $0x100] sm:$0x3] %vm283_vm1, %v8401_v0  ;;  %317 = vst.msk [vmem:[#allocation2 + $0x118] sm:$0x3] %vm283_vm1, %v8401_v0  ;;  %v358_v35 = vld [vmem:[%s5813_s30 + $0xb0] sm:$0xff]  ;;  %v359_v36 = vld [vmem:[%s5813_s30 + $0xb8] sm:$0xff] }
  0x1d   : > { %315 = vst.msk [vmem:[#allocation2 + $0x108] sm:$0xff] %vm280_vm0, %v8401_v0  ;;  %316 = vst.msk [vmem:[#allocation2 + $0x110] sm:$0xff] %vm280_vm0, %v8401_v0  ;;  %v360_v50 = vld [vmem:[%s5813_s30 + $0xc0] sm:$0xff]  ;;  %v361_v51 = vld [vmem:[%s5813_s30 + $0xc8] sm:$0xff] }
  0x1e   : > { %318 = vst.msk [vmem:[#allocation2 + $0x120] sm:$0xff] %vm280_vm0, %v8401_v0  ;;  %319 = vst.msk [vmem:[#allocation2 + $0x128] sm:$0xff] %vm280_vm0, %v8401_v0  ;;  %v362_v52 = vld [vmem:[%s5813_s30 + $0xd0] sm:$0xff]  ;;  %v363_v53 = vld [vmem:[%s5813_s30 + $0xd8] sm:$0xff] }
  0x1f   : > { %320 = vst.msk [vmem:[#allocation2 + $0x130] sm:$0x3] %vm283_vm1, %v8401_v0  ;;  %323 = vst.msk [vmem:[#allocation2 + $0x148] sm:$0x3] %vm283_vm1, %v8401_v0  ;;  %v364_v54 = vld [vmem:[%s5813_s30 + $0xe0] sm:$0xff]  ;;  %v365_v55 = vld [vmem:[%s5813_s30 + $0xe8] sm:$0xff] }
  0x20   : > { %321 = vst.msk [vmem:[#allocation2 + $0x138] sm:$0xff] %vm280_vm0, %v8401_v0  ;;  %322 = vst.msk [vmem:[#allocation2 + $0x140] sm:$0xff] %vm280_vm0, %v8401_v0 }
  0x21   : > { %324 = vst.msk [vmem:[#allocation2 + $0x150] sm:$0xff] %vm280_vm0, %v8401_v0  ;;  %325 = vst.msk [vmem:[#allocation2 + $0x158] sm:$0xff] %vm280_vm0, %v8401_v0 }
  0x22   : > { %326 = vst.msk [vmem:[#allocation2 + $0x160] sm:$0x3] %vm283_vm1, %v8401_v0  ;;  %329 = vst.msk [vmem:[#allocation2 + $0x178] sm:$0x3] %vm283_vm1, %v8401_v0 }
  0x23   : > { %327 = vst.msk [vmem:[#allocation2 + $0x168] sm:$0xff] %vm280_vm0, %v8401_v0  ;;  %328 = vst.msk [vmem:[#allocation2 + $0x170] sm:$0xff] %vm280_vm0, %v8401_v0 }
  0x24   : > { %330 = vst.msk [vmem:[#allocation2 + $0x180] sm:$0xff] %vm280_vm0, %v8401_v0  ;;  %331 = vst.msk [vmem:[#allocation2 + $0x188] sm:$0xff] %vm280_vm0, %v8401_v0 }
  0x25   : > { %332 = vst.msk [vmem:[#allocation2 + $0x190] sm:$0x3] %vm283_vm1, %v8401_v0  ;;  %335 = vst.msk [vmem:[#allocation2 + $0x1a8] sm:$0x3] %vm283_vm1, %v8401_v0 }
  0x26   : > { %333 = vst.msk [vmem:[#allocation2 + $0x198] sm:$0xff] %vm280_vm0, %v8401_v0  ;;  %334 = vst.msk [vmem:[#allocation2 + $0x1a0] sm:$0xff] %vm280_vm0, %v8401_v0 }
  0x27   : > { %371 = vst.msk [vmem:[#allocation2 + $0x31] sm:$0xff] %vm280_vm0, %v338_v1  ;;  %372 = vst.msk [vmem:[#allocation2 + $0x39] sm:$0xff] %vm280_vm0, %v339_v2 }
  0x28   : > { %369 = vst.msk [vmem:[#allocation2 + $0x19] sm:$0xff] %vm280_vm0, %v336_v3  ;;  %370 = vst.msk [vmem:[#allocation2 + $0x21] sm:$0xff] %vm280_vm0, %v337_v4 }
  0x29   : > { %373 = vst.msk [vmem:[#allocation2 + $0x49] sm:$0xff] %vm280_vm0, %v340_v5  ;;  %374 = vst.msk [vmem:[#allocation2 + $0x51] sm:$0xff] %vm280_vm0, %v341_v6 }
  0x2a   : > { %375 = vst.msk [vmem:[#allocation2 + $0x61] sm:$0xff] %vm280_vm0, %v342_v9  ;;  %376 = vst.msk [vmem:[#allocation2 + $0x69] sm:$0xff] %vm280_vm0, %v343_v11 }
  0x2b   : > { %377 = vst.msk [vmem:[#allocation2 + $0x79] sm:$0xff] %vm280_vm0, %v344_v12  ;;  %378 = vst.msk [vmem:[#allocation2 + $0x81] sm:$0xff] %vm280_vm0, %v345_v13 }
  0x2c   : > { %379 = vst.msk [vmem:[#allocation2 + $0x91] sm:$0xff] %vm280_vm0, %v346_v14  ;;  %380 = vst.msk [vmem:[#allocation2 + $0x99] sm:$0xff] %vm280_vm0, %v347_v15  ;;  %v465_v15 = vld [vmem:[#allocation2 + $0x2] sm:$0xff] }
  0x2d   : > { %381 = vst.msk [vmem:[#allocation2 + $0xa9] sm:$0xff] %vm280_vm0, %v348_v16  ;;  %382 = vst.msk [vmem:[#allocation2 + $0xb1] sm:$0xff] %vm280_vm0, %v349_v17  ;;  %v466_v16 = vld [vmem:[#allocation2 + $0xa] sm:$0xff] }
  0x2e   : > { %383 = vst.msk [vmem:[#allocation2 + $0xc1] sm:$0xff] %vm280_vm0, %v350_v18  ;;  %384 = vst.msk [vmem:[#allocation2 + $0xc9] sm:$0xff] %vm280_vm0, %v351_v19  ;;  %v437_v26 = vld [vmem:[#allocation2 + $0x31] sm:$0xff]  ;;  %v438_v27 = vld [vmem:[#allocation2 + $0x39] sm:$0xff]  ;;  %v4404_v18 = vpack.i.bf16 %v466_v16, %v465_v15 }
  0x2f   : > { %385 = vst.msk [vmem:[#allocation2 + $0xd9] sm:$0xff] %vm280_vm0, %v352_v20  ;;  %386 = vst.msk [vmem:[#allocation2 + $0xe1] sm:$0xff] %vm280_vm0, %v353_v21  ;;  %v435_v28 = vld [vmem:[#allocation2 + $0x19] sm:$0xff]  ;;  %v5860_v29 = vpack.i.bf16 %v438_v27, %v437_v26  ;;  %v436_v30 = vld [vmem:[#allocation2 + $0x21] sm:$0xff] }
  0x30   : > { %387 = vst.msk [vmem:[#allocation2 + $0xf1] sm:$0xff] %vm280_vm0, %v354_v22  ;;  %388 = vst.msk [vmem:[#allocation2 + $0xf9] sm:$0xff] %vm280_vm0, %v355_v23  ;;  %v439_v31 = vld [vmem:[#allocation2 + $0x49] sm:$0xff]  ;;  %v440_v32 = vld [vmem:[#allocation2 + $0x51] sm:$0xff]  ;;  %v5862_v33 = vpack.i.bf16 %v436_v30, %v435_v28 }
  0x31   : > { %389 = vst.msk [vmem:[#allocation2 + $0x109] sm:$0xff] %vm280_vm0, %v356_v24  ;;  %390 = vst.msk [vmem:[#allocation2 + $0x111] sm:$0xff] %vm280_vm0, %v357_v25  ;;  %v441_v34 = vld [vmem:[#allocation2 + $0x61] sm:$0xff]  ;;  %4335 = vrot.lane.b32.xlu1 %v5860_v29, %s5628_s8  ;;  %v5868_v37 = vpack.i.bf16 %v440_v32, %v439_v31  ;;  %v442_v38 = vld [vmem:[#allocation2 + $0x69] sm:$0xff] }
  0x32   : > { %391 = vst.msk [vmem:[#allocation2 + $0x121] sm:$0xff] %vm280_vm0, %v358_v35  ;;  %392 = vst.msk [vmem:[#allocation2 + $0x129] sm:$0xff] %vm280_vm0, %v359_v36  ;;  %4330 = vrot.lane.b32.xlu0 %v5862_v33, %s5628_s8  ;;  %v5874_v39 = vpack.i.bf16 %v442_v38, %v441_v34  ;;  %v443_v40 = vld [vmem:[#allocation2 + $0x79] sm:$0xff]  ;;  %v444_v41 = vld [vmem:[#allocation2 + $0x81] sm:$0xff] }
  0x33   : > { %v445_v42 = vld [vmem:[#allocation2 + $0x91] sm:$0xff]  ;;  %v446_v43 = vld [vmem:[#allocation2 + $0x99] sm:$0xff]  ;;  %v5878_v45 = vpack.i.bf16 %v444_v41, %v443_v40  ;;  %393 = vst.msk [vmem:[#allocation2 + $0x139] sm:$0xff] %vm280_vm0, %v360_v50  ;;  %394 = vst.msk [vmem:[#allocation2 + $0x141] sm:$0xff] %vm280_vm0, %v361_v51 }
  0x34   : > { %v447_v44 = vld [vmem:[#allocation2 + $0xa9] sm:$0xff]  ;;  %v448_v46 = vld [vmem:[#allocation2 + $0xb1] sm:$0xff]  ;;  %v5882_v49 = vpack.i.bf16 %v446_v43, %v445_v42  ;;  %395 = vst.msk [vmem:[#allocation2 + $0x151] sm:$0xff] %vm280_vm0, %v362_v52  ;;  %396 = vst.msk [vmem:[#allocation2 + $0x159] sm:$0xff] %vm280_vm0, %v363_v53 }
  0x35   : > { %4340 = vrot.lane.b32.xlu1 %v5868_v37, %s5628_s8  ;;  %v449_v47 = vld [vmem:[#allocation2 + $0xc1] sm:$0xff]  ;;  %v450_v48 = vld [vmem:[#allocation2 + $0xc9] sm:$0xff]  ;;  %397 = vst.msk [vmem:[#allocation2 + $0x169] sm:$0xff] %vm280_vm0, %v364_v54  ;;  %398 = vst.msk [vmem:[#allocation2 + $0x171] sm:$0xff] %vm280_vm0, %v365_v55  ;;  %v5898_v56 = vpack.i.bf16 %v448_v46, %v447_v44 }
  0x36   : > { %4345 = vrot.lane.b32.xlu0 %v5874_v39, %s5628_s8  ;;  %v5902_v57 = vpack.i.bf16 %v450_v48, %v449_v47  ;;  %v451_v58 = vld [vmem:[#allocation2 + $0xd9] sm:$0xff]  ;;  %v452_v59 = vld [vmem:[#allocation2 + $0xe1] sm:$0xff]  ;;  %2337 = vst.msk [vmem:[#allocation3] sm:$0xff] %vm1746_vm2, %v8401_v0  ;;  %2338 = vst.msk [vmem:[#allocation3 + $0x8] sm:$0xff] %vm1746_vm2, %v8401_v0 }
  0x37   : > { %v453_v60 = vld [vmem:[#allocation2 + $0xf1] sm:$0xff]  ;;  %v454_v61 = vld [vmem:[#allocation2 + $0xf9] sm:$0xff]  ;;  %v5906_v62 = vpack.i.bf16 %v452_v59, %v451_v58  ;;  %2341 = vst.msk [vmem:[#allocation3 + $0x18] sm:$0xff] %vm1746_vm2, %v8401_v0  ;;  %2342 = vst.msk [vmem:[#allocation3 + $0x20] sm:$0xff] %vm1746_vm2, %v8401_v0 }
  0x38   : > { %v5910_v63 = vpack.i.bf16 %v454_v61, %v453_v60  ;;  %v455_v1 = vld [vmem:[#allocation2 + $0x109] sm:$0xff]  ;;  %v456_v2 = vld [vmem:[#allocation2 + $0x111] sm:$0xff]  ;;  %2344 = vst.msk [vmem:[#allocation3 + $0x30] sm:$0xff] %vm1746_vm2, %v8401_v0  ;;  %2345 = vst.msk [vmem:[#allocation3 + $0x38] sm:$0xff] %vm1746_vm2, %v8401_v0 }
  0x39   : > { %4350 = vrot.lane.b32.xlu1 %v5878_v45, %s5628_s8  ;;  %v457_v3 = vld [vmem:[#allocation2 + $0x121] sm:$0xff]  ;;  %v458_v4 = vld [vmem:[#allocation2 + $0x129] sm:$0xff]  ;;  %v5914_v5 = vpack.i.bf16 %v456_v2, %v455_v1  ;;  %2347 = vst.msk [vmem:[#allocation3 + $0x48] sm:$0xff] %vm1746_vm2, %v8401_v0  ;;  %2348 = vst.msk [vmem:[#allocation3 + $0x50] sm:$0xff] %vm1746_vm2, %v8401_v0 }
  0x3a   : > { %4355 = vrot.lane.b32.xlu0 %v5882_v49, %s5628_s8  ;;  %v5918_v6 = vpack.i.bf16 %v458_v4, %v457_v3  ;;  %v459_v7 = vld [vmem:[#allocation2 + $0x139] sm:$0xff]  ;;  %v460_v8 = vld [vmem:[#allocation2 + $0x141] sm:$0xff]  ;;  %2350 = vst.msk [vmem:[#allocation3 + $0x60] sm:$0xff] %vm1746_vm2, %v8401_v0  ;;  %2351 = vst.msk [vmem:[#allocation3 + $0x68] sm:$0xff] %vm1746_vm2, %v8401_v0 }
  0x3b   : > { %v461_v9 = vld [vmem:[#allocation2 + $0x151] sm:$0xff]  ;;  %v462_v10 = vld [vmem:[#allocation2 + $0x159] sm:$0xff]  ;;  %2353 = vst.msk [vmem:[#allocation3 + $0x78] sm:$0xff] %vm1746_vm2, %v8401_v0  ;;  %2354 = vst.msk [vmem:[#allocation3 + $0x80] sm:$0xff] %vm1746_vm2, %v8401_v0  ;;  %v5994_v11 = vpack.i.bf16 %v460_v8, %v459_v7 }
  0x3c   : > { %2356 = vst.msk [vmem:[#allocation3 + $0x90] sm:$0xff] %vm1746_vm2, %v8401_v0  ;;  %2357 = vst.msk [vmem:[#allocation3 + $0x98] sm:$0xff] %vm1746_vm2, %v8401_v0  ;;  %v5998_v12 = vpack.i.bf16 %v462_v10, %v461_v9  ;;  %v463_v13 = vld [vmem:[#allocation2 + $0x169] sm:$0xff]  ;;  %v464_v14 = vld [vmem:[#allocation2 + $0x171] sm:$0xff] }
  0x3d   : > { %4360 = vrot.lane.b32.xlu1 %v5898_v56, %s5628_s8  ;;  %2359 = vst.msk [vmem:[#allocation3 + $0xa8] sm:$0xff] %vm1746_vm2, %v8401_v0  ;;  %2360 = vst.msk [vmem:[#allocation3 + $0xb0] sm:$0xff] %vm1746_vm2, %v8401_v0  ;;  %v6002_v17 = vpack.i.bf16 %v464_v14, %v463_v13  ;;  %v467_v19 = vld [vmem:[#allocation2 + $0x1a] sm:$0xff]  ;;  %v468_v20 = vld [vmem:[#allocation2 + $0x22] sm:$0xff] }
  0x3e   : > { %4365 = vrot.lane.b32.xlu0 %v5902_v57, %s5628_s8  ;;  %2362 = vst.msk [vmem:[#allocation3 + $0xc0] sm:$0xff] %vm1746_vm2, %v8401_v0  ;;  %2363 = vst.msk [vmem:[#allocation3 + $0xc8] sm:$0xff] %vm1746_vm2, %v8401_v0  ;;  %v469_v21 = vld [vmem:[#allocation2 + $0x32] sm:$0xff]  ;;  %v470_v22 = vld [vmem:[#allocation2 + $0x3a] sm:$0xff]  ;;  %v6008_v23 = vpack.i.bf16 %v468_v20, %v467_v19 }
  0x3f   : > { %2365 = vst.msk [vmem:[#allocation3 + $0xd8] sm:$0xff] %vm1746_vm2, %v8401_v0  ;;  %2366 = vst.msk [vmem:[#allocation3 + $0xe0] sm:$0xff] %vm1746_vm2, %v8401_v0  ;;  %v6011_v24 = vpack.i.bf16 %v470_v22, %v469_v21  ;;  %v471_v25 = vld [vmem:[#allocation2 + $0x4a] sm:$0xff]  ;;  %v472_v26 = vld [vmem:[#allocation2 + $0x52] sm:$0xff] }
  0x40   : > { %2368 = vst.msk [vmem:[#allocation3 + $0xf0] sm:$0xff] %vm1746_vm2, %v8401_v0  ;;  %2369 = vst.msk [vmem:[#allocation3 + $0xf8] sm:$0xff] %vm1746_vm2, %v8401_v0  ;;  %v473_v27 = vld [vmem:[#allocation2 + $0x62] sm:$0xff]  ;;  %v474_v28 = vld [vmem:[#allocation2 + $0x6a] sm:$0xff]  ;;  %v6019_v32 = vpack.i.bf16 %v472_v26, %v471_v25 }
  0x41   : > { %4370 = vrot.lane.b32.xlu1 %v5906_v62, %s5628_s8  ;;  %2371 = vst.msk [vmem:[#allocation3 + $0x108] sm:$0xff] %vm1746_vm2, %v8401_v0  ;;  %2372 = vst.msk [vmem:[#allocation3 + $0x110] sm:$0xff] %vm1746_vm2, %v8401_v0  ;;  %v366_v30 = vld [vmem:[%s5813_s30 + $0xf0] sm:$0xff]  ;;  %v367_v31 = vld [vmem:[%s5813_s30 + $0xf8] sm:$0xff]  ;;  %v6023_v34 = vpack.i.bf16 %v474_v28, %v473_v27 }
  0x42   : > { %4375 = vrot.lane.b32.xlu0 %v5910_v63, %s5628_s8  ;;  %2374 = vst.msk [vmem:[#allocation3 + $0x120] sm:$0xff] %vm1746_vm2, %v8401_v0  ;;  %2375 = vst.msk [vmem:[#allocation3 + $0x128] sm:$0xff] %vm1746_vm2, %v8401_v0  ;;  %v475_v35 = vld [vmem:[#allocation2 + $0x7a] sm:$0xff]  ;;  %v476_v36 = vld [vmem:[#allocation2 + $0x82] sm:$0xff] }
  0x43   : > { %2377 = vst.msk [vmem:[#allocation3 + $0x138] sm:$0xff] %vm1746_vm2, %v8401_v0  ;;  %2378 = vst.msk [vmem:[#allocation3 + $0x140] sm:$0xff] %vm1746_vm2, %v8401_v0  ;;  %v477_v38 = vld [vmem:[#allocation2 + $0x92] sm:$0xff]  ;;  %v478_v40 = vld [vmem:[#allocation2 + $0x9a] sm:$0xff]  ;;  %v6027_v41 = vpack.i.bf16 %v476_v36, %v475_v35 }
  0x44   : > { %2380 = vst.msk [vmem:[#allocation3 + $0x150] sm:$0xff] %vm1746_vm2, %v8401_v0  ;;  %2381 = vst.msk [vmem:[#allocation3 + $0x158] sm:$0xff] %vm1746_vm2, %v8401_v0  ;;  %v6031_v42 = vpack.i.bf16 %v478_v40, %v477_v38  ;;  %v479_v43 = vld [vmem:[#allocation2 + $0xaa] sm:$0xff]  ;;  %v480_v44 = vld [vmem:[#allocation2 + $0xb2] sm:$0xff] }
  0x45   : > { %2383 = vst.msk [vmem:[#allocation3 + $0x168] sm:$0xff] %vm1746_vm2, %v8401_v0  ;;  %2384 = vst.msk [vmem:[#allocation3 + $0x170] sm:$0xff] %vm1746_vm2, %v8401_v0  ;;  %4380 = vrot.lane.b32.xlu1 %v5914_v5, %s5628_s8  ;;  %v481_v46 = vld [vmem:[#allocation2 + $0xc2] sm:$0xff]  ;;  %v482_v47 = vld [vmem:[#allocation2 + $0xca] sm:$0xff]  ;;  %v6035_v48 = vpack.i.bf16 %v480_v44, %v479_v43 }
  0x46   : > { %2386 = vst.msk [vmem:[#allocation3 + $0x180] sm:$0xff] %vm1746_vm2, %v8401_v0  ;;  %2387 = vst.msk [vmem:[#allocation3 + $0x188] sm:$0xff] %vm1746_vm2, %v8401_v0  ;;  %4385 = vrot.lane.b32.xlu0 %v5918_v6, %s5628_s8  ;;  %v6039_v50 = vpack.i.bf16 %v482_v47, %v481_v46  ;;  %v483_v51 = vld [vmem:[#allocation2 + $0xda] sm:$0xff]  ;;  %v484_v52 = vld [vmem:[#allocation2 + $0xe2] sm:$0xff] }
  0x47   : > { %2389 = vst.msk [vmem:[#allocation3 + $0x198] sm:$0xff] %vm1746_vm2, %v8401_v0  ;;  %2390 = vst.msk [vmem:[#allocation3 + $0x1a0] sm:$0xff] %vm1746_vm2, %v8401_v0  ;;  %v485_v53 = vld [vmem:[#allocation2 + $0xf2] sm:$0xff]  ;;  %v486_v54 = vld [vmem:[#allocation2 + $0xfa] sm:$0xff]  ;;  %v6043_v55 = vpack.i.bf16 %v484_v52, %v483_v51 }
  0x48   : > { %399 = vst.msk [vmem:[#allocation2 + $0x181] sm:$0xff] %vm280_vm0, %v366_v30  ;;  %400 = vst.msk [vmem:[#allocation2 + $0x189] sm:$0xff] %vm280_vm0, %v367_v31  ;;  %v6047_v58 = vpack.i.bf16 %v486_v54, %v485_v53  ;;  %v487_v59 = vld [vmem:[#allocation2 + $0x10a] sm:$0xff]  ;;  %v488_v60 = vld [vmem:[#allocation2 + $0x112] sm:$0xff] }
  0x49   : > { %4390 = vrot.lane.b32.xlu1 %v5994_v11, %s5628_s8  ;;  %v489_v61 = vld [vmem:[#allocation2 + $0x122] sm:$0xff]  ;;  %v490_v1 = vld [vmem:[#allocation2 + $0x12a] sm:$0xff]  ;;  %v6051_v2 = vpack.i.bf16 %v488_v60, %v487_v59  ;;  %v491_v4 = vld [vmem:[#allocation2 + $0x13a] sm:$0xff] }
  0x4a   : > { %4395 = vrot.lane.b32.xlu0 %v5998_v12, %s5628_s8  ;;  %v6055_v3 = vpack.i.bf16 %v490_v1, %v489_v61  ;;  %v492_v7 = vld [vmem:[#allocation2 + $0x142] sm:$0xff]  ;;  %v493_v8 = vld [vmem:[#allocation2 + $0x152] sm:$0xff]  ;;  %v494_v9 = vld [vmem:[#allocation2 + $0x15a] sm:$0xff] }
  0x4b   : > { %v6059_v10 = vpack.i.bf16 %v492_v7, %v491_v4  ;;  %v6063_v13 = vpack.i.bf16 %v494_v9, %v493_v8  ;;  %v495_v14 = vld [vmem:[#allocation2 + $0x16a] sm:$0xff]  ;;  %v496_v15 = vld [vmem:[#allocation2 + $0x172] sm:$0xff]  ;;  %v6096_v30 = vld [vmem:[#allocation2 + $0x60] sm:$0xff] }
  0x4c   : > { %v6065_v16 = vld [vmem:[#allocation2 + $0x18] sm:$0xff]  ;;  %v6071_v19 = vpack.i.bf16 %v496_v15, %v495_v14  ;;  %v6077_v21 = vld [vmem:[#allocation2 + $0x30] sm:$0xff]  ;;  %v6081_v25 = vld [vmem:[#allocation2 + $0x48] sm:$0xff] }
  0x4d   : > { %4400 = vrot.lane.b32.xlu1 %v6002_v17, %s5628_s8  ;;  %v6079_v22 = vld [vmem:[#allocation2 + $0x38] sm:$0xff]  ;;  %v6083_v26 = vld [vmem:[#allocation2 + $0x50] sm:$0xff]  ;;  %v6098_v31 = vld [vmem:[#allocation2 + $0x68] sm:$0xff]  ;;  %s5639_s8 = smov 40  }
  0x4e   : > { %4405 = vrot.lane.b32.xlu0 %v4404_v18, %s5629_s9  ;;  %v6067_v18 = vld [vmem:[#allocation2 + $0x20] sm:$0xff]  ;;  %v6089_v27 = vpack.i.bf16 %v6079_v22, %v6077_v21  ;;  %v6094_v28 = vpack.i.bf16 %v6083_v26, %v6081_v25  ;;  %v6100_v35 = vld [vmem:[#allocation2 + $0x78] sm:$0xff]  ;;  %v6108_v38 = vpack.i.bf16 %v6098_v31, %v6096_v30  ;;  %v6116_v43 = vld [vmem:[#allocation2 + $0x90] sm:$0xff] }
  0x4f   : > { %v4484_v20 = vpack.i.bf16 %v6067_v18, %v6065_v16  ;;  %v6102_v36 = vld [vmem:[#allocation2 + $0x80] sm:$0xff]  ;;  %v6118_v44 = vld [vmem:[#allocation2 + $0x98] sm:$0xff]  ;;  %v6120_v46 = vld [vmem:[#allocation2 + $0xa8] sm:$0xff] }
  0x50   : > { %v6114_v40 = vpack.i.bf16 %v6102_v36, %v6100_v35  ;;  %8477 = vst [vmem:[#allocation4_spill] sm:$0xff] %v6120_v46  ;;  %v6122_v47 = vld [vmem:[#allocation2 + $0xb0] sm:$0xff]  ;;  %v6128_v51 = vpack.i.bf16 %v6118_v44, %v6116_v43  ;;  %v6136_v53 = vld [vmem:[#allocation2 + $0xc0] sm:$0xff]  ;;  %v6138_v54 = vld [vmem:[#allocation2 + $0xc8] sm:$0xff] }
  0x51   : > { %4410 = vrot.lane.b32.xlu1 %v6008_v23, %s5629_s9  ;;  %v6134_v52 = vpack.i.bf16 %v6122_v47, %v6120_v46  ;;  %8478 = vst [vmem:[#allocation5_spill] sm:$0xff] %v6136_v53  ;;  %8479 = vst [vmem:[#allocation6_spill] sm:$0xff] %v6138_v54  ;;  %v6140_v59 = vld [vmem:[#allocation2 + $0xd8] sm:$0xff]  ;;  %v6142_v60 = vld [vmem:[#allocation2 + $0xe0] sm:$0xff]  ;;  %v6148_v61 = vpack.i.bf16 %v6138_v54, %v6136_v53 }
  0x52   : > { %4415 = vrot.lane.b32.xlu0 %v6011_v24, %s5629_s9  ;;  %8480 = vst [vmem:[#allocation7_spill] sm:$0xff] %v6140_v59  ;;  %8481 = vst [vmem:[#allocation8_spill] sm:$0xff] %v6142_v60  ;;  %v6154_v1 = vpack.i.bf16 %v6142_v60, %v6140_v59  ;;  %v6156_v4 = vld [vmem:[#allocation2 + $0xf0] sm:$0xff]  ;;  %v6158_v7 = vld [vmem:[#allocation2 + $0xf8] sm:$0xff] }
  0x53   : > { %8482 = vst [vmem:[#allocation9_spill] sm:$0xff] %v6156_v4  ;;  %8483 = vst [vmem:[#allocation10_spill] sm:$0xff] %v6158_v7  ;;  %v6160_v8 = vld [vmem:[#allocation2 + $0x108] sm:$0xff]  ;;  %v6162_v9 = vld [vmem:[#allocation2 + $0x110] sm:$0xff]  ;;  %v6168_v14 = vpack.i.bf16 %v6158_v7, %v6156_v4 }
  0x54   : > { %8484 = vst [vmem:[#allocation11_spill] sm:$0xff] %v6160_v8  ;;  %8485 = vst [vmem:[#allocation12_spill] sm:$0xff] %v6162_v9  ;;  %v6174_v15 = vpack.i.bf16 %v6162_v9, %v6160_v8  ;;  %v6178_v0 = vld [vmem:[#allocation2 + $0x128] sm:$0xff]  ;;  %v6180_v59 = vld [vmem:[#allocation2 + $0x138] sm:$0xff] }
  0x55   : > { %4420 = vrot.lane.b32.xlu1 %v6019_v32, %s5629_s9  ;;  %8487 = vst [vmem:[#allocation14_spill] sm:$0xff] %v6178_v0  ;;  %8488 = vst [vmem:[#allocation15_spill] sm:$0xff] %v6180_v59  ;;  %v6182_v60 = vld [vmem:[#allocation2 + $0x140] sm:$0xff]  ;;  %v6196_v9 = vld [vmem:[#allocation2 + $0x150] sm:$0xff] }
  0x56   : > { %4425 = vrot.lane.b32.xlu0 %v6023_v34, %s5629_s9  ;;  %8489 = vst [vmem:[#allocation16_spill] sm:$0xff] %v6182_v60  ;;  %v6194_v8 = vpack.i.bf16 %v6182_v60, %v6180_v59  ;;  %v6198_v7 = vld [vmem:[#allocation2 + $0x158] sm:$0xff]  ;;  %v6200_v53 = vld [vmem:[#allocation2 + $0x168] sm:$0xff]  ;;  %v6202_v54 = vld [vmem:[#allocation2 + $0x170] sm:$0xff] }
  0x57   : > { %8490 = vst [vmem:[#allocation17_spill] sm:$0xff] %v6200_v53  ;;  %v4554_v59 = vpack.i.bf16 %v6202_v54, %v6200_v53  ;;  %v527_v60 = vld [vmem:[#allocation2 + $0x180] sm:$0xff] }
  0x59   : > { %4430 = vrot.lane.b32.xlu1 %v6027_v41, %s5629_s9 }
  0x5a   : > { %4435 = vrot.lane.b32.xlu0 %v6031_v42, %s5629_s9 }
  0x5d   : > { %4440 = vrot.lane.b32.xlu1 %v6035_v48, %s5629_s9 }
  0x5e   : > { %4445 = vrot.lane.b32.xlu0 %v6039_v50, %s5629_s9 }
  0x61   : > { %4450 = vrot.lane.b32.xlu1 %v6043_v55, %s5629_s9 }
  0x62   : > { %4455 = vrot.lane.b32.xlu0 %v6047_v58, %s5629_s9 }
  0x65   : > { %4460 = vrot.lane.b32.xlu1 %v6051_v2, %s5629_s9 }
  0x66   : > { %4465 = vrot.lane.b32.xlu0 %v6055_v3, %s5629_s9 }
  0x69   : > { %4470 = vrot.lane.b32.xlu1 %v6059_v10, %s5629_s9 }
  0x6a   : > { %4475 = vrot.lane.b32.xlu0 %v6063_v13, %s5629_s9 }
  0x6d   : > { %4480 = vrot.lane.b32.xlu1 %v6071_v19, %s5629_s9 }
  0x6e   : > { %4485 = vrot.lane.b32.xlu0 %v4484_v20, %s5630_s10  ;;  %v6176_v20 = vld [vmem:[#allocation2 + $0x120] sm:$0xff] }
  0x6f   : > { %8486 = vst [vmem:[#allocation13_spill] sm:$0xff] %v6176_v20  ;;  %v6188_v4 = vpack.i.bf16 %v6178_v0, %v6176_v20  ;;  %v4549_v20 = vpack.i.bf16 %v6198_v7, %v6196_v9  ;;  %v528_v0 = vld [vmem:[#allocation2 + $0x188] sm:$0xff] }
  0x70   : > { %v4559_v46 = vpack.i.bf16 %v528_v0, %v527_v60 }
  0x71   : > { %4490 = vrot.lane.b32.xlu1 %v6089_v27, %s5630_s10 }
  0x72   : > { %4495 = vrot.lane.b32.xlu0 %v6094_v28, %s5630_s10 }
  0x75   : > { %4500 = vrot.lane.b32.xlu1 %v6108_v38, %s5630_s10 }
  0x76   : > { %4505 = vrot.lane.b32.xlu0 %v6114_v40, %s5630_s10 }
  0x79   : > { %4510 = vrot.lane.b32.xlu1 %v6128_v51, %s5630_s10 }
  0x7a   : > { %4515 = vrot.lane.b32.xlu0 %v6134_v52, %s5630_s10 }
  0x7d   : > { %4520 = vrot.lane.b32.xlu1 %v6148_v61, %s5630_s10 }
  0x7e   : > { %4525 = vrot.lane.b32.xlu0 %v6154_v1, %s5630_s10 }
  0x81   : > { %4530 = vrot.lane.b32.xlu1 %v6168_v14, %s5630_s10 }
  0x82   : > { %4535 = vrot.lane.b32.xlu0 %v6174_v15, %s5630_s10 }
  0x85   : > { %4540 = vrot.lane.b32.xlu1 %v6188_v4, %s5630_s10 }
  0x86   : > { %4545 = vrot.lane.b32.xlu0 %v6194_v8, %s5630_s10 }
  0x89   : > { %4550 = vrot.lane.b32.xlu1 %v4549_v20, %s5630_s10  ;;  %v6233_v0 = vpop.permute.xlu0 %4325  ;;  %v5607_v20 = vld [vmem:[%s8394_s1 + $0x8] sm:$0xff]  }
  0x8a   : > { %4555 = vrot.lane.b32.xlu0 %v4554_v59, %s5630_s10 }
  0x8d   : > { %4560 = vrot.lane.b32.xlu1 %v4559_v46, %s5630_s10 }
  0x8e   : > { %4565 = vrot.lane.b32.xlu0 %v5862_v33, %s5631_s11 }
  0x91   : > { %4570 = vrot.lane.b32.xlu1 %v5860_v29, %s5631_s11 }
  0x92   : > { %4575 = vrot.lane.b32.xlu0 %v5868_v37, %s5631_s11  ;;  %v559_v37 = vld [vmem:[#allocation2 + $0x181] sm:$0xff] }
  0x95   : > { %4580 = vrot.lane.b32.xlu1 %v5874_v39, %s5631_s11  ;;  %v560_v39 = vld [vmem:[#allocation2 + $0x189] sm:$0xff] }
  0x96   : > { %4585 = vrot.lane.b32.xlu0 %v5878_v45, %s5631_s11 }
  0x99   : > { %4590 = vrot.lane.b32.xlu1 %v5882_v49, %s5631_s11 }
  0x9a   : > { %4595 = vrot.lane.b32.xlu0 %v5898_v56, %s5631_s11  ;;  %v4639_v56 = vpack.i.bf16 %v560_v39, %v559_v37  ;;  %v627_v37 = vld [vmem:[#allocation2 + $0x39] sm:$0xff] }
  0x9d   : > { %4600 = vrot.lane.b32.xlu1 %v5902_v57, %s5631_s11 }
  0x9e   : > { %4605 = vrot.lane.b32.xlu0 %v5906_v62, %s5631_s11 }
  0xa1   : > { %4610 = vrot.lane.b32.xlu1 %v5910_v63, %s5631_s11 }
  0xa2   : > { %4615 = vrot.lane.b32.xlu0 %v5914_v5, %s5631_s11 }
  0xa3   : > { %v6239_v29 = vpop.permute.xlu1 %4335 }
  0xa4   : > { %v6241_v33 = vpop.permute.xlu0 %4330 }
  0xa5   : > { %4620 = vrot.lane.b32.xlu1 %v5918_v6, %s5631_s11 }
  0xa6   : > { %4625 = vrot.lane.b32.xlu0 %v5994_v11, %s5631_s11 }
  0xa7   : > { %v6247_v45 = vpop.permute.xlu1 %4340 }
  0xa8   : > { %v6249_v49 = vpop.permute.xlu0 %4345 }
  0xa9   : > { %4630 = vrot.lane.b32.xlu1 %v5998_v12, %s5631_s11 }
  0xaa   : > { %4635 = vrot.lane.b32.xlu0 %v6002_v17, %s5631_s11 }
  0xab   : > { %v6255_v57 = vpop.permute.xlu1 %4350 }
  0xac   : > { %v6257_v62 = vpop.permute.xlu0 %4355 }
  0xad   : > { %4640 = vrot.lane.b32.xlu1 %v4639_v56, %s5631_s11  ;;  %v5608_v56 = vld [vmem:[%s8394_s1] sm:$0xff]  }
  0xae   : > { %4645 = vrot.lane.b32.xlu0 %v6008_v23, %s5632_s12 }
  0xaf   : > { %v6262_v63 = vpop.permute.xlu1 %4360 }
  0xb0   : > { %v6264_v5 = vpop.permute.xlu0 %4365 }
  0xb1   : > { %4650 = vrot.lane.b32.xlu1 %v6011_v24, %s5632_s12 }
  0xb2   : > { %4655 = vrot.lane.b32.xlu0 %v6019_v32, %s5632_s12 }
  0xb3   : > { %v6270_v6 = vpop.permute.xlu1 %4370 }
  0xb4   : > { %v6272_v11 = vpop.permute.xlu0 %4375 }
  0xb5   : > { %4660 = vrot.lane.b32.xlu1 %v6023_v34, %s5632_s12 }
  0xb6   : > { %4665 = vrot.lane.b32.xlu0 %v6027_v41, %s5632_s12 }
  0xb7   : > { %v6278_v12 = vpop.permute.xlu1 %4380 }
  0xb8   : > { %v6280_v17 = vpop.permute.xlu0 %4385 }
  0xb9   : > { %4670 = vrot.lane.b32.xlu1 %v6031_v42, %s5632_s12 }
  0xba   : > { %4675 = vrot.lane.b32.xlu0 %v6035_v48, %s5632_s12  ;;  %v591_v48 = vld [vmem:[#allocation2 + $0x182] sm:$0xff] }
  0xbb   : > { %v6286_v23 = vpop.permute.xlu1 %4390 }
  0xbc   : > { %v6288_v24 = vpop.permute.xlu0 %4395 }
  0xbd   : > { %4680 = vrot.lane.b32.xlu1 %v6039_v50, %s5632_s12  ;;  %v592_v50 = vld [vmem:[#allocation2 + $0x18a] sm:$0xff] }
  0xbe   : > { %4685 = vrot.lane.b32.xlu0 %v6043_v55, %s5632_s12 }
  0xbf   : > { %v6294_v32 = vpop.permute.xlu1 %4400 }
  0xc0   : > { %v6296_v34 = vpop.permute.xlu0 %4405 }
  0xc1   : > { %4690 = vrot.lane.b32.xlu1 %v6047_v58, %s5632_s12  ;;  %v6316_v58 = vpack.i.bf16 %v592_v50, %v591_v48  ;;  %v629_v48 = vld [vmem:[#allocation2 + $0x51] sm:$0xff] }
  0xc2   : > { %4695 = vrot.lane.b32.xlu0 %v6051_v2, %s5632_s12 }
  0xc3   : > { %v6302_v41 = vpop.permute.xlu1 %4410  ;;  %8491 = vst [vmem:[#allocation18_spill] sm:$0xff] %v6316_v58 }
  0xc4   : > { %v6304_v42 = vpop.permute.xlu0 %4415 }
  0xc5   : > { %4700 = vrot.lane.b32.xlu1 %v6055_v3, %s5632_s12 }
  0xc6   : > { %4705 = vrot.lane.b32.xlu0 %v6059_v10, %s5632_s12 }
  0xc7   : > { %v6310_v55 = vpop.permute.xlu1 %4420 }
  0xc8   : > { %v6312_v46 = vpop.permute.xlu0 %4425 }
  0xc9   : > { %4710 = vrot.lane.b32.xlu1 %v6063_v13, %s5632_s12 }
  0xca   : > { %4715 = vrot.lane.b32.xlu0 %v6071_v19, %s5632_s12 }
  0xcb   : > { %v6320_v2 = vpop.permute.xlu1 %4430 }
  0xcc   : > { %8492 = vst [vmem:[#allocation19_spill] sm:$0xff] %v6320_v2  ;;  %v6322_v3 = vpop.permute.xlu0 %4435  ;;  %v6482_v2 = vld [vmem:[#allocation2 + $0x189] sm:$0xff] }
  0xcd   : > { %8493 = vst [vmem:[#allocation20_spill] sm:$0xff] %v6322_v3  ;;  %4720 = vrot.lane.b32.xlu1 %v6316_v58, %s5632_s12 }
  0xce   : > { %4725 = vrot.lane.b32.xlu0 %v6089_v27, %s5633_s13 }
  0xcf   : > { %v6328_v10 = vpop.permute.xlu1 %4440 }
  0xd0   : > { %8494 = vst [vmem:[#allocation21_spill] sm:$0xff] %v6328_v10  ;;  %v6330_v59 = vpop.permute.xlu0 %4445 }
  0xd1   : > { %8495 = vst [vmem:[#allocation22_spill] sm:$0xff] %v6330_v59  ;;  %4730 = vrot.lane.b32.xlu1 %v6094_v28, %s5633_s13  ;;  %v5606_v28 = vld [vmem:[%s8394_s1 + $0x10] ss:$0 sps:$4 sm:$0x33]   ;;  %v4342_v59 = vunpack.i.l.bf16 %v6247_v45 }
  0xd2   : > { %4735 = vrot.lane.b32.xlu0 %v6108_v38, %s5633_s13  ;;  %4293 = vmatprep.subr.msk.bf16.mxu0 %vm2062_vm3, %v5606_v28  ;;  %v2064_v38 = vsel %vm2062_vm3, %v5606_v28, 0  ;;  %v658_v28 = vld [vmem:[#allocation2 + $0x32] sm:$0xff] }
  0xd3   : > { %v6336_v13 = vpop.permute.xlu1 %4450  ;;  %4256 = vmatpush3.bf16.msra.mxu0 %v2064_v38  ;;  %v659_v38 = vld [vmem:[#allocation2 + $0x3a] sm:$0xff] }
  0xd4   : > { %8496 = vst [vmem:[#allocation23_spill] sm:$0xff] %v6336_v13  ;;  %v6338_v19 = vpop.permute.xlu0 %4455  ;;  %4257 = vmatprep.subr.bf16.mxu0 %v5607_v20  ;;  %v4337_v13 = vunpack.i.l.bf16 %v6239_v29 }
  0xd5   : > { %8497 = vst [vmem:[#allocation24_spill] sm:$0xff] %v6338_v19  ;;  %4740 = vrot.lane.b32.xlu1 %v6114_v40, %s5633_s13  ;;  %v6462_v19 = vld [vmem:[#allocation2 + $0x180] sm:$0xff] }
  0xd6   : > { %4745 = vrot.lane.b32.xlu0 %v6128_v51, %s5633_s13 }
  0xd7   : > { %v6344_v27 = vpop.permute.xlu1 %4460  ;;  %4258 = vmatpush3.bf16.msra.mxu0 %v5607_v20 }
  0xd8   : > { %8498 = vst [vmem:[#allocation25_spill] sm:$0xff] %v6344_v27  ;;  %v6346_v60 = vpop.permute.xlu0 %4465  ;;  %4259 = vmatprep.subr.bf16.mxu0 %v5608_v56  ;;  %v4328_v27 = vunpack.i.h.bf16 %v6233_v0 }
  0xd9   : > { %8499 = vst [vmem:[#allocation26_spill] sm:$0xff] %v6346_v60  ;;  %4750 = vrot.lane.b32.xlu1 %v6134_v52, %s5633_s13 }
  0xda   : > { %4755 = vrot.lane.b32.xlu0 %v6148_v61, %s5633_s13  ;;  %v626_v61 = vld [vmem:[#allocation2 + $0x31] sm:$0xff] }
  0xdb   : > { %v6355_v40 = vpop.permute.xlu1 %4470  ;;  %4260 = vmatpush3.bf16.msra.mxu0 %v5608_v56 }
  0xdc   : > { %8500 = vst [vmem:[#allocation27_spill] sm:$0xff] %v6355_v40  ;;  %v6357_v51 = vpop.permute.xlu0 %4475 }
  0xdd   : > { %8501 = vst [vmem:[#allocation28_spill] sm:$0xff] %v6357_v51  ;;  %4760 = vrot.lane.b32.xlu1 %v6154_v1, %s5633_s13  ;;  %v4784_v1 = vpack.i.bf16 %v627_v37, %v626_v61  ;;  %v661_v61 = vld [vmem:[#allocation2 + $0x52] sm:$0xff]  ;;  %v636_v51 = vld [vmem:[#allocation2 + $0xa9] sm:$0xff] }
  0xde   : > { %4765 = vrot.lane.b32.xlu0 %v6168_v14, %s5633_s13  ;;  %v628_v14 = vld [vmem:[#allocation2 + $0x49] sm:$0xff] }
  0xdf   : > { %v6366_v52 = vpop.permute.xlu1 %4480  ;;  %v4789_v40 = vpack.i.bf16 %v629_v48, %v628_v14  ;;  %v632_v14 = vld [vmem:[#allocation2 + $0x79] sm:$0xff]  ;;  %v633_v48 = vld [vmem:[#allocation2 + $0x81] sm:$0xff] }
  0xe0   : > { %8502 = vst [vmem:[#allocation29_spill] sm:$0xff] %v6366_v52  ;;  %v6368_v39 = vpop.permute.xlu0 %4485  ;;  %v631_v52 = vld [vmem:[#allocation2 + $0x69] sm:$0xff] }
  0xe1   : > { %8503 = vst [vmem:[#allocation30_spill] sm:$0xff] %v6368_v39  ;;  %4770 = vrot.lane.b32.xlu1 %v6174_v15, %s5633_s13  ;;  %v4794_v15 = vpack.i.bf16 %v659_v38, %v658_v28  ;;  %v630_v39 = vld [vmem:[#allocation2 + $0x61] sm:$0xff]  ;;  %v663_v28 = vld [vmem:[#allocation2 + $0x6a] sm:$0xff] }
  0xe2   : > { %4775 = vrot.lane.b32.xlu0 %v6188_v4, %s5633_s13  ;;  %v660_v4 = vld [vmem:[#allocation2 + $0x4a] sm:$0xff] }
  0xe3   : > { %v6377_v50 = vpop.permute.xlu1 %4490  ;;  %v4799_v56 = vpack.i.bf16 %v661_v61, %v660_v4  ;;  %v665_v4 = vld [vmem:[#allocation2 + $0x82] sm:$0xff] }
  0xe4   : > { %8504 = vst [vmem:[#allocation31_spill] sm:$0xff] %v6377_v50  ;;  %v6379_v20 = vpop.permute.xlu0 %4495 }
  0xe5   : > { %8505 = vst [vmem:[#allocation32_spill] sm:$0xff] %v6379_v20  ;;  %4780 = vrot.lane.b32.xlu1 %v6194_v8, %s5633_s13  ;;  %v4804_v8 = vpack.i.bf16 %v631_v52, %v630_v39  ;;  %v635_v52 = vld [vmem:[#allocation2 + $0x99] sm:$0xff] }
  0xe6   : > { %4785 = vrot.lane.b32.xlu0 %v4784_v1, %s5634_s20  ;;  %v662_v1 = vld [vmem:[#allocation2 + $0x62] sm:$0xff] }
  0xe7   : > { %v6384_v37 = vpop.permute.xlu1 %4500 }
  0xe8   : > { %8506 = vst [vmem:[#allocation33_spill] sm:$0xff] %v6384_v37  ;;  %v6386_v50 = vpop.permute.xlu0 %4505  ;;  %v4809_v37 = vpack.i.bf16 %v633_v48, %v632_v14  ;;  %v667_v48 = vld [vmem:[#allocation2 + $0x9a] sm:$0xff] }
  0xe9   : > { %8507 = vst [vmem:[#allocation34_spill] sm:$0xff] %v6386_v50  ;;  %4790 = vrot.lane.b32.xlu1 %v4789_v40, %s5634_s20  ;;  %v4814_v50 = vpack.i.bf16 %v663_v28, %v662_v1  ;;  %v664_v40 = vld [vmem:[#allocation2 + $0x7a] sm:$0xff] }
  0xea   : > { %4795 = vrot.lane.b32.xlu0 %v4794_v15, %s5635_s21  ;;  %v634_v15 = vld [vmem:[#allocation2 + $0x91] sm:$0xff] }
  0xeb   : > { %v6390_v20 = vpop.permute.xlu1 %4510 }
  0xec   : > { %8508 = vst [vmem:[#allocation35_spill] sm:$0xff] %v6390_v20  ;;  %v6392_v38 = vpop.permute.xlu0 %4515  ;;  %v4819_v20 = vpack.i.bf16 %v665_v4, %v664_v40  ;;  %v639_v4 = vld [vmem:[#allocation2 + $0xc9] sm:$0xff] }
  0xed   : > { %8509 = vst [vmem:[#allocation36_spill] sm:$0xff] %v6392_v38  ;;  %4800 = vrot.lane.b32.xlu1 %v4799_v56, %s5635_s21  ;;  %v4824_v38 = vpack.i.bf16 %v635_v52, %v634_v15  ;;  %v637_v56 = vld [vmem:[#allocation2 + $0xb1] sm:$0xff] }
  0xee   : > { %4805 = vrot.lane.b32.xlu0 %v4804_v8, %s5634_s20  ;;  %v666_v8 = vld [vmem:[#allocation2 + $0x92] sm:$0xff]  ;;  %v4829_v28 = vpack.i.bf16 %v637_v56, %v636_v51  ;;  %v671_v56 = vld [vmem:[#allocation2 + $0xca] sm:$0xff] }
  0xef   : > { %v6396_v61 = vpop.permute.xlu1 %4520 }
  0xf0   : > { %8510 = vst [vmem:[#allocation37_spill] sm:$0xff] %v6396_v61  ;;  %v6398_v39 = vpop.permute.xlu0 %4525  ;;  %v668_v61 = vld [vmem:[#allocation2 + $0xaa] sm:$0xff] }
  0xf1   : > { %8511 = vst [vmem:[#allocation38_spill] sm:$0xff] %v6398_v39  ;;  %4810 = vrot.lane.b32.xlu1 %v4809_v37, %s5634_s20  ;;  %v4834_v39 = vpack.i.bf16 %v667_v48, %v666_v8  ;;  %v669_v37 = vld [vmem:[#allocation2 + $0xb2] sm:$0xff] }
  0xf2   : > { %4815 = vrot.lane.b32.xlu0 %v4814_v50, %s5635_s21  ;;  %v638_v50 = vld [vmem:[#allocation2 + $0xc1] sm:$0xff]  ;;  %v4839_v52 = vpack.i.bf16 %v669_v37, %v668_v61  ;;  %v643_v37 = vld [vmem:[#allocation2 + $0xf9] sm:$0xff] }
  0xf3   : > { %v6402_v14 = vpop.permute.xlu1 %4530 }
  0xf4   : > { %8512 = vst [vmem:[#allocation39_spill] sm:$0xff] %v6402_v14  ;;  %v6404_v1 = vpop.permute.xlu0 %4535  ;;  %v640_v14 = vld [vmem:[#allocation2 + $0xd9] sm:$0xff] }
  0xf5   : > { %8513 = vst [vmem:[#allocation40_spill] sm:$0xff] %v6404_v1  ;;  %4820 = vrot.lane.b32.xlu1 %v4819_v20, %s5635_s21  ;;  %v4844_v1 = vpack.i.bf16 %v639_v4, %v638_v50  ;;  %v641_v20 = vld [vmem:[#allocation2 + $0xe1] sm:$0xff] }
  0xf6   : > { %4825 = vrot.lane.b32.xlu0 %v4824_v38, %s5634_s20  ;;  %v670_v38 = vld [vmem:[#allocation2 + $0xc2] sm:$0xff]  ;;  %v4849_v48 = vpack.i.bf16 %v641_v20, %v640_v14  ;;  %v675_v20 = vld [vmem:[#allocation2 + $0xfa] sm:$0xff] }
  0xf7   : > { %v6408_v40 = vpop.permute.xlu1 %4540 }
  0xf8   : > { %8514 = vst [vmem:[#allocation41_spill] sm:$0xff] %v6408_v40  ;;  %v6410_v15 = vpop.permute.xlu0 %4545  ;;  %v672_v40 = vld [vmem:[#allocation2 + $0xda] sm:$0xff] }
  0xf9   : > { %8515 = vst [vmem:[#allocation42_spill] sm:$0xff] %v6410_v15  ;;  %4830 = vrot.lane.b32.xlu1 %v4829_v28, %s5634_s20  ;;  %v4854_v15 = vpack.i.bf16 %v671_v56, %v670_v38  ;;  %v673_v28 = vld [vmem:[#allocation2 + $0xe2] sm:$0xff] }
  0xfa   : > { %4835 = vrot.lane.b32.xlu0 %v4834_v39, %s5635_s21  ;;  %v642_v39 = vld [vmem:[#allocation2 + $0xf1] sm:$0xff]  ;;  %v4859_v4 = vpack.i.bf16 %v673_v28, %v672_v40  ;;  %v647_v28 = vld [vmem:[#allocation2 + $0x129] sm:$0xff] }
  0xfb   : > { %v6414_v51 = vpop.permute.xlu1 %4550 }
  0xfc   : > { %8516 = vst [vmem:[#allocation43_spill] sm:$0xff] %v6414_v51  ;;  %v6416_v8 = vpop.permute.xlu0 %4555  ;;  %v4864_v51 = vpack.i.bf16 %v643_v37, %v642_v39 }
  0xfd   : > { %8517 = vst [vmem:[#allocation44_spill] sm:$0xff] %v6416_v8  ;;  %4840 = vrot.lane.b32.xlu1 %v4839_v52, %s5635_s21  ;;  %v644_v8 = vld [vmem:[#allocation2 + $0x109] sm:$0xff]  ;;  %v645_v52 = vld [vmem:[#allocation2 + $0x111] sm:$0xff] }
  0xfe   : > { %4845 = vrot.lane.b32.xlu0 %v4844_v1, %s5634_s20  ;;  %v674_v1 = vld [vmem:[#allocation2 + $0xf2] sm:$0xff]  ;;  %v4869_v56 = vpack.i.bf16 %v645_v52, %v644_v8  ;;  %v679_v52 = vld [vmem:[#allocation2 + $0x12a] sm:$0xff] }
  0xff   : > { %v6420_v61 = vpop.permute.xlu1 %4560 }
 0x100   : > { %8518 = vst [vmem:[#allocation45_spill] sm:$0xff] %v6420_v61  ;;  %v6422_v50 = vpop.permute.xlu0 %4565  ;;  %v676_v61 = vld [vmem:[#allocation2 + $0x10a] sm:$0xff] }
 0x101   : > { %8519 = vst [vmem:[#allocation46_spill] sm:$0xff] %v6422_v50  ;;  %4850 = vrot.lane.b32.xlu1 %v4849_v48, %s5634_s20  ;;  %v4874_v50 = vpack.i.bf16 %v675_v20, %v674_v1  ;;  %v677_v48 = vld [vmem:[#allocation2 + $0x112] sm:$0xff] }
 0x102   : > { %4855 = vrot.lane.b32.xlu0 %v4854_v15, %s5635_s21  ;;  %v646_v15 = vld [vmem:[#allocation2 + $0x121] sm:$0xff]  ;;  %v4879_v37 = vpack.i.bf16 %v677_v48, %v676_v61  ;;  %v619_v48 = vld [vmem:[#allocation2 + $0x158] sm:$0xff] }
 0x103   : > { %v6426_v14 = vpop.permute.xlu1 %4570 }
 0x104   : > { %8520 = vst [vmem:[#allocation47_spill] sm:$0xff] %v6426_v14  ;;  %v6428_v38 = vpop.permute.xlu0 %4575  ;;  %v648_v14 = vld [vmem:[#allocation2 + $0x139] sm:$0xff] }
 0x105   : > { %8521 = vst [vmem:[#allocation48_spill] sm:$0xff] %v6428_v38  ;;  %4860 = vrot.lane.b32.xlu1 %v4859_v4, %s5635_s21  ;;  %v4884_v38 = vpack.i.bf16 %v647_v28, %v646_v15  ;;  %v649_v4 = vld [vmem:[#allocation2 + $0x141] sm:$0xff] }
 0x106   : > { %4865 = vrot.lane.b32.xlu0 %v4864_v51, %s5634_s20  ;;  %v678_v51 = vld [vmem:[#allocation2 + $0x122] sm:$0xff]  ;;  %v4889_v20 = vpack.i.bf16 %v649_v4, %v648_v14  ;;  %v651_v4 = vld [vmem:[#allocation2 + $0x159] sm:$0xff] }
 0x107   : > { %v6432_v40 = vpop.permute.xlu1 %4580 }
 0x108   : > { %8522 = vst [vmem:[#allocation49_spill] sm:$0xff] %v6432_v40  ;;  %v6434_v39 = vpop.permute.xlu0 %4585  ;;  %v680_v40 = vld [vmem:[#allocation2 + $0x13a] sm:$0xff] }
 0x109   : > { %8523 = vst [vmem:[#allocation50_spill] sm:$0xff] %v6434_v39  ;;  %4870 = vrot.lane.b32.xlu1 %v4869_v56, %s5634_s20  ;;  %v4894_v39 = vpack.i.bf16 %v679_v52, %v678_v51  ;;  %v681_v56 = vld [vmem:[#allocation2 + $0x142] sm:$0xff] }
 0x10a   : > { %4875 = vrot.lane.b32.xlu0 %v4874_v50, %s5635_s21  ;;  %v618_v50 = vld [vmem:[#allocation2 + $0x150] sm:$0xff]  ;;  %v4899_v28 = vpack.i.bf16 %v681_v56, %v680_v40  ;;  %v402_v51 = vld [vmem:[#allocation2 + $0x8] sm:$0xff]  ;;  %v401_v52 = vld [vmem:[#allocation2] sm:$0xff] }
 0x10b   : > { %v6438_v8 = vpop.permute.xlu1 %4590  ;;  %v683_v56 = vld [vmem:[#allocation2 + $0x15a] sm:$0xff] }
 0x10c   : > { %8524 = vst [vmem:[#allocation51_spill] sm:$0xff] %v6438_v8  ;;  %v6440_v1 = vpop.permute.xlu0 %4595  ;;  %v620_v8 = vld [vmem:[#allocation2 + $0x168] sm:$0xff] }
 0x10d   : > { %8525 = vst [vmem:[#allocation52_spill] sm:$0xff] %v6440_v1  ;;  %4880 = vrot.lane.b32.xlu1 %v4879_v37, %s5635_s21  ;;  %v4904_v1 = vpack.i.bf16 %v619_v48, %v618_v50  ;;  %v621_v37 = vld [vmem:[#allocation2 + $0x170] sm:$0xff] }
 0x10e   : > { %4885 = vrot.lane.b32.xlu0 %v4884_v38, %s5634_s20  ;;  %v650_v38 = vld [vmem:[#allocation2 + $0x151] sm:$0xff]  ;;  %v4909_v40 = vpack.i.bf16 %v621_v37, %v620_v8  ;;  %v6469_v8 = vld [vmem:[#allocation2 + $0x188] sm:$0xff] }
 0x10f   : > { %v6444_v61 = vpop.permute.xlu1 %4600  ;;  %v4914_v50 = vpack.i.bf16 %v651_v4, %v650_v38  ;;  %v6458_v48 = vld [vmem:[#allocation2 + $0x16a] sm:$0xff]  ;;  %v6471_v37 = vld [vmem:[#allocation2 + $0x198] sm:$0xff]  ;;  %v4333_v38 = vunpack.i.h.bf16 %v6241_v33  ;;  %v4343_v4 = vunpack.i.h.bf16 %v6247_v45 }
 0x110   : > { %8526 = vst [vmem:[#allocation53_spill] sm:$0xff] %v6444_v61  ;;  %v6446_v15 = vpop.permute.xlu0 %4605  ;;  %v652_v61 = vld [vmem:[#allocation2 + $0x169] sm:$0xff]  ;;  %v6493_v45 = vld [vmem:[#allocation2 + $0x199] sm:$0xff] }
 0x111   : > { %8527 = vst [vmem:[#allocation54_spill] sm:$0xff] %v6446_v15  ;;  %4890 = vrot.lane.b32.xlu1 %v4889_v20, %s5634_s20  ;;  %v4327_v15 = vunpack.i.l.bf16 %v6233_v0  ;;  %v682_v20 = vld [vmem:[#allocation2 + $0x152] sm:$0xff]  ;;  %v4332_v0 = vunpack.i.l.bf16 %v6241_v33 }
 0x112   : > { %4895 = vrot.lane.b32.xlu0 %v4894_v39, %s5635_s21  ;;  %v653_v39 = vld [vmem:[#allocation2 + $0x171] sm:$0xff]  ;;  %v4924_v33 = vpack.i.bf16 %v683_v56, %v682_v20  ;;  %v6522_v20 = vld [vmem:[#allocation2 + $0x1a2] sm:$0xff]  ;;  %v4352_v56 = vunpack.i.l.bf16 %v6255_v57 }
 0x113   : > { %v6450_v14 = vpop.permute.xlu1 %4610  ;;  %v4919_v3 = vpack.i.bf16 %v653_v39, %v652_v61  ;;  %v6488_v53 = vsel %vm280_vm0, %v401_v52, %v4327_v15  ;;  %v4348_v61 = vunpack.i.h.bf16 %v6249_v49  ;;  %v4347_v39 = vunpack.i.l.bf16 %v6249_v49 }
 0x114   : > { %8528 = vst [vmem:[#allocation55_spill] sm:$0xff] %v6450_v14  ;;  %v6452_v60 = vpop.permute.xlu0 %4615  ;;  %v6460_v14 = vld [vmem:[#allocation2 + $0x172] sm:$0xff]  ;;  %v6514_v52 = vsel %vm280_vm0, %v6065_v16, %v4332_v0  ;;  %v6534_v16 = vsel %vm280_vm0, %v6081_v25, %v4342_v59  ;;  %v4363_v59 = vunpack.i.h.bf16 %v6262_v63 }
 0x115   : > { %8529 = vst [vmem:[#allocation56_spill] sm:$0xff] %v6452_v60  ;;  %4900 = vrot.lane.b32.xlu1 %v4899_v28, %s5635_s21  ;;  %v4338_v60 = vunpack.i.h.bf16 %v6239_v29  ;;  %v6480_v29 = vld [vmem:[#allocation2 + $0x181] sm:$0xff]  ;;  %v4929_v58 = vpack.i.bf16 %v6460_v14, %v6458_v48  ;;  %v6551_v25 = vsel %vm280_vm0, %v6096_v30, %v4347_v39  ;;  %v4362_v48 = vunpack.i.l.bf16 %v6262_v63 }
 0x116   : > { %4905 = vrot.lane.b32.xlu0 %v4904_v1, %s5633_s13  ;;  %v6473_v1 = vld [vmem:[#allocation2 + $0x1a0] sm:$0xff]  ;;  %v4372_v30 = vunpack.i.l.bf16 %v6270_v6 }
 0x117   : > { %v6467_v28 = vpop.permute.xlu1 %4620  ;;  %v4939_v15 = vpack.i.bf16 %v6473_v1, %v6471_v37  ;;  %v6510_v14 = vsel %vm280_vm0, %v6079_v22, %v4338_v60  ;;  %v6530_v22 = vsel %vm280_vm0, %v6083_v26, %v4343_v4  ;;  %v4353_v60 = vunpack.i.h.bf16 %v6255_v57  ;;  %v8536_v39 = vld [vmem:[#allocation8_spill] sm:$0xff] }
 0x118   : > { %8530 = vst [vmem:[#allocation57_spill] sm:$0xff] %v6467_v28  ;;  %v6478_v10 = vpop.permute.xlu0 %4625  ;;  %v6485_v28 = vsel %vm280_vm0, %v402_v51, %v4328_v27  ;;  %v4934_v27 = vpack.i.bf16 %v6469_v8, %v6462_v19  ;;  %v6506_v51 = vsel %vm280_vm0, %v6077_v21, %v4337_v13  ;;  %v4944_v19 = vpack.i.bf16 %v6482_v2, %v6480_v29 }
 0x119   : > { %8531 = vst [vmem:[#allocation58_spill] sm:$0xff] %v6478_v10  ;;  %4910 = vrot.lane.b32.xlu1 %v4909_v40, %s5633_s13  ;;  %v6495_v10 = vld [vmem:[#allocation2 + $0x1a1] sm:$0xff]  ;;  %v6526_v21 = vsel %vm280_vm0, %v6067_v18, %v4333_v38  ;;  %v4358_v18 = vunpack.i.h.bf16 %v6257_v62  ;;  %v6547_v26 = vsel %vm280_vm0, %v6098_v31, %v4348_v61  ;;  %v4373_v31 = vunpack.i.h.bf16 %v6270_v6 }
 0x11a   : > { %4915 = vrot.lane.b32.xlu0 %v4914_v50, %s5634_s20  ;;  %v6520_v40 = vld [vmem:[#allocation2 + $0x19a] sm:$0xff]  ;;  %v4949_v2 = vpack.i.bf16 %v6495_v10, %v6493_v45  ;;  %v4357_v50 = vunpack.i.l.bf16 %v6257_v62  ;;  %v4368_v62 = vunpack.i.h.bf16 %v6264_v5  ;;  %v4378_v8 = vunpack.i.h.bf16 %v6272_v11 }
 0x11b   : > { %v6516_v49 = vpop.permute.xlu1 %4630  ;;  %v4377_v37 = vunpack.i.l.bf16 %v6272_v11  ;;  %v4383_v1 = vunpack.i.h.bf16 %v6278_v12  ;;  %v6571_v63 = vsel %vm280_vm0, %v6102_v36, %v4353_v60  ;;  %v6579_v4 = vsel %vm280_vm0, %v6118_v44, %v4358_v18  ;;  %v8533_v44 = vld [vmem:[#allocation4_spill] sm:$0xff] }
 0x11c   : > { %8532 = vst [vmem:[#allocation59_spill] sm:$0xff] %v6516_v49  ;;  %v6536_v13 = vpop.permute.xlu0 %4635  ;;  %v6583_v6 = vsel %vm280_vm0, %v6116_v43, %v4357_v50  ;;  %v6588_v11 = vsel %vm280_vm0, %v6122_v47, %v4363_v59  ;;  %v4382_v36 = vunpack.i.l.bf16 %v6278_v12  ;;  %v4388_v29 = vunpack.i.h.bf16 %v6280_v17  ;;  %v8534_v43 = vld [vmem:[#allocation6_spill] sm:$0xff]  ;;  %v8539_v50 = vld [vmem:[#allocation9_spill] sm:$0xff] }
 0x11d   : > { %4920 = vrot.lane.b32.xlu1 %v4919_v3, %s5634_s20  ;;  %v4367_v3 = vunpack.i.l.bf16 %v6264_v5  ;;  %v6575_v5 = vsel %vm280_vm0, %v6100_v35, %v4352_v56  ;;  %v4387_v35 = vunpack.i.l.bf16 %v6280_v17  ;;  %v6600_v61 = vsel %vm280_vm0, %v8534_v43, %v4368_v62  ;;  %v8537_v17 = vld [vmem:[#allocation7_spill] sm:$0xff]  ;;  %v8538_v56 = vld [vmem:[#allocation10_spill] sm:$0xff] }
 0x11e   : > { %4925 = vrot.lane.b32.xlu0 %v4924_v33, %s5635_s21  ;;  %v6596_v33 = vsel %vm280_vm0, %v8533_v44, %v4362_v48  ;;  %v6608_v12 = vsel %vm280_vm0, %v8536_v39, %v4373_v31  ;;  %v6618_v18 = vsel %vm280_vm0, %v8538_v56, %v4378_v8  ;;  %v6622_v59 = vsel %vm280_vm0, %v8539_v50, %v4377_v37  ;;  %v8540_v48 = vld [vmem:[#allocation12_spill] sm:$0xff]  ;;  %v8541_v8 = vld [vmem:[#allocation11_spill] sm:$0xff]  ;;  %v8543_v39 = vld [vmem:[#allocation13_spill] sm:$0xff] }
 0x11f   : > { %v6561_v0 = vpop.permute.xlu1 %4640  ;;  %v6626_v62 = vsel %vm280_vm0, %v8540_v48, %v4383_v1  ;;  %v4393_v31 = vunpack.i.h.bf16 %v6286_v23  ;;  %v4392_v44 = vunpack.i.l.bf16 %v6286_v23  ;;  %v4397_v43 = vunpack.i.l.bf16 %v6288_v24 }
 0x120   : > { %v6567_v38 = vpop.permute.xlu0 %4645  ;;  %v6637_v37 = vsel %vm280_vm0, %v8541_v8, %v4382_v36  ;;  %v4403_v23 = vunpack.i.h.bf16 %v6294_v32  ;;  %v4407_v56 = vunpack.i.l.bf16 %v6296_v34  ;;  %v4412_v36 = vunpack.i.l.bf16 %v6302_v41 }
 0x121   : > { %4930 = vrot.lane.b32.xlu1 %v4929_v58, %s5635_s21  ;;  %v8535_v58 = vld [vmem:[#allocation5_spill] sm:$0xff]  ;;  %v4418_v48 = vunpack.i.h.bf16 %v6304_v42  ;;  %v4423_v8 = vunpack.i.h.bf16 %v6310_v55 }
 0x122   : > { %4935 = vrot.lane.b32.xlu0 %v4934_v27, %s5633_s13  ;;  %v6604_v47 = vsel %vm280_vm0, %v8535_v58, %v4367_v3  ;;  %v6614_v27 = vsel %vm280_vm0, %v8537_v17, %v4372_v30  ;;  %v4398_v30 = vunpack.i.h.bf16 %v6288_v24  ;;  %v8542_v58 = vld [vmem:[#allocation14_spill] sm:$0xff]  ;;  %v6645_v17 = vsel %vm280_vm0, %v8543_v39, %v4387_v35  ;;  %v8546_v39 = vld [vmem:[#allocation15_spill] sm:$0xff] }
 0x123   : > { %v6610_v60 = vpop.permute.xlu1 %4650  ;;  %v6641_v1 = vsel %vm280_vm0, %v8542_v58, %v4388_v29  ;;  %v4402_v24 = vunpack.i.l.bf16 %v6294_v32  ;;  %v4413_v29 = vunpack.i.h.bf16 %v6302_v41  ;;  %v4417_v35 = vunpack.i.l.bf16 %v6304_v42 }
 0x124   : > { %v6628_v3 = vpop.permute.xlu0 %4655  ;;  %v6671_v57 = vsel %vm280_vm0, %v6198_v7, %v4398_v30  ;;  %v6675_v41 = vsel %vm280_vm0, %v6196_v9, %v4397_v43  ;;  %v6683_v42 = vsel %vm280_vm0, %v6202_v54, %v4403_v23  ;;  %v4427_v7 = vunpack.i.l.bf16 %v6312_v46  ;;  %v8548_v30 = vld [vmem:[#allocation18_spill] sm:$0xff]  ;;  %v8549_v9 = vld [vmem:[#allocation17_spill] sm:$0xff]  ;;  %v8550_v23 = vld [vmem:[#allocation19_spill] sm:$0xff] }
 0x125   : > { %4940 = vrot.lane.b32.xlu1 %v4939_v15, %s5633_s13  ;;  %v4408_v15 = vunpack.i.h.bf16 %v6296_v34  ;;  %v6667_v34 = vsel %vm280_vm0, %v8546_v39, %v4392_v44  ;;  %v4428_v44 = vunpack.i.h.bf16 %v6312_v46  ;;  %v6692_v43 = vsel %vm280_vm0, %v8549_v9, %v4402_v24 }
 0x126   : > { %4945 = vrot.lane.b32.xlu0 %v4944_v19, %s5634_s20  ;;  %v8544_v19 = vld [vmem:[#allocation16_spill] sm:$0xff]  ;;  %8547 = vst [vmem:[#allocation6_spill] sm:$0xff] %v6667_v34  ;;  %v6700_v54 = vsel %vm1746_vm2, %v6488_v53, %v4407_v56  ;;  %v6710_v45 = vsel %vm1746_vm2, %v6526_v21, %v4413_v29  ;;  %v6722_v53 = vsel %vm1746_vm2, %v6530_v22, %v4423_v8  ;;  %v4433_v24 = vunpack.i.h.bf16 %v8550_v23 }
 0x127   : > { %v6653_v50 = vpop.permute.xlu1 %4660  ;;  %v6663_v32 = vsel %vm280_vm0, %v8544_v19, %v4393_v31  ;;  %v4422_v31 = vunpack.i.l.bf16 %v6310_v55  ;;  %v6696_v10 = vsel %vm1746_vm2, %v6485_v28, %v4408_v15  ;;  %v6704_v55 = vsel %vm1746_vm2, %v6514_v52, %v4412_v36  ;;  %v8551_v21 = vld [vmem:[#allocation20_spill] sm:$0xff]  ;;  %v8554_v19 = vld [vmem:[#allocation22_spill] sm:$0xff] }
 0x128   : > { %v6659_v58 = vpop.permute.xlu0 %4665  ;;  %8545 = vst [vmem:[#allocation4_spill] sm:$0xff] %v6663_v32  ;;  %v6718_v28 = vsel %vm1746_vm2, %v6506_v51, %v4417_v35  ;;  %v4432_v15 = vunpack.i.l.bf16 %v8550_v23  ;;  %v4438_v56 = vunpack.i.h.bf16 %v8551_v21  ;;  %v4437_v36 = vunpack.i.l.bf16 %v8551_v21 }
 0x129   : > { %4950 = vrot.lane.b32.xlu1 %v4949_v2, %s5634_s20  ;;  %v6714_v2 = vsel %vm1746_vm2, %v6510_v14, %v4418_v48  ;;  %v8552_v14 = vpack.i.bf16 %v6522_v20, %v6520_v40  ;;  %v6736_v51 = vsel %vm1746_vm2, %v6534_v16, %v4422_v31  ;;  %v6740_v22 = vsel %vm1746_vm2, %v6551_v25, %v4427_v7  ;;  %v8553_v48 = vld [vmem:[#allocation21_spill] sm:$0xff]  ;;  %v8555_v20 = vld [vmem:[#allocation23_spill] sm:$0xff]  ;;  %v8556_v31 = vld [vmem:[#allocation24_spill] sm:$0xff] }
 0x12a   : > { %4955 = vrot.lane.b32.xlu0 %v8548_v30, %s5635_s21  ;;  %v6744_v29 = vsel %vm1746_vm2, %v6547_v26, %v4428_v44  ;;  %v4443_v35 = vunpack.i.h.bf16 %v8553_v48  ;;  %v4442_v8 = vunpack.i.l.bf16 %v8553_v48  ;;  %v4448_v39 = vunpack.i.h.bf16 %v8554_v19  ;;  %v8557_v44 = vld [vmem:[#allocation25_spill] sm:$0xff] }
 0x12b   : > { %v6706_v46 = vpop.permute.xlu1 %4670  ;;  %v4447_v40 = vunpack.i.l.bf16 %v8554_v19  ;;  %v4453_v30 = vunpack.i.h.bf16 %v8555_v20  ;;  %v4452_v25 = vunpack.i.l.bf16 %v8555_v20  ;;  %v4458_v7 = vunpack.i.h.bf16 %v8556_v31 }
 0x12c   : > { %v6724_v52 = vpop.permute.xlu0 %4675  ;;  %v4457_v26 = vunpack.i.l.bf16 %v8556_v31  ;;  %v4463_v9 = vunpack.i.h.bf16 %v8557_v44  ;;  %v6761_v21 = vsel %vm1746_vm2, %v6571_v63, %v4433_v24  ;;  %v6769_v48 = vsel %vm1746_vm2, %v6583_v6, %v4437_v36  ;;  %v8558_v63 = vld [vmem:[#allocation26_spill] sm:$0xff]  ;;  %v8559_v36 = vld [vmem:[#allocation28_spill] sm:$0xff] }
 0x12d   : > { %4960 = vrot.lane.b32.xlu1 %v8552_v14, %s5635_s21  ;;  %v6765_v14 = vsel %vm1746_vm2, %v6575_v5, %v4432_v15  ;;  %v6773_v19 = vsel %vm1746_vm2, %v6579_v4, %v4438_v56  ;;  %v6777_v20 = vsel %vm1746_vm2, %v6588_v11, %v4443_v35  ;;  %v4462_v31 = vunpack.i.l.bf16 %v8557_v44 }
 0x12e   : > { %v4468_v24 = vunpack.i.h.bf16 %v8558_v63  ;;  %v4467_v49 = vunpack.i.l.bf16 %v8558_v63  ;;  %v6784_v5 = vsel %vm1746_vm2, %v6596_v33, %v4442_v8  ;;  %v6788_v6 = vsel %vm1746_vm2, %v6604_v47, %v4447_v40  ;;  %v8565_v63 = vld [vmem:[#allocation32_spill] sm:$0xff] }
 0x12f   : > { %v6751_v16 = vpop.permute.xlu1 %4680  ;;  %v6792_v4 = vsel %vm1746_vm2, %v6600_v61, %v4448_v39  ;;  %v6796_v11 = vsel %vm1746_vm2, %v6608_v12, %v4453_v30  ;;  %v6802_v56 = vsel %vm1746_vm2, %v6614_v27, %v4452_v25  ;;  %v6806_v33 = vsel %vm1746_vm2, %v6622_v59, %v4457_v26  ;;  %v8560_v27 = vld [vmem:[#allocation29_spill] sm:$0xff]  ;;  %v8563_v30 = vld [vmem:[#allocation30_spill] sm:$0xff]  ;;  %v8564_v26 = vld [vmem:[#allocation31_spill] sm:$0xff] }
 0x130   : > { %v6757_v23 = vpop.permute.xlu0 %4685  ;;  %v6810_v47 = vsel %vm1746_vm2, %v6618_v18, %v4458_v7  ;;  %v6814_v61 = vsel %vm1746_vm2, %v6626_v62, %v4463_v9  ;;  %v4478_v35 = vunpack.i.h.bf16 %v8559_v36  ;;  %v4477_v8 = vunpack.i.l.bf16 %v8559_v36 }
 0x131   : > { %v4483_v39 = vunpack.i.h.bf16 %v8560_v27  ;;  %v4482_v40 = vunpack.i.l.bf16 %v8560_v27  ;;  %v6824_v59 = vsel %vm1746_vm2, %v6637_v37, %v4462_v31  ;;  %v6828_v18 = vsel %vm1746_vm2, %v6645_v17, %v4467_v49  ;;  %v8567_v27 = vld [vmem:[#allocation44_spill] sm:$0xff] }
 0x132   : > { %8561 = vst [vmem:[#allocation5_spill] sm:$0xff] %v6828_v18  ;;  %v6832_v62 = vsel %vm1746_vm2, %v6641_v1, %v4468_v24  ;;  %v4487_v25 = vunpack.i.l.bf16 %v8563_v30  ;;  %v4488_v7 = vunpack.i.h.bf16 %v8563_v30  ;;  %v4493_v44 = vunpack.i.h.bf16 %v8564_v26 }
 0x133   : > { %v6798_v15 = vpop.permute.xlu1 %4690  ;;  %8562 = vst [vmem:[#allocation8_spill] sm:$0xff] %v6832_v62  ;;  %v4492_v9 = vunpack.i.l.bf16 %v8564_v26  ;;  %v4497_v37 = vunpack.i.l.bf16 %v8565_v63  ;;  %v4558_v1 = vunpack.i.h.bf16 %v8567_v27  ;;  %v4557_v24 = vunpack.i.l.bf16 %v8567_v27 }
 0x134   : > { %v6816_v12 = vpop.permute.xlu0 %4695  ;;  %v1775_v30 = vsel %vm1746_vm2, %v6675_v41, %v4477_v8  ;;  %v1776_v26 = vsel %vm1746_vm2, %v6671_v57, %v4478_v35  ;;  %v1778_v18 = vsel %vm1746_vm2, %v6683_v42, %v4483_v39  ;;  %v1777_v49 = vsel %vm1746_vm2, %v6692_v43, %v4482_v40 }
 0x135   : > { %v6857_v17 = vsel %vm1779_vm4, %v6700_v54, %v4487_v25  ;;  %v4498_v27 = vunpack.i.h.bf16 %v8565_v63  ;;  %v4637_v34 = vunpack.i.l.bf16 %v6536_v13  ;;  %v6864_v41 = vsel %vm1779_vm4, %v6696_v10, %v4488_v7  ;;  %v8570_v10 = vld [vmem:[#allocation45_spill] sm:$0xff] }
 0x136   : > { %v6868_v57 = vsel %vm1779_vm4, %v6704_v55, %v4492_v9  ;;  %v6872_v42 = vsel %vm1779_vm4, %v6710_v45, %v4493_v44  ;;  %v6876_v43 = vsel %vm1779_vm4, %v6718_v28, %v4497_v37  ;;  %v1809_v35 = vsel %vm1779_vm4, %v1776_v26, %v4558_v1  ;;  %v8571_v44 = vld [vmem:[#allocation33_spill] sm:$0xff] }
 0x137   : > { %v6839_v31 = vpop.permute.xlu1 %4700  ;;  %v4563_v8 = vunpack.i.h.bf16 %v8570_v10  ;;  %v4562_v39 = vunpack.i.l.bf16 %v8570_v10  ;;  %v4643_v40 = vunpack.i.h.bf16 %v6561_v0  ;;  %v4642_v45 = vunpack.i.l.bf16 %v6561_v0 }
 0x138   : > { %v6845_v62 = vpop.permute.xlu0 %4705  ;;  %v6888_v28 = vsel %vm1779_vm4, %v6714_v2, %v4498_v27  ;;  %v4503_v9 = vunpack.i.h.bf16 %v8571_v44  ;;  %v4502_v1 = vunpack.i.l.bf16 %v8571_v44  ;;  %vm4015_vm0 = vcmask 588800  }
 0x139   : > { %8568 = vst [vmem:[#allocation7_spill] sm:$0xff] %v6845_v62  ;;  %v4638_v62 = vunpack.i.h.bf16 %v6536_v13  ;;  %v1808_v13 = vsel %vm1779_vm4, %v1775_v30, %v4557_v24  ;;  %v8572_v24 = vld [vmem:[#allocation34_spill] sm:$0xff]  ;;  %v1810_v2 = vsel %vm1779_vm4, %v1777_v49, %v4562_v39  ;;  %v1811_v27 = vsel %vm1779_vm4, %v1778_v18, %v4563_v8 }
 0x13a   : > { %v1841_v63 = vsel %vm1812_vm5, %v1808_v13, %v4637_v34  ;;  %v4507_v30 = vunpack.i.l.bf16 %v8572_v24  ;;  %v8575_v13 = vld [vmem:[#allocation35_spill] sm:$0xff]  ;;  %v1843_v44 = vsel %vm1812_vm5, %v1810_v2, %v4642_v45  ;;  %v6919_v8 = vsel %vm1779_vm4, %v6736_v51, %v4502_v1 }
 0x13b   : > { %v6878_v54 = vpop.permute.xlu1 %4710  ;;  %v1842_v37 = vsel %vm1812_vm5, %v1809_v35, %v4638_v62  ;;  %v4508_v62 = vunpack.i.h.bf16 %v8572_v24  ;;  %v4513_v35 = vunpack.i.h.bf16 %v8575_v13  ;;  %v8579_v24 = vld [vmem:[#allocation37_spill] sm:$0xff]  ;;  %v1787_v2 = vsel %vm1779_vm4, %v6722_v53, %v4503_v9  ;;  %v8581_v1 = vld [vmem:[#allocation39_spill] sm:$0xff] }
 0x13c   : > { %8569 = vst [vmem:[#allocation10_spill] sm:$0xff] %v6878_v54  ;;  %v4716_v55 = vpop.permute.xlu0 %4715  ;;  %v4523_v45 = vunpack.i.h.bf16 %v8579_v24 }
 0x13d   : > { %v4718_v25 = vunpack.i.h.bf16 %v4716_v55  ;;  %v4717_v7 = vunpack.i.l.bf16 %v4716_v55  ;;  %v1789_v53 = vsel %vm1779_vm4, %v6744_v29, %v4508_v62  ;;  %v1791_v9 = vsel %vm1779_vm4, %v6761_v21, %v4513_v35 }
 0x13f   : > { %v6896_v26 = vsel %vm1845_vm6, %v1841_v63, %v4717_v7  ;;  %v6899_v0 = vsel %vm1845_vm6, %v1842_v37, %v4718_v25  ;;  %v4721_v10 = vpop.permute.xlu1 %4720  ;;  %v1844_v7 = vsel %vm1812_vm5, %v1811_v27, %v4643_v40  ;;  %v4512_v25 = vunpack.i.l.bf16 %v8575_v13  ;;  %v8576_v63 = vld [vmem:[#allocation36_spill] sm:$0xff]  ;;  %v8580_v27 = vld [vmem:[#allocation38_spill] sm:$0xff] }
 0x140   : > { %8573 = vst [vmem:[#allocation9_spill] sm:$0xff] %v6896_v26  ;;  %8574 = vst [vmem:[#allocation12_spill] sm:$0xff] %v6899_v0  ;;  %v4723_v55 = vunpack.i.h.bf16 %v4721_v10  ;;  %v4722_v54 = vunpack.i.l.bf16 %v4721_v10  ;;  %v6903_v34 = vpop.permute.xlu0 %4725  ;;  %v4517_v37 = vunpack.i.l.bf16 %v8576_v63  ;;  %v4518_v39 = vunpack.i.h.bf16 %v8576_v63  ;;  %v8582_v63 = vld [vmem:[#allocation40_spill] sm:$0xff] }
 0x141   : > { %v4522_v40 = vunpack.i.l.bf16 %v8579_v24  ;;  %v4527_v13 = vunpack.i.l.bf16 %v8580_v27  ;;  %v4538_v24 = vunpack.i.h.bf16 %v8582_v63 }
 0x142   : > { %v6912_v49 = vsel %vm1845_vm6, %v1843_v44, %v4722_v54  ;;  %v6915_v18 = vsel %vm1845_vm6, %v1844_v7, %v4723_v55  ;;  %v1788_v54 = vsel %vm1779_vm4, %v6740_v22, %v4507_v30  ;;  %v4528_v55 = vunpack.i.h.bf16 %v8580_v27 }
 0x143   : > { %8577 = vst [vmem:[#allocation11_spill] sm:$0xff] %v6912_v49  ;;  %8578 = vst [vmem:[#allocation14_spill] sm:$0xff] %v6915_v18  ;;  %v6924_v10 = vpop.permute.xlu1 %4730  ;;  %v4533_v44 = vunpack.i.h.bf16 %v8581_v1  ;;  %v4532_v7 = vunpack.i.l.bf16 %v8581_v1  ;;  %v4537_v18 = vunpack.i.l.bf16 %v8582_v63  ;;  %v1790_v22 = vsel %vm1779_vm4, %v6765_v14, %v4512_v25  ;;  %v8583_v49 = vld [vmem:[#allocation41_spill] sm:$0xff] }
 0x144   : > { %v6932_v51 = vpop.permute.xlu0 %4735  ;;  %v1792_v30 = vsel %vm1779_vm4, %v6769_v48, %v4517_v37  ;;  %v1793_v27 = vsel %vm1779_vm4, %v6773_v19, %v4518_v39  ;;  %v1794_v1 = vsel %vm1779_vm4, %v6784_v5, %v4522_v40  ;;  %v1795_v63 = vsel %vm1779_vm4, %v6777_v20, %v4523_v45  ;;  %v8584_v19 = vld [vmem:[#allocation46_spill] sm:$0xff]  ;;  %v8586_v45 = vld [vmem:[#allocation47_spill] sm:$0xff] }
 0x145   : > { %v4542_v29 = vunpack.i.l.bf16 %v8583_v49  ;;  %v1796_v14 = vsel %vm1779_vm4, %v6788_v6, %v4527_v13  ;;  %v6959_v21 = vsel %vm1779_vm4, %v6792_v4, %v4528_v55  ;;  %v4543_v48 = vunpack.i.h.bf16 %v8583_v49 }
 0x146   : > { %v4567_v35 = vunpack.i.l.bf16 %v8584_v19  ;;  %v6967_v20 = vsel %vm1779_vm4, %v6802_v56, %v4532_v7  ;;  %v6971_v5 = vsel %vm1779_vm4, %v6796_v11, %v4533_v44  ;;  %v6975_v6 = vsel %vm1779_vm4, %v6806_v33, %v4537_v18  ;;  %v8588_v33 = vld [vmem:[#allocation48_spill] sm:$0xff] }
 0x147   : > { %v6953_v62 = vpop.permute.xlu1 %4740  ;;  %v6979_v4 = vsel %vm1779_vm4, %v6810_v47, %v4538_v24  ;;  %v4568_v39 = vunpack.i.h.bf16 %v8584_v19  ;;  %v4573_v40 = vunpack.i.h.bf16 %v8586_v45  ;;  %v4572_v56 = vunpack.i.l.bf16 %v8586_v45  ;;  %v8591_v45 = vld [vmem:[#allocation49_spill] sm:$0xff] }
 0x148   : > { %v6963_v25 = vpop.permute.xlu0 %4745  ;;  %v6987_v11 = vsel %vm1779_vm4, %v6824_v59, %v4542_v29  ;;  %v4578_v18 = vunpack.i.h.bf16 %v8588_v33  ;;  %v4577_v13 = vunpack.i.l.bf16 %v8588_v33  ;;  %v6996_v44 = vsel %vm1779_vm4, %v6814_v61, %v4543_v48  ;;  %v8592_v33 = vld [vmem:[#allocation50_spill] sm:$0xff] }
 0x149   : > { %8587 = vst [vmem:[#allocation13_spill] sm:$0xff] %v6987_v11  ;;  %8589 = vst [vmem:[#allocation16_spill] sm:$0xff] %v6996_v44  ;;  %v1813_v59 = vsel %vm1812_vm5, %v6857_v17, %v4567_v35  ;;  %v4583_v49 = vunpack.i.h.bf16 %v8591_v45  ;;  %v4582_v55 = vunpack.i.l.bf16 %v8591_v45  ;;  %v4588_v0 = vunpack.i.h.bf16 %v8592_v33  ;;  %v8593_v17 = vld [vmem:[#allocation51_spill] sm:$0xff] }
 0x14a   : > { %v4587_v26 = vunpack.i.l.bf16 %v8592_v33  ;;  %v1814_v61 = vsel %vm1812_vm5, %v6864_v41, %v4568_v39  ;;  %v1815_v48 = vsel %vm1812_vm5, %v6868_v57, %v4572_v56  ;;  %v1816_v24 = vsel %vm1812_vm5, %v6872_v42, %v4573_v40  ;;  %v8594_v33 = vld [vmem:[#allocation52_spill] sm:$0xff]  ;;  %v8595_v57 = vld [vmem:[#allocation53_spill] sm:$0xff]  ;;  %v8596_v40 = vld [vmem:[#allocation54_spill] sm:$0xff] }
 0x14b   : > { %v6992_v47 = vpop.permute.xlu1 %4750  ;;  %v4592_v35 = vunpack.i.l.bf16 %v8593_v17  ;;  %v1817_v19 = vsel %vm1812_vm5, %v6876_v43, %v4577_v13  ;;  %v1818_v45 = vsel %vm1812_vm5, %v6888_v28, %v4578_v18  ;;  %v4593_v7 = vunpack.i.h.bf16 %v8593_v17 }
 0x14c   : > { %v7002_v29 = vpop.permute.xlu0 %4755  ;;  %v4597_v37 = vunpack.i.l.bf16 %v8594_v33  ;;  %v4598_v41 = vunpack.i.h.bf16 %v8594_v33  ;;  %v4603_v39 = vunpack.i.h.bf16 %v8595_v57  ;;  %v4602_v42 = vunpack.i.l.bf16 %v8595_v57  ;;  %v8597_v57 = vld [vmem:[#allocation55_spill] sm:$0xff] }
 0x14d   : > { %v4607_v56 = vunpack.i.l.bf16 %v8596_v40  ;;  %v1819_v43 = vsel %vm1812_vm5, %v6919_v8, %v4582_v55  ;;  %v1820_v28 = vsel %vm1812_vm5, %v1787_v2, %v4583_v49  ;;  %v7033_v18 = vsel %vm1812_vm5, %v1788_v54, %v4587_v26  ;;  %v8598_v26 = vld [vmem:[#allocation56_spill] sm:$0xff] }
 0x14e   : > { %v7036_v13 = vsel %vm1812_vm5, %v1789_v53, %v4588_v0  ;;  %v7039_v17 = vsel %vm1812_vm5, %v1790_v22, %v4592_v35  ;;  %v4608_v33 = vunpack.i.h.bf16 %v8596_v40  ;;  %v4613_v44 = vunpack.i.h.bf16 %v8597_v57 }
 0x14f   : > { %v7021_v32 = vpop.permute.xlu1 %4760  ;;  %v4612_v11 = vunpack.i.l.bf16 %v8597_v57  ;;  %v7045_v8 = vsel %vm1812_vm5, %v1791_v9, %v4593_v7  ;;  %v7048_v2 = vsel %vm1812_vm5, %v1792_v30, %v4597_v37  ;;  %v4618_v54 = vunpack.i.h.bf16 %v8598_v26 }
 0x150   : > { %v7027_v36 = vpop.permute.xlu0 %4765  ;;  %v4617_v0 = vunpack.i.l.bf16 %v8598_v26  ;;  %v7055_v22 = vsel %vm1812_vm5, %v1793_v27, %v4598_v41  ;;  %v7058_v49 = vsel %vm1812_vm5, %v1794_v1, %v4602_v42  ;;  %v7061_v55 = vsel %vm1812_vm5, %v1795_v63, %v4603_v39 }
 0x151   : > { %v7064_v9 = vsel %vm1812_vm5, %v1796_v14, %v4607_v56  ;;  %v4648_v37 = vunpack.i.h.bf16 %v6567_v38  ;;  %v4647_v7 = vunpack.i.l.bf16 %v6567_v38  ;;  %v4653_v35 = vunpack.i.h.bf16 %v6610_v60 }
 0x152   : > { %v4652_v27 = vunpack.i.l.bf16 %v6610_v60  ;;  %v7074_v1 = vsel %vm1812_vm5, %v6959_v21, %v4608_v33  ;;  %v7078_v63 = vsel %vm1812_vm5, %v6967_v20, %v4612_v11  ;;  %v7082_v14 = vsel %vm1812_vm5, %v6971_v5, %v4613_v44  ;;  %v8599_v21 = vld [vmem:[#allocation57_spill] sm:$0xff] }
 0x153   : > { %v7052_v53 = vpop.permute.xlu1 %4770  ;;  %v4657_v41 = vunpack.i.l.bf16 %v6628_v3  ;;  %v7087_v38 = vsel %vm1812_vm5, %v6975_v6, %v4617_v0  ;;  %v7091_v60 = vsel %vm1812_vm5, %v6979_v4, %v4618_v54  ;;  %v4658_v42 = vunpack.i.h.bf16 %v6628_v3 }
 0x154   : > { %v7066_v30 = vpop.permute.xlu0 %4775  ;;  %v4662_v11 = vunpack.i.l.bf16 %v6653_v50  ;;  %v4728_v44 = vunpack.i.h.bf16 %v6903_v34  ;;  %v4727_v6 = vunpack.i.l.bf16 %v6903_v34  ;;  %v1846_v56 = vsel %vm1845_vm6, %v1813_v59, %v4647_v7 }
 0x155   : > { %v1847_v4 = vsel %vm1845_vm6, %v1814_v61, %v4648_v37  ;;  %v1848_v33 = vsel %vm1845_vm6, %v1815_v48, %v4652_v27  ;;  %v1849_v3 = vsel %vm1845_vm6, %v1816_v24, %v4653_v35  ;;  %v1850_v57 = vsel %vm1845_vm6, %v1817_v19, %v4657_v41 }
 0x156   : > { %v4663_v26 = vunpack.i.h.bf16 %v6653_v50  ;;  %v1851_v39 = vsel %vm1845_vm6, %v1818_v45, %v4658_v42  ;;  %v4668_v5 = vunpack.i.h.bf16 %v6659_v58  ;;  %v4667_v34 = vunpack.i.l.bf16 %v6659_v58 }
 0x157   : > { %v7095_v20 = vpop.permute.xlu1 %4780  ;;  %v4732_v59 = vunpack.i.l.bf16 %v6924_v10  ;;  %v1852_v61 = vsel %vm1845_vm6, %v1819_v43, %v4662_v11  ;;  %v4733_v48 = vunpack.i.h.bf16 %v6924_v10  ;;  %v1879_v19 = vsel %vm1878_vm7, %v1846_v56, %v4727_v6 }
 0x158   : > { %v4786_v40 = vpop.permute.xlu0 %4785  ;;  %v1880_v50 = vsel %vm1878_vm7, %v1847_v4, %v4728_v44  ;;  %v1853_v41 = vsel %vm1845_vm6, %v1820_v28, %v4663_v26  ;;  %v4738_v58 = vunpack.i.h.bf16 %v6932_v51  ;;  %v4737_v10 = vunpack.i.l.bf16 %v6932_v51 }
 0x159   : > { %v4788_v54 = vunpack.i.h.bf16 %v4786_v40  ;;  %v4787_v0 = vunpack.i.l.bf16 %v4786_v40  ;;  %v1881_v43 = vsel %vm1878_vm7, %v1848_v33, %v4732_v59  ;;  %v1882_v56 = vsel %vm1878_vm7, %v1849_v3, %v4733_v48 }
 0x15a   : > { %v4673_v48 = vunpack.i.h.bf16 %v6706_v46 }
 0x15b   : > { %v4791_v7 = vpop.permute.xlu1 %4790  ;;  %v1912_v42 = vsel %vm1911_vm8, %v1879_v19, %v4787_v0  ;;  %v1913_v40 = vsel %vm1911_vm8, %v1880_v50, %v4788_v54  ;;  %v1854_v0 = vsel %vm1845_vm6, %v7033_v18, %v4667_v34  ;;  %v1855_v54 = vsel %vm1845_vm6, %v7036_v13, %v4668_v5 }
 0x15c   : > { %v4796_v24 = vpop.permute.xlu0 %4795  ;;  %v4793_v37 = vunpack.i.h.bf16 %v4791_v7  ;;  %v4792_v35 = vunpack.i.l.bf16 %v4791_v7  ;;  %v4672_v50 = vunpack.i.l.bf16 %v6706_v46  ;;  %v4742_v18 = vunpack.i.l.bf16 %v6953_v62 }
 0x15d   : > { %v4798_v27 = vunpack.i.h.bf16 %v4796_v24  ;;  %v4797_v45 = vunpack.i.l.bf16 %v4796_v24  ;;  %v4678_v5 = vunpack.i.h.bf16 %v6724_v52  ;;  %v4677_v46 = vunpack.i.l.bf16 %v6724_v52 }
 0x15e   : > { %v1914_v33 = vsel %vm1911_vm8, %v1881_v43, %v4792_v35  ;;  %v1915_v51 = vsel %vm1911_vm8, %v1882_v56, %v4793_v37  ;;  %v1883_v37 = vsel %vm1878_vm7, %v1850_v57, %v4737_v10  ;;  %v1884_v35 = vsel %vm1878_vm7, %v1851_v39, %v4738_v58 }
 0x15f   : > { %v4801_v11 = vpop.permute.xlu1 %4800  ;;  %v1945_v6 = vsel %vm1944_vm9, %v1912_v42, %v4797_v45  ;;  %v1946_v44 = vsel %vm1944_vm9, %v1913_v40, %v4798_v27  ;;  %v4743_v27 = vunpack.i.h.bf16 %v6953_v62  ;;  %v1885_v57 = vsel %vm1878_vm7, %v1852_v61, %v4742_v18 }
 0x160   : > { %v4803_v4 = vunpack.i.h.bf16 %v4801_v11  ;;  %v4802_v7 = vunpack.i.l.bf16 %v4801_v11  ;;  %v4806_v28 = vpop.permute.xlu0 %4805  ;;  %v1977_v26 = vpack.c.bf16 %v1946_v44, %v1945_v6  ;;  %v4748_v6 = vunpack.i.h.bf16 %v6963_v25 }
 0x161   : > { %v4808_v19 = vunpack.i.h.bf16 %v4806_v28  ;;  %v4807_v3 = vunpack.i.l.bf16 %v4806_v28  ;;  %v4747_v39 = vunpack.i.l.bf16 %v6963_v25  ;;  %v1858_v18 = vsel %vm1845_vm6, %v7048_v2, %v4677_v46 }
 0x162   : > { %v1947_v59 = vsel %vm1944_vm9, %v1914_v33, %v4802_v7  ;;  %v1948_v24 = vsel %vm1944_vm9, %v1915_v51, %v4803_v4  ;;  %4261 = vmatprep.mubr.msk.bf16.mxu0 %vm2013_vm10, %v1977_v26  ;;  %v1886_v4 = vsel %vm1878_vm7, %v1853_v41, %v4743_v27  ;;  %v1856_v51 = vsel %vm1845_vm6, %v7039_v17, %v4672_v50 }
 0x163   : > { %v4811_v34 = vpop.permute.xlu1 %4810  ;;  %v1978_v13 = vpack.c.bf16 %v1948_v24, %v1947_v59  ;;  %v1916_v44 = vsel %vm1911_vm8, %v1883_v37, %v4807_v3  ;;  %v1917_v56 = vsel %vm1911_vm8, %v1884_v35, %v4808_v19  ;;  %v1857_v59 = vsel %vm1845_vm6, %v7045_v8, %v4673_v48 }
 0x164   : > { %v4816_v45 = vpop.permute.xlu0 %4815  ;;  %v4813_v42 = vunpack.i.h.bf16 %v4811_v34  ;;  %v4812_v40 = vunpack.i.l.bf16 %v4811_v34  ;;  %v4683_v17 = vunpack.i.h.bf16 %v6751_v16  ;;  %v4752_v50 = vunpack.i.l.bf16 %v6992_v47 }
 0x165   : > { %v4818_v43 = vunpack.i.h.bf16 %v4816_v45  ;;  %v4817_v11 = vunpack.i.l.bf16 %v4816_v45  ;;  %4262 = vmatmul.mubr.msk.bf16.vlgmr.msra.gmra.mxu0 %vm2013_vm10, %v1978_v13  ;;  %v4682_v34 = vunpack.i.l.bf16 %v6751_v16  ;;  %v1887_v13 = vsel %vm1878_vm7, %v1854_v0, %v4747_v39 }
 0x166   : > { %v1918_v61 = vsel %vm1911_vm8, %v1885_v57, %v4812_v40  ;;  %v1919_v25 = vsel %vm1911_vm8, %v1886_v4, %v4813_v42  ;;  %v1888_v37 = vsel %vm1878_vm7, %v1855_v54, %v4748_v6  ;;  %v4753_v35 = vunpack.i.h.bf16 %v6992_v47 }
 0x167   : > { %v1949_v62 = vsel %vm1944_vm9, %v1916_v44, %v4817_v11  ;;  %v1950_v58 = vsel %vm1944_vm9, %v1917_v56, %v4818_v43  ;;  %v4821_v10 = vpop.permute.xlu1 %4820  ;;  %v4687_v2 = vunpack.i.l.bf16 %v6757_v23  ;;  %v4758_v11 = vunpack.i.h.bf16 %v7002_v29 }
 0x168   : > { %v4823_v7 = vunpack.i.h.bf16 %v4821_v10  ;;  %v4822_v28 = vunpack.i.l.bf16 %v4821_v10  ;;  %v4826_v26 = vpop.permute.xlu0 %4825  ;;  %v1979_v33 = vpack.c.bf16 %v1950_v58, %v1949_v62  ;;  %v1889_v0 = vsel %vm1878_vm7, %v1856_v51, %v4752_v50 }
 0x169   : > { %v4828_v3 = vunpack.i.h.bf16 %v4826_v26  ;;  %v4827_v41 = vunpack.i.l.bf16 %v4826_v26  ;;  %v4757_v54 = vunpack.i.l.bf16 %v7002_v29  ;;  %v1890_v56 = vsel %vm1878_vm7, %v1857_v59, %v4753_v35 }
 0x16a   : > { %v1951_v24 = vsel %vm1944_vm9, %v1918_v61, %v4822_v28  ;;  %v1952_v19 = vsel %vm1944_vm9, %v1919_v25, %v4823_v7  ;;  %4265 = vmatprep.mubr.msk.bf16.mxu0 %vm2013_vm10, %v1979_v33  ;;  %v1859_v10 = vsel %vm1845_vm6, %v7055_v22, %v4678_v5  ;;  %v4688_v4 = vunpack.i.h.bf16 %v6757_v23 }
 0x16b   : > { %v4831_v8 = vpop.permute.xlu1 %4830  ;;  %v1980_v48 = vpack.c.bf16 %v1952_v19, %v1951_v24  ;;  %v1920_v46 = vsel %vm1911_vm8, %v1887_v13, %v4827_v41  ;;  %v1921_v16 = vsel %vm1911_vm8, %v1888_v37, %v4828_v3  ;;  %v1860_v52 = vsel %vm1845_vm6, %v7058_v49, %v4682_v34 }
 0x16c   : > { %v4836_v27 = vpop.permute.xlu0 %4835  ;;  %v4833_v45 = vunpack.i.h.bf16 %v4831_v8  ;;  %v4832_v42 = vunpack.i.l.bf16 %v4831_v8  ;;  %v1861_v22 = vsel %vm1845_vm6, %v7061_v55, %v4683_v17  ;;  %v4762_v23 = vunpack.i.l.bf16 %v7021_v32 }
 0x16d   : > { %v4838_v40 = vunpack.i.h.bf16 %v4836_v27  ;;  %v4837_v43 = vunpack.i.l.bf16 %v4836_v27  ;;  %4266 = vmatmul.mubr.msk.bf16.gmra.mxu0 %vm2013_vm10, %v1980_v48  ;;  %v1862_v61 = vsel %vm1845_vm6, %v7064_v9, %v4687_v2  ;;  %v1891_v25 = vsel %vm1878_vm7, %v1858_v18, %v4757_v54 }
 0x16e   : > { %v1922_v29 = vsel %vm1911_vm8, %v1889_v0, %v4832_v42  ;;  %v1923_v7 = vsel %vm1911_vm8, %v1890_v56, %v4833_v45  ;;  %v1892_v24 = vsel %vm1878_vm7, %v1859_v10, %v4758_v11  ;;  %v4763_v19 = vunpack.i.h.bf16 %v7021_v32 }
 0x16f   : > { %v1953_v47 = vsel %vm1944_vm9, %v1920_v46, %v4837_v43  ;;  %v1954_v6 = vsel %vm1944_vm9, %v1921_v16, %v4838_v40  ;;  %v4841_v44 = vpop.permute.xlu1 %4840  ;;  %v4692_v55 = vunpack.i.l.bf16 %v6798_v15  ;;  %v4768_v17 = vunpack.i.h.bf16 %v7027_v36 }
 0x170   : > { %v4843_v57 = vunpack.i.h.bf16 %v4841_v44  ;;  %v4842_v39 = vunpack.i.l.bf16 %v4841_v44  ;;  %v4846_v62 = vpop.permute.xlu0 %4845  ;;  %v1981_v58 = vpack.c.bf16 %v1954_v6, %v1953_v47  ;;  %v1893_v18 = vsel %vm1878_vm7, %v1860_v52, %v4762_v23 }
 0x171   : > { %v4848_v33 = vunpack.i.h.bf16 %v4846_v62  ;;  %v4847_v51 = vunpack.i.l.bf16 %v4846_v62  ;;  %v4767_v34 = vunpack.i.l.bf16 %v7027_v36  ;;  %v1894_v35 = vsel %vm1878_vm7, %v1861_v22, %v4763_v19 }
 0x172   : > { %v1955_v28 = vsel %vm1944_vm9, %v1922_v29, %v4842_v39  ;;  %v1956_v26 = vsel %vm1944_vm9, %v1923_v7, %v4843_v57  ;;  %4269 = vmatprep.mubr.msk.bf16.mxu0 %vm2013_vm10, %v1981_v58  ;;  %v1863_v43 = vsel %vm1845_vm6, %v7074_v1, %v4688_v4  ;;  %v4693_v2 = vunpack.i.h.bf16 %v6798_v15 }
 0x173   : > { %v4851_v5 = vpop.permute.xlu1 %4850  ;;  %v1982_v59 = vpack.c.bf16 %v1956_v26, %v1955_v28  ;;  %v1924_v48 = vsel %vm1911_vm8, %v1891_v25, %v4847_v51  ;;  %v1925_v9 = vsel %vm1911_vm8, %v1892_v24, %v4848_v33  ;;  %v4698_v47 = vunpack.i.h.bf16 %v6816_v12 }
 0x174   : > { %v4856_v3 = vpop.permute.xlu0 %4855  ;;  %v4853_v41 = vunpack.i.h.bf16 %v4851_v5  ;;  %v4852_v50 = vunpack.i.l.bf16 %v4851_v5  ;;  %v4697_v6 = vunpack.i.l.bf16 %v6816_v12  ;;  %v4772_v1 = vunpack.i.l.bf16 %v7052_v53 }
 0x175   : > { %v4858_v49 = vunpack.i.h.bf16 %v4856_v3  ;;  %v4857_v8 = vunpack.i.l.bf16 %v4856_v3  ;;  %4270 = vmatmul.mubr.msk.bf16.gmra.mxu0 %vm2013_vm10, %v1982_v59  ;;  %v1864_v56 = vsel %vm1845_vm6, %v7078_v63, %v4692_v55  ;;  %v1895_v57 = vsel %vm1878_vm7, %v1862_v61, %v4767_v34 }
 0x176   : > { %v1926_v11 = vsel %vm1911_vm8, %v1893_v18, %v4852_v50  ;;  %v1927_v36 = vsel %vm1911_vm8, %v1894_v35, %v4853_v41  ;;  %v1896_v39 = vsel %vm1878_vm7, %v1863_v43, %v4768_v17  ;;  %v4773_v62 = vunpack.i.h.bf16 %v7052_v53  ;;  %v8601_v18 = vld [vmem:[#allocation13_spill] sm:$0xff] }
 0x177   : > { %v1957_v32 = vsel %vm1944_vm9, %v1924_v48, %v4857_v8  ;;  %v1958_v13 = vsel %vm1944_vm9, %v1925_v9, %v4858_v49  ;;  %v4861_v37 = vpop.permute.xlu1 %4860  ;;  %v1865_v12 = vsel %vm1845_vm6, %v7082_v14, %v4693_v2  ;;  %v4778_v28 = vunpack.i.h.bf16 %v7066_v30 }
 0x178   : > { %v4863_v27 = vunpack.i.h.bf16 %v4861_v37  ;;  %v4862_v45 = vunpack.i.l.bf16 %v4861_v37  ;;  %v4866_v42 = vpop.permute.xlu0 %4865  ;;  %v1983_v40 = vpack.c.bf16 %v1958_v13, %v1957_v32  ;;  %v1897_v33 = vsel %vm1878_vm7, %v1864_v56, %v4772_v1 }
 0x179   : > { %v4868_v0 = vunpack.i.h.bf16 %v4866_v42  ;;  %v4867_v54 = vunpack.i.l.bf16 %v4866_v42  ;;  %v4777_v53 = vunpack.i.l.bf16 %v7066_v30  ;;  %v1898_v23 = vsel %vm1878_vm7, %v1865_v12, %v4773_v62  ;;  %v8609_v12 = vld [vmem:[#allocation6_spill] sm:$0xff] }
 0x17a   : > { %v1959_v46 = vsel %vm1944_vm9, %v1926_v11, %v4862_v45  ;;  %v1960_v16 = vsel %vm1944_vm9, %v1927_v36, %v4863_v27  ;;  %4273 = vmatprep.mubr.msk.bf16.mxu0 %vm2013_vm10, %v1983_v40  ;;  %v1866_v25 = vsel %vm1845_vm6, %v7087_v38, %v4697_v6  ;;  %v4702_v24 = vunpack.i.l.bf16 %v6839_v31  ;;  %v8603_v40 = vld [vmem:[#allocation16_spill] sm:$0xff] }
 0x17b   : > { %v4871_v44 = vpop.permute.xlu1 %4870  ;;  %v1984_v15 = vpack.c.bf16 %v1960_v16, %v1959_v46  ;;  %v1928_v63 = vsel %vm1911_vm8, %v1895_v57, %v4867_v54  ;;  %v1929_v26 = vsel %vm1911_vm8, %v1896_v39, %v4868_v0  ;;  %v1867_v8 = vsel %vm1845_vm6, %v7091_v60, %v4698_v47 }
 0x17c   : > { %v4876_v58 = vpop.permute.xlu0 %4875  ;;  %v4873_v10 = vunpack.i.h.bf16 %v4871_v44  ;;  %v4872_v4 = vunpack.i.l.bf16 %v4871_v44  ;;  %v4703_v55 = vunpack.i.h.bf16 %v6839_v31  ;;  %v4782_v38 = vunpack.i.l.bf16 %v7095_v20 }
 0x17d   : > { %v4878_v29 = vunpack.i.h.bf16 %v4876_v58  ;;  %v4877_v7 = vunpack.i.l.bf16 %v4876_v58  ;;  %4274 = vmatmul.mubr.msk.bf16.gmra.mxu0 %vm2013_vm10, %v1984_v15  ;;  %v8600_v9 = vunpack.i.l.bf16 %v8599_v21  ;;  %v1899_v32 = vsel %vm1878_vm7, %v1866_v25, %v4777_v53  ;;  %v8604_v15 = vld [vmem:[#allocation58_spill] sm:$0xff]  ;;  %v8605_v58 = vld [vmem:[#allocation27_spill] sm:$0xff]  ;;  %v8615_v25 = vld [vmem:[#allocation8_spill] sm:$0xff] }
 0x17e   : > { %v1930_v19 = vsel %vm1911_vm8, %v1897_v33, %v4872_v4  ;;  %v1931_v30 = vsel %vm1911_vm8, %v1898_v23, %v4873_v10  ;;  %v1900_v13 = vsel %vm1878_vm7, %v1867_v8, %v4778_v28  ;;  %v4783_v37 = vunpack.i.h.bf16 %v7095_v20  ;;  %v8607_v4 = vld [vmem:[#allocation4_spill] sm:$0xff]  ;;  %v8610_v33 = vld [vmem:[#allocation42_spill] sm:$0xff] }
 0x17f   : > { %v1961_v51 = vsel %vm1944_vm9, %v1928_v63, %v4877_v7  ;;  %v1962_v52 = vsel %vm1944_vm9, %v1929_v26, %v4878_v29  ;;  %v4881_v22 = vpop.permute.xlu1 %4880  ;;  %v1835_v34 = vsel %vm1812_vm5, %v8601_v18, %v8600_v9  ;;  %v8602_v42 = vunpack.i.h.bf16 %v8599_v21 }
 0x180   : > { %v4883_v5 = vunpack.i.h.bf16 %v4881_v22  ;;  %v4882_v59 = vunpack.i.l.bf16 %v4881_v22  ;;  %v4886_v14 = vpop.permute.xlu0 %4885  ;;  %v1985_v61 = vpack.c.bf16 %v1962_v52, %v1961_v51  ;;  %v1868_v2 = vsel %vm1845_vm6, %v1835_v34, %v4702_v24  ;;  %v8612_v51 = vld [vmem:[#allocation5_spill] sm:$0xff]  ;;  %v8613_v22 = vld [vmem:[#allocation7_spill] sm:$0xff]  ;;  %v8620_v34 = vld [vmem:[#allocation10_spill] sm:$0xff] }
 0x181   : > { %v4888_v50 = vunpack.i.h.bf16 %v4886_v14  ;;  %v4887_v49 = vunpack.i.l.bf16 %v4886_v14  ;;  %v1836_v43 = vsel %vm1812_vm5, %v8603_v40, %v8602_v42  ;;  %v1901_v46 = vsel %vm1878_vm7, %v1868_v2, %v4782_v38 }
 0x182   : > { %v1963_v3 = vsel %vm1944_vm9, %v1930_v19, %v4882_v59  ;;  %v1964_v41 = vsel %vm1944_vm9, %v1931_v30, %v4883_v5  ;;  %4277 = vmatprep.mubr.msk.bf16.mxu0 %vm2013_vm10, %v1985_v61  ;;  %v1869_v20 = vsel %vm1845_vm6, %v1836_v43, %v4703_v55  ;;  %v4628_v56 = vunpack.i.h.bf16 %v8604_v15  ;;  %v8616_v19 = vld [vmem:[#allocation59_spill] sm:$0xff] }
 0x183   : > { %v4891_v17 = vpop.permute.xlu1 %4890  ;;  %v1986_v48 = vpack.c.bf16 %v1964_v41, %v1963_v3  ;;  %v1932_v11 = vsel %vm1911_vm8, %v1899_v32, %v4887_v49  ;;  %v1933_v36 = vsel %vm1911_vm8, %v1900_v13, %v4888_v50  ;;  %v1902_v21 = vsel %vm1878_vm7, %v1869_v20, %v4783_v37  ;;  %v8617_v49 = vld [vmem:[#allocation43_spill] sm:$0xff] }
 0x184   : > { %v4896_v35 = vpop.permute.xlu0 %4895  ;;  %v4893_v27 = vunpack.i.h.bf16 %v4891_v17  ;;  %v4892_v60 = vunpack.i.l.bf16 %v4891_v17  ;;  %v4627_v57 = vunpack.i.l.bf16 %v8604_v15  ;;  %v8606_v10 = vunpack.i.h.bf16 %v8605_v58 }
 0x185   : > { %v4898_v45 = vunpack.i.h.bf16 %v4896_v35  ;;  %v4897_v31 = vunpack.i.l.bf16 %v4896_v35  ;;  %4278 = vmatmul.mubr.msk.bf16.gmra.mxu0 %vm2013_vm10, %v1986_v48  ;;  %v8608_v7 = vunpack.i.l.bf16 %v8605_v58  ;;  %v8611_v53 = vunpack.i.l.bf16 %v8610_v33 }
 0x186   : > { %v1934_v39 = vsel %vm1911_vm8, %v1901_v46, %v4892_v60  ;;  %v1935_v62 = vsel %vm1911_vm8, %v1902_v21, %v4893_v27  ;;  %v1774_v29 = vsel %vm1746_vm2, %v8607_v4, %v8606_v10  ;;  %v4708_v23 = vunpack.i.h.bf16 %v8613_v22 }
 0x187   : > { %v1965_v16 = vsel %vm1944_vm9, %v1932_v11, %v4897_v31  ;;  %v1966_v0 = vsel %vm1944_vm9, %v1933_v36, %v4898_v45  ;;  %v4901_v54 = vpop.permute.xlu1 %4900  ;;  %v1773_v28 = vsel %vm1746_vm2, %v8609_v12, %v8608_v7  ;;  %v1804_v52 = vsel %vm1779_vm4, %v8612_v51, %v8611_v53 }
 0x188   : > { %v4903_v47 = vunpack.i.h.bf16 %v4901_v54  ;;  %v4902_v6 = vunpack.i.l.bf16 %v4901_v54  ;;  %v4906_v1 = vpop.permute.xlu0 %4905  ;;  %v1987_v44 = vpack.c.bf16 %v1966_v0, %v1965_v16  ;;  %v4707_v5 = vunpack.i.l.bf16 %v8613_v22 }
 0x189   : > { %v8614_v61 = vunpack.i.h.bf16 %v8610_v33  ;;  %v4632_v30 = vunpack.i.l.bf16 %v8616_v19  ;;  %v4908_v3 = vunpack.i.h.bf16 %v4906_v1  ;;  %v4907_v41 = vunpack.i.l.bf16 %v4906_v1 }
 0x18a   : > { %v1967_v63 = vsel %vm1944_vm9, %v1934_v39, %v4902_v6  ;;  %v1968_v26 = vsel %vm1944_vm9, %v1935_v62, %v4903_v47  ;;  %4281 = vmatprep.mubr.msk.bf16.mxu0 %vm2013_vm10, %v1987_v44  ;;  %v8618_v8 = vunpack.i.l.bf16 %v8617_v49  ;;  %v8619_v38 = vunpack.i.h.bf16 %v8617_v49 }
 0x18b   : > { %v4911_v59 = vpop.permute.xlu1 %4910  ;;  %v1988_v14 = vpack.c.bf16 %v1968_v26, %v1967_v63  ;;  %v1805_v24 = vsel %vm1779_vm4, %v8615_v25, %v8614_v61  ;;  %v1837_v48 = vsel %vm1812_vm5, %v1804_v52, %v4627_v57  ;;  %v4633_v18 = vunpack.i.h.bf16 %v8616_v19 }
 0x18c   : > { %v4916_v50 = vpop.permute.xlu0 %4915  ;;  %v1806_v55 = vsel %vm1779_vm4, %v1773_v28, %v8618_v8  ;;  %v1807_v17 = vsel %vm1779_vm4, %v1774_v29, %v8619_v38  ;;  %v1838_v9 = vsel %vm1812_vm5, %v1805_v24, %v4628_v56  ;;  %v4712_v32 = vunpack.i.l.bf16 %v8620_v34  ;;  %v8623_v8 = vld [vmem:[#allocation11_spill] sm:$0xff] }
 0x18d   : > { %4282 = vmatmul.mubr.msk.bf16.gmra.mxu0 %vm2013_vm10, %v1988_v14  ;;  %v4918_v13 = vunpack.i.h.bf16 %v4916_v50  ;;  %v4917_v37 = vunpack.i.l.bf16 %v4916_v50  ;;  %v1870_v35 = vsel %vm1845_vm6, %v1837_v48, %v4707_v5  ;;  %v1871_v27 = vsel %vm1845_vm6, %v1838_v9, %v4708_v23  ;;  %v8621_v5 = vld [vmem:[#allocation9_spill] sm:$0xff]  ;;  %v8622_v14 = vld [vmem:[#allocation12_spill] sm:$0xff]  ;;  %v8624_v9 = vld [vmem:[#allocation14_spill] sm:$0xff] }
 0x18e   : > { %v4713_v60 = vunpack.i.h.bf16 %v8620_v34  ;;  %v4912_v45 = vunpack.i.l.bf16 %v4911_v59  ;;  %v1839_v42 = vsel %vm1812_vm5, %v1806_v55, %v4632_v30  ;;  %v1903_v40 = vsel %vm1878_vm7, %v1870_v35, %v4907_v41 }
 0x18f   : > { %v4921_v31 = vpop.permute.xlu1 %4920  ;;  %v1904_v43 = vsel %vm1878_vm7, %v1871_v27, %v4908_v3  ;;  %v4913_v2 = vunpack.i.h.bf16 %v4911_v59  ;;  %v1840_v0 = vsel %vm1812_vm5, %v1807_v17, %v4633_v18  ;;  %v1872_v54 = vsel %vm1845_vm6, %v1839_v42, %v4712_v32  ;;  %v2648_v42 = vld [vmem:[#allocation3 + $0x198] sm:$0xff] }
 0x190   : > { %v4926_v11 = vpop.permute.xlu0 %4925  ;;  %v4923_v36 = vunpack.i.h.bf16 %v4921_v31  ;;  %v4922_v20 = vunpack.i.l.bf16 %v4921_v31  ;;  %v1936_v21 = vsel %vm1911_vm8, %v1903_v40, %v4917_v37  ;;  %v1937_v47 = vsel %vm1911_vm8, %v1904_v43, %v4918_v13  ;;  %v2649_v40 = vld [vmem:[#allocation3 + $0x1a0] sm:$0xff] }
 0x191   : > { %v4928_v46 = vunpack.i.h.bf16 %v4926_v11  ;;  %v4927_v16 = vunpack.i.l.bf16 %v4926_v11  ;;  %v1873_v6 = vsel %vm1845_vm6, %v1840_v0, %v4713_v60  ;;  %v1905_v1 = vsel %vm1878_vm7, %v1872_v54, %v4912_v45  ;;  %v2489_v0 = vld [vmem:[#allocation3 + $0x2] sm:$0xff] }
 0x192   : > { %v1906_v57 = vsel %vm1878_vm7, %v1873_v6, %v4913_v2  ;;  %v1938_v4 = vsel %vm1911_vm8, %v1905_v1, %v4922_v20  ;;  %v8625_v31 = vmov 0.0   ;;  %v4974_v43 = vpack.i.bf16 %v2649_v40, %v2648_v42  ;;  %v2457_v2 = vld [vmem:[#allocation3 + $0x1] sm:$0xff]  ;;  %v2680_v20 = vld [vmem:[#allocation3 + $0x199] sm:$0xff] }
 0x193   : > { %v1969_v44 = vsel %vm1944_vm9, %v1936_v21, %v4927_v16  ;;  %v1970_v15 = vsel %vm1944_vm9, %v1937_v47, %v4928_v46  ;;  %v4931_v56 = vpop.permute.xlu1 %4930  ;;  %v1939_v29 = vsel %vm1911_vm8, %v1906_v57, %v4923_v36  ;;  %2346 = vst.msk [vmem:[#allocation3 + $0x40] sm:$0x3] %vm2339_vm11, %v8625_v31  ;;  %2340 = vst.msk [vmem:[#allocation3 + $0x10] sm:$0x3] %vm2339_vm11, %v8625_v31  ;;  %v2712_v47 = vld [vmem:[#allocation3 + $0x19a] sm:$0xff] }
 0x194   : > { %v4933_v39 = vunpack.i.h.bf16 %v4931_v56  ;;  %v4932_v62 = vunpack.i.l.bf16 %v4931_v56  ;;  %v4936_v58 = vpop.permute.xlu0 %4935  ;;  %v1989_v10 = vpack.c.bf16 %v1970_v15, %v1969_v44  ;;  %2343 = vst.msk [vmem:[#allocation3 + $0x28] sm:$0x3] %vm2339_vm11, %v8625_v31  ;;  %2349 = vst.msk [vmem:[#allocation3 + $0x58] sm:$0x3] %vm2339_vm11, %v8625_v31  ;;  %4975 = vrot.lane.b32.xlu1 %v4974_v43, %s5636_s22  ;;  %v7386_v44 = vld [vmem:[%s8395_s2] ss:$0 sm:$0xff] }
 0x195   : > { %v4938_v26 = vunpack.i.h.bf16 %v4936_v58  ;;  %v4937_v33 = vunpack.i.l.bf16 %v4936_v58  ;;  %2352 = vst.msk [vmem:[#allocation3 + $0x70] sm:$0x3] %vm2339_vm11, %v8625_v31  ;;  %2355 = vst.msk [vmem:[#allocation3 + $0x88] sm:$0x3] %vm2339_vm11, %v8625_v31  ;;  %v7391_v56 = vld [vmem:[%s8396_s3] ss:$0 sm:$0xff] }
 0x196   : > { %v1971_v7 = vsel %vm1944_vm9, %v1938_v4, %v4932_v62  ;;  %v1972_v12 = vsel %vm1944_vm9, %v1939_v29, %v4933_v39  ;;  %4285 = vmatprep.mubr.msk.bf16.mxu0 %vm2013_vm10, %v1989_v10  ;;  %2358 = vst.msk [vmem:[#allocation3 + $0xa0] sm:$0x3] %vm2339_vm11, %v8625_v31  ;;  %2361 = vst.msk [vmem:[#allocation3 + $0xb8] sm:$0x3] %vm2339_vm11, %v8625_v31 }
 0x197   : > { %v4941_v28 = vpop.permute.xlu1 %4940  ;;  %v1990_v63 = vpack.c.bf16 %v1972_v12, %v1971_v7  ;;  %v1907_v59 = vsel %vm1878_vm7, %v8621_v5, %v4937_v33  ;;  %v1908_v61 = vsel %vm1878_vm7, %v8622_v14, %v4938_v26  ;;  %2364 = vst.msk [vmem:[#allocation3 + $0xd0] sm:$0x3] %vm2339_vm11, %v8625_v31  ;;  %2367 = vst.msk [vmem:[#allocation3 + $0xe8] sm:$0x3] %vm2339_vm11, %v8625_v31 }
 0x198   : > { %v4946_v53 = vpop.permute.xlu0 %4945  ;;  %v4942_v22 = vunpack.i.l.bf16 %v4941_v28  ;;  %v4943_v25 = vunpack.i.h.bf16 %v4941_v28  ;;  %2370 = vst.msk [vmem:[#allocation3 + $0x100] sm:$0x3] %vm2339_vm11, %v8625_v31  ;;  %2373 = vst.msk [vmem:[#allocation3 + $0x118] sm:$0x3] %vm2339_vm11, %v8625_v31 }
 0x199   : > { %4286 = vmatmul.mubr.msk.bf16.gmra.mxu0 %vm2013_vm10, %v1990_v63  ;;  %v4948_v51 = vunpack.i.h.bf16 %v4946_v53  ;;  %v4947_v52 = vunpack.i.l.bf16 %v4946_v53  ;;  %2376 = vst.msk [vmem:[#allocation3 + $0x130] sm:$0x3] %vm2339_vm11, %v8625_v31  ;;  %2379 = vst.msk [vmem:[#allocation3 + $0x148] sm:$0x3] %vm2339_vm11, %v8625_v31 }
 0x19a   : > { %v1909_v55 = vsel %vm1878_vm7, %v8623_v8, %v4942_v22  ;;  %v1910_v18 = vsel %vm1878_vm7, %v8624_v9, %v4943_v25  ;;  %2382 = vst.msk [vmem:[#allocation3 + $0x160] sm:$0x3] %vm2339_vm11, %v8625_v31  ;;  %2385 = vst.msk [vmem:[#allocation3 + $0x178] sm:$0x3] %vm2339_vm11, %v8625_v31  ;;  %v2458_v11 = vld [vmem:[#allocation3 + $0x9] sm:$0xff] }
 0x19b   : > { %v4951_v23 = vpop.permute.xlu1 %4950  ;;  %v1940_v50 = vsel %vm1911_vm8, %v1907_v59, %v4947_v52  ;;  %v1941_v49 = vsel %vm1911_vm8, %v1908_v61, %v4948_v51  ;;  %2388 = vst.msk [vmem:[#allocation3 + $0x190] sm:$0x3] %vm2339_vm11, %v8625_v31  ;;  %2391 = vst.msk [vmem:[#allocation3 + $0x1a8] sm:$0x3] %vm2339_vm11, %v8625_v31  ;;  %v4964_v36 = vpack.i.bf16 %v2458_v11, %v2457_v2  ;;  %v2490_v54 = vld [vmem:[#allocation3 + $0xa] sm:$0xff] }
 0x19c   : > { %v4956_v24 = vpop.permute.xlu0 %4955  ;;  %v4953_v19 = vunpack.i.h.bf16 %v4951_v23  ;;  %v4952_v30 = vunpack.i.l.bf16 %v4951_v23  ;;  %v4969_v21 = vpack.i.bf16 %v2490_v54, %v2489_v0 }
 0x19d   : > { %v4958_v3 = vunpack.i.h.bf16 %v4956_v24  ;;  %v4957_v41 = vunpack.i.l.bf16 %v4956_v24  ;;  %4965 = vrot.lane.b32.xlu0 %v4964_v36, %s5629_s9 }
 0x19e   : > { %v1942_v37 = vsel %vm1911_vm8, %v1909_v55, %v4952_v30  ;;  %v1943_v35 = vsel %vm1911_vm8, %v1910_v18, %v4953_v19 }
 0x19f   : > { %v1973_v38 = vsel %vm1944_vm9, %v1940_v50, %v4957_v41  ;;  %v1974_v17 = vsel %vm1944_vm9, %v1941_v49, %v4958_v3  ;;  %v4961_v48 = vpop.permute.xlu1 %4960 }
 0x1a0   : > { %v4963_v34 = vunpack.i.h.bf16 %v4961_v48  ;;  %v4962_v32 = vunpack.i.l.bf16 %v4961_v48  ;;  %v1991_v13 = vpack.c.bf16 %v1974_v17, %v1973_v38 }
 0x1a1   : > { %4970 = vrot.lane.b32.xlu0 %v4969_v21, %s5631_s11 }
 0x1a2   : > { %v1975_v27 = vsel %vm1944_vm9, %v1942_v37, %v4962_v32  ;;  %v1976_v60 = vsel %vm1944_vm9, %v1943_v35, %v4963_v34  ;;  %4289 = vmatprep.mubr.msk.bf16.mxu0 %vm2013_vm10, %v1991_v13  ;;  %v2681_v46 = vld [vmem:[#allocation3 + $0x1a1] sm:$0xff] }
 0x1a3   : > { %v1992_v45 = vpack.c.bf16 %v1976_v60, %v1975_v27  ;;  %v4979_v16 = vpack.i.bf16 %v2681_v46, %v2680_v20  ;;  %v2713_v6 = vld [vmem:[#allocation3 + $0x1a2] sm:$0xff] }
 0x1a4   : > { %v4984_v1 = vpack.i.bf16 %v2713_v6, %v2712_v47 }
 0x1a5   : > { %4290 = vmatmul.mubr.msk.bf16.gmra.mxu0 %vm2013_vm10, %v1992_v45  ;;  %4980 = vrot.lane.b32.xlu1 %v4979_v16, %s5637_s23 }
 0x1a9   : > { %4985 = vrot.lane.b32.xlu1 %v4984_v1, %s5638_s26 }
 0x225   : > { %v4263_v15 = vpop.f32.mrf.mxu0 }
 0x226   : > { %v2236_v57 = vmul.f32 %v4263_v15, %v7386_v44 }
 0x227   : > { %v2100_v39 = vpop.f32.mrf.mxu0 }
 0x228   : > { %v2275_v62 = vadd.f32 %v7391_v56, %v2236_v57  ;;  %v2234_v58 = vmul.f32 %v7386_v44, %v2100_v39 }
 0x229   : > { %v4264_v10 = vpop.f32.mrf.mxu0 }
 0x22a   : > { %v2307_v4 = vmax.f32 %v2275_v62, 0.0  ;;  %v2273_v29 = vadd.f32 %v7391_v56, %v2234_v58  ;;  %v2237_v7 = vmul.f32 %v4264_v10, %v7386_v44 }
 0x22b   : > { %v2103_v12 = vpop.f32.mrf.mxu0 }
 0x22c   : > { %2395 = vst.msk [vmem:[#allocation3 + $0x31] sm:$0xff] %vm1746_vm2, %v2307_v4  ;;  %v2305_v28 = vmax.f32 %v2273_v29, 0.0  ;;  %v2276_v63 = vadd.f32 %v7391_v56, %v2237_v7  ;;  %v2235_v26 = vmul.f32 %v7386_v44, %v2103_v12 }
 0x22d   : > { %v4267_v33 = vpop.f32.mrf.mxu0 }
 0x22e   : > { %2393 = vst.msk [vmem:[#allocation3 + $0x19] sm:$0xff] %vm1746_vm2, %v2305_v28  ;;  %v2308_v53 = vmax.f32 %v2276_v63, 0.0  ;;  %v2274_v51 = vadd.f32 %v7391_v56, %v2235_v26  ;;  %v2240_v52 = vmul.f32 %v4267_v33, %v7386_v44 }
 0x22f   : > { %v2116_v22 = vpop.f32.mrf.mxu0 }
 0x230   : > { %2396 = vst.msk [vmem:[#allocation3 + $0x39] sm:$0xff] %vm1746_vm2, %v2308_v53  ;;  %v2306_v23 = vmax.f32 %v2274_v51, 0.0  ;;  %v2279_v5 = vadd.f32 %v7391_v56, %v2240_v52  ;;  %v2238_v59 = vmul.f32 %v7386_v44, %v2116_v22 }
 0x231   : > { %v4268_v14 = vpop.f32.mrf.mxu0 }
 0x232   : > { %2394 = vst.msk [vmem:[#allocation3 + $0x21] sm:$0xff] %vm1746_vm2, %v2306_v23  ;;  %v2311_v61 = vmax.f32 %v2279_v5, 0.0  ;;  %v2277_v25 = vadd.f32 %v7391_v56, %v2238_v59  ;;  %v2241_v24 = vmul.f32 %v4268_v14, %v7386_v44 }
 0x233   : > { %v2119_v19 = vpop.f32.mrf.mxu0  ;;  %v2523_v17 = vld [vmem:[#allocation3 + $0x30] sm:$0xff] }
 0x234   : > { %2399 = vst.msk [vmem:[#allocation3 + $0x61] sm:$0xff] %vm1746_vm2, %v2311_v61  ;;  %v2309_v30 = vmax.f32 %v2277_v25, 0.0  ;;  %v2280_v3 = vadd.f32 %v7391_v56, %v2241_v24  ;;  %v2239_v41 = vmul.f32 %v7386_v44, %v2119_v19  ;;  %v2461_v37 = vld [vmem:[#allocation3 + $0x31] sm:$0xff] }
 0x235   : > { %v4271_v50 = vpop.f32.mrf.mxu0  ;;  %v2459_v11 = vld [vmem:[#allocation3 + $0x19] sm:$0xff] }
 0x236   : > { %2397 = vst.msk [vmem:[#allocation3 + $0x49] sm:$0xff] %vm1746_vm2, %v2309_v30  ;;  %v2312_v49 = vmax.f32 %v2280_v3, 0.0  ;;  %v2278_v8 = vadd.f32 %v7391_v56, %v2239_v41  ;;  %v2244_v55 = vmul.f32 %v4271_v50, %v7386_v44  ;;  %v2521_v4 = vld [vmem:[#allocation3 + $0x18] sm:$0xff] }
 0x237   : > { %v2132_v38 = vpop.f32.mrf.mxu0  ;;  %v2524_v48 = vld [vmem:[#allocation3 + $0x38] sm:$0xff] }
 0x238   : > { %v2462_v9 = vld [vmem:[#allocation3 + $0x39] sm:$0xff]  ;;  %2400 = vst.msk [vmem:[#allocation3 + $0x69] sm:$0xff] %vm1746_vm2, %v2312_v49  ;;  %v2310_v18 = vmax.f32 %v2278_v8, 0.0  ;;  %v2283_v34 = vadd.f32 %v7391_v56, %v2244_v55  ;;  %v2242_v32 = vmul.f32 %v7386_v44, %v2132_v38  ;;  %v4999_v13 = vpack.i.bf16 %v2524_v48, %v2523_v17 }
 0x239   : > { %v4272_v35 = vpop.f32.mrf.mxu0  ;;  %v4989_v27 = vpack.i.bf16 %v2462_v9, %v2461_v37  ;;  %v2460_v60 = vld [vmem:[#allocation3 + $0x21] sm:$0xff]  ;;  %v2493_v40 = vld [vmem:[#allocation3 + $0x32] sm:$0xff] }
 0x23a   : > { %2398 = vst.msk [vmem:[#allocation3 + $0x51] sm:$0xff] %vm1746_vm2, %v2310_v18  ;;  %v2315_v45 = vmax.f32 %v2283_v34, 0.0  ;;  %v2281_v31 = vadd.f32 %v7391_v56, %v2242_v32  ;;  %v2245_v42 = vmul.f32 %v4272_v35, %v7386_v44  ;;  %5000 = vrot.lane.b32.xlu1 %v4999_v13, %s5633_s13  ;;  %v2494_v43 = vld [vmem:[#allocation3 + $0x3a] sm:$0xff]  ;;  %v5004_v16 = vpack.i.bf16 %v2460_v60, %v2459_v11  ;;  %v2492_v47 = vld [vmem:[#allocation3 + $0x22] sm:$0xff] }
 0x23b   : > { %4990 = vrot.lane.b32.xlu0 %v4989_v27, %s5629_s9  ;;  %v2135_v2 = vpop.f32.mrf.mxu0  ;;  %v4994_v54 = vpack.i.bf16 %v2494_v43, %v2493_v40  ;;  %v2491_v21 = vld [vmem:[#allocation3 + $0x1a] sm:$0xff] }
 0x23c   : > { %2403 = vst.msk [vmem:[#allocation3 + $0x91] sm:$0xff] %vm1746_vm2, %v2315_v45  ;;  %v2313_v36 = vmax.f32 %v2281_v31, 0.0  ;;  %v2284_v20 = vadd.f32 %v7391_v56, %v2245_v42  ;;  %v2243_v46 = vmul.f32 %v7386_v44, %v2135_v2  ;;  %v2522_v57 = vld [vmem:[#allocation3 + $0x20] sm:$0xff]  ;;  %v5009_v29 = vpack.i.bf16 %v2492_v47, %v2491_v21 }
 0x23d   : > { %v4275_v0 = vpop.f32.mrf.mxu0  ;;  %v5014_v12 = vpack.i.bf16 %v2522_v57, %v2521_v4  ;;  %v2527_v52 = vld [vmem:[#allocation3 + $0x60] sm:$0xff]  ;;  %v2463_v8 = vld [vmem:[#allocation3 + $0x49] sm:$0xff] }
 0x23e   : > { %2401 = vst.msk [vmem:[#allocation3 + $0x79] sm:$0xff] %vm1746_vm2, %v2313_v36  ;;  %v2316_v6 = vmax.f32 %v2284_v20, 0.0  ;;  %v2282_v1 = vadd.f32 %v7391_v56, %v2243_v46  ;;  %v2248_v15 = vmul.f32 %v4275_v0, %v7386_v44  ;;  %5005 = vrot.lane.b32.xlu1 %v5004_v16, %s5629_s9  ;;  %v2465_v14 = vld [vmem:[#allocation3 + $0x61] sm:$0xff] }
 0x23f   : > { %4995 = vrot.lane.b32.xlu0 %v4994_v54, %s5631_s11  ;;  %v2148_v39 = vpop.f32.mrf.mxu0  ;;  %v2528_v28 = vld [vmem:[#allocation3 + $0x68] sm:$0xff] }
 0x240   : > { %2404 = vst.msk [vmem:[#allocation3 + $0x99] sm:$0xff] %vm1746_vm2, %v2316_v6  ;;  %v2314_v62 = vmax.f32 %v2282_v1, 0.0  ;;  %v2287_v58 = vadd.f32 %v7391_v56, %v2248_v15  ;;  %v2246_v10 = vmul.f32 %v7386_v44, %v2148_v39  ;;  %v2466_v53 = vld [vmem:[#allocation3 + $0x69] sm:$0xff]  ;;  %v5029_v59 = vpack.i.bf16 %v2528_v28, %v2527_v52 }
 0x241   : > { %v4276_v7 = vpop.f32.mrf.mxu0  ;;  %v5019_v25 = vpack.i.bf16 %v2466_v53, %v2465_v14  ;;  %v2464_v24 = vld [vmem:[#allocation3 + $0x51] sm:$0xff]  ;;  %v2497_v41 = vld [vmem:[#allocation3 + $0x62] sm:$0xff] }
 0x242   : > { %2402 = vst.msk [vmem:[#allocation3 + $0x81] sm:$0xff] %vm1746_vm2, %v2314_v62  ;;  %v2319_v63 = vmax.f32 %v2287_v58, 0.0  ;;  %v2285_v26 = vadd.f32 %v7391_v56, %v2246_v10  ;;  %v2249_v33 = vmul.f32 %v4276_v7, %v7386_v44  ;;  %5010 = vrot.lane.b32.xlu1 %v5009_v29, %s5631_s11  ;;  %v2498_v50 = vld [vmem:[#allocation3 + $0x6a] sm:$0xff]  ;;  %v5034_v48 = vpack.i.bf16 %v2464_v24, %v2463_v8  ;;  %v2496_v32 = vld [vmem:[#allocation3 + $0x52] sm:$0xff] }
 0x243   : > { %5015 = vrot.lane.b32.xlu0 %v5014_v12, %s5633_s13  ;;  %v2151_v51 = vpop.f32.mrf.mxu0  ;;  %v5024_v18 = vpack.i.bf16 %v2498_v50, %v2497_v41  ;;  %v2495_v34 = vld [vmem:[#allocation3 + $0x4a] sm:$0xff] }
 0x244   : > { %2407 = vst.msk [vmem:[#allocation3 + $0xc1] sm:$0xff] %vm1746_vm2, %v2319_v63  ;;  %v2317_v22 = vmax.f32 %v2285_v26, 0.0  ;;  %v2288_v23 = vadd.f32 %v7391_v56, %v2249_v33  ;;  %v2247_v5 = vmul.f32 %v7386_v44, %v2151_v51  ;;  %v2526_v27 = vld [vmem:[#allocation3 + $0x50] sm:$0xff]  ;;  %v2525_v40 = vld [vmem:[#allocation3 + $0x48] sm:$0xff]  ;;  %v5039_v43 = vpack.i.bf16 %v2496_v32, %v2495_v34 }
 0x245   : > { %v4279_v61 = vpop.f32.mrf.mxu0  ;;  %v5044_v11 = vpack.i.bf16 %v2526_v27, %v2525_v40  ;;  %v7466_v21 = vld [vmem:[#allocation3 + $0x90] sm:$0xff]  ;;  %v2467_v63 = vld [vmem:[#allocation3 + $0x79] sm:$0xff] }
 0x246   : > { %2405 = vst.msk [vmem:[#allocation3 + $0xa9] sm:$0xff] %vm1746_vm2, %v2317_v22  ;;  %v2320_v19 = vmax.f32 %v2288_v23, 0.0  ;;  %v2286_v30 = vadd.f32 %v7391_v56, %v2247_v5  ;;  %v2252_v3 = vmul.f32 %v4279_v61, %v7386_v44  ;;  %5030 = vrot.lane.b32.xlu1 %v5029_v59, %s5633_s13  ;;  %v2469_v57 = vld [vmem:[#allocation3 + $0x91] sm:$0xff] }
 0x247   : > { %5020 = vrot.lane.b32.xlu0 %v5019_v25, %s5629_s9  ;;  %v2164_v49 = vpop.f32.mrf.mxu0  ;;  %v7459_v36 = vld [vmem:[#allocation3 + $0x98] sm:$0xff] }
 0x248   : > { %2408 = vst.msk [vmem:[#allocation3 + $0xc9] sm:$0xff] %vm1746_vm2, %v2320_v19  ;;  %v2318_v55 = vmax.f32 %v2286_v30, 0.0  ;;  %v2291_v38 = vadd.f32 %v7391_v56, %v2252_v3  ;;  %v2250_v17 = vmul.f32 %v7386_v44, %v2164_v49  ;;  %v2470_v0 = vld [vmem:[#allocation3 + $0x99] sm:$0xff]  ;;  %v7473_v15 = vpack.i.bf16 %v7459_v36, %v7466_v21 }
 0x249   : > { %v4280_v9 = vpop.f32.mrf.mxu0  ;;  %v7475_v62 = vpack.i.bf16 %v2470_v0, %v2469_v57  ;;  %v2468_v58 = vld [vmem:[#allocation3 + $0x81] sm:$0xff]  ;;  %v2501_v7 = vld [vmem:[#allocation3 + $0x92] sm:$0xff] }
 0x24a   : > { %2406 = vst.msk [vmem:[#allocation3 + $0xb1] sm:$0xff] %vm1746_vm2, %v2318_v55  ;;  %v2323_v13 = vmax.f32 %v2291_v38, 0.0  ;;  %v2289_v37 = vadd.f32 %v7391_v56, %v2250_v17  ;;  %v2253_v35 = vmul.f32 %v4280_v9, %v7386_v44  ;;  %5035 = vrot.lane.b32.xlu1 %v5034_v48, %s5629_s9  ;;  %v2502_v12 = vld [vmem:[#allocation3 + $0x9a] sm:$0xff]  ;;  %v7487_v51 = vpack.i.bf16 %v2468_v58, %v2467_v63  ;;  %v2500_v23 = vld [vmem:[#allocation3 + $0x82] sm:$0xff] }
 0x24b   : > { %5025 = vrot.lane.b32.xlu0 %v5024_v18, %s5631_s11  ;;  %v2167_v60 = vpop.f32.mrf.mxu0  ;;  %v7489_v52 = vpack.i.bf16 %v2502_v12, %v2501_v7  ;;  %v2499_v22 = vld [vmem:[#allocation3 + $0x7a] sm:$0xff] }
 0x24c   : > { %2411 = vst.msk [vmem:[#allocation3 + $0xf1] sm:$0xff] %vm1746_vm2, %v2323_v13  ;;  %v2321_v45 = vmax.f32 %v2289_v37, 0.0  ;;  %v2292_v31 = vadd.f32 %v7391_v56, %v2253_v35  ;;  %v2251_v42 = vmul.f32 %v7386_v44, %v2167_v60  ;;  %v7498_v61 = vpack.i.bf16 %v2500_v23, %v2499_v22  ;;  %v2535_v3 = vld [vmem:[#allocation3 + $0xc0] sm:$0xff]  ;;  %v7521_v35 = vld [vmem:[#allocation3 + $0x78] sm:$0xff] }
 0x24d   : > { %v4283_v2 = vpop.f32.mrf.mxu0  ;;  %v7514_v9 = vld [vmem:[#allocation3 + $0x80] sm:$0xff]  ;;  %v2471_v34 = vld [vmem:[#allocation3 + $0xa9] sm:$0xff] }
 0x24e   : > { %2409 = vst.msk [vmem:[#allocation3 + $0xd9] sm:$0xff] %vm1746_vm2, %v2321_v45  ;;  %v2324_v20 = vmax.f32 %v2292_v31, 0.0  ;;  %v2290_v46 = vadd.f32 %v7391_v56, %v2251_v42  ;;  %v2256_v16 = vmul.f32 %v4283_v2, %v7386_v44  ;;  %5040 = vrot.lane.b32.xlu1 %v5039_v43, %s5631_s11  ;;  %v7527_v60 = vpack.i.bf16 %v7514_v9, %v7521_v35 }
 0x24f   : > { %5045 = vrot.lane.b32.xlu0 %v5044_v11, %s5633_s13  ;;  %v2180_v54 = vpop.f32.mrf.mxu0  ;;  %v2536_v24 = vld [vmem:[#allocation3 + $0xc8] sm:$0xff] }
 0x250   : > { %2412 = vst.msk [vmem:[#allocation3 + $0xf9] sm:$0xff] %vm1746_vm2, %v2324_v20  ;;  %v2322_v47 = vmax.f32 %v2290_v46, 0.0  ;;  %v2295_v6 = vadd.f32 %v7391_v56, %v2256_v16  ;;  %v2254_v1 = vmul.f32 %v7386_v44, %v2180_v54  ;;  %v7508_v49 = vpack.i.bf16 %v2536_v24, %v2535_v3  ;;  %v2474_v43 = vld [vmem:[#allocation3 + $0xc9] sm:$0xff]  ;;  %v2473_v11 = vld [vmem:[#allocation3 + $0xc1] sm:$0xff] }
 0x251   : > { %v4284_v39 = vpop.f32.mrf.mxu0  ;;  %v2472_v55 = vld [vmem:[#allocation3 + $0xb1] sm:$0xff]  ;;  %v5089_v16 = vpack.i.bf16 %v2474_v43, %v2473_v11 }
 0x252   : > { %2410 = vst.msk [vmem:[#allocation3 + $0xe1] sm:$0xff] %vm1746_vm2, %v2322_v47  ;;  %v2327_v10 = vmax.f32 %v2295_v6, 0.0  ;;  %v2293_v4 = vadd.f32 %v7391_v56, %v2254_v1  ;;  %v2257_v29 = vmul.f32 %v4284_v39, %v7386_v44  ;;  %5060 = vrot.lane.b32.xlu1 %v7473_v15, %s5633_s13  ;;  %v7523_v27 = vpack.i.bf16 %v2472_v55, %v2471_v34  ;;  %v2503_v45 = vld [vmem:[#allocation3 + $0xaa] sm:$0xff]  ;;  %v2504_v31 = vld [vmem:[#allocation3 + $0xb2] sm:$0xff]  ;;  %v2505_v47 = vld [vmem:[#allocation3 + $0xc2] sm:$0xff] }
 0x253   : > { %5050 = vrot.lane.b32.xlu0 %v7475_v62, %s5629_s9  ;;  %v2183_v28 = vpop.f32.mrf.mxu0  ;;  %v7536_v20 = vpack.i.bf16 %v2504_v31, %v2503_v45  ;;  %v2506_v6 = vld [vmem:[#allocation3 + $0xca] sm:$0xff] }
 0x254   : > { %2415 = vst.msk [vmem:[#allocation3 + $0x121] sm:$0xff] %vm1746_vm2, %v2327_v10  ;;  %v2325_v26 = vmax.f32 %v2293_v4, 0.0  ;;  %v2296_v33 = vadd.f32 %v7391_v56, %v2257_v29  ;;  %v2255_v53 = vmul.f32 %v7386_v44, %v2183_v28  ;;  %v2539_v57 = vld [vmem:[#allocation3 + $0xf0] sm:$0xff]  ;;  %v5094_v29 = vpack.i.bf16 %v2506_v6, %v2505_v47  ;;  %v7584_v34 = vld [vmem:[#allocation3 + $0xa8] sm:$0xff] }
 0x256   : > { %2413 = vst.msk [vmem:[#allocation3 + $0x109] sm:$0xff] %vm1746_vm2, %v2325_v26  ;;  %v2328_v5 = vmax.f32 %v2296_v33, 0.0  ;;  %v2294_v59 = vadd.f32 %v7391_v56, %v2255_v53  ;;  %5075 = vrot.lane.b32.xlu1 %v7487_v51, %s5629_s9  ;;  %v2475_v33 = vld [vmem:[#allocation3 + $0xd9] sm:$0xff] }
 0x257   : > { %5055 = vrot.lane.b32.xlu0 %v7489_v52, %s5631_s11  ;;  %v2540_v0 = vld [vmem:[#allocation3 + $0xf8] sm:$0xff] }
 0x258   : > { %2416 = vst.msk [vmem:[#allocation3 + $0x129] sm:$0xff] %vm1746_vm2, %v2328_v5  ;;  %v2326_v14 = vmax.f32 %v2294_v59, 0.0  ;;  %v5174_v10 = vpack.i.bf16 %v2540_v0, %v2539_v57  ;;  %v2478_v6 = vld [vmem:[#allocation3 + $0xf9] sm:$0xff]  ;;  %v2477_v57 = vld [vmem:[#allocation3 + $0xf1] sm:$0xff] }
 0x259   : > { %v4287_v25 = vpop.f32.mrf.mxu0  ;;  %v2476_v7 = vld [vmem:[#allocation3 + $0xe1] sm:$0xff] }
 0x25a   : > { %2414 = vst.msk [vmem:[#allocation3 + $0x111] sm:$0xff] %vm1746_vm2, %v2326_v14  ;;  %v2260_v19 = vmul.f32 %v4287_v25, %v7386_v44  ;;  %5080 = vrot.lane.b32.xlu1 %v7498_v61, %s5631_s11  ;;  %v7552_v5 = vpack.i.bf16 %v2476_v7, %v2475_v33  ;;  %v2507_v59 = vld [vmem:[#allocation3 + $0xda] sm:$0xff]  ;;  %v2508_v14 = vld [vmem:[#allocation3 + $0xe2] sm:$0xff]  ;;  %v7626_v33 = vpop.permute.xlu1 %4975 }
 0x25b   : > { %5065 = vrot.lane.b32.xlu0 %v7475_v62, %s5635_s21  ;;  %v2196_v30 = vpop.f32.mrf.mxu0  ;;  %v2543_v3 = vld [vmem:[#allocation3 + $0x120] sm:$0xff] }
 0x25c   : > { %v2299_v41 = vadd.f32 %v7391_v56, %v2260_v19  ;;  %v2258_v50 = vmul.f32 %v7386_v44, %v2196_v30  ;;  %v7560_v30 = vpack.i.bf16 %v2508_v14, %v2507_v59  ;;  %v7639_v14 = vpop.permute.xlu0 %4965 }
 0x25d   : > { %v4288_v8 = vpop.f32.mrf.mxu0  ;;  %8626 = vst [vmem:[#allocation15_spill] sm:$0xff] %v7639_v14 }
 0x25e   : > { %v2331_v38 = vmax.f32 %v2299_v41, 0.0  ;;  %v2297_v17 = vadd.f32 %v7391_v56, %v2258_v50  ;;  %v2261_v48 = vmul.f32 %v4288_v8, %v7386_v44  ;;  %5100 = vrot.lane.b32.xlu1 %v7508_v49, %s5633_s13  ;;  %v2479_v50 = vld [vmem:[#allocation3 + $0x109] sm:$0xff]  ;;  %v7636_v59 = vpop.permute.xlu1 %4980 }
 0x25f   : > { %5070 = vrot.lane.b32.xlu0 %v7489_v52, %s5639_s8  ;;  %v2199_v18 = vpop.f32.mrf.mxu0 }
 0x260   : > { %2419 = vst.msk [vmem:[#allocation3 + $0x151] sm:$0xff] %vm1746_vm2, %v2331_v38  ;;  %v2329_v32 = vmax.f32 %v2297_v17, 0.0  ;;  %v2300_v13 = vadd.f32 %v7391_v56, %v2261_v48  ;;  %v2259_v37 = vmul.f32 %v7386_v44, %v2199_v18  ;;  %v7581_v18 = vld [vmem:[#allocation3 + $0xb0] sm:$0xff] }
 0x261   : > { %v2480_v41 = vld [vmem:[#allocation3 + $0x111] sm:$0xff] }
 0x262   : > { %2417 = vst.msk [vmem:[#allocation3 + $0x139] sm:$0xff] %vm1746_vm2, %v2329_v32  ;;  %v2332_v42 = vmax.f32 %v2300_v13, 0.0  ;;  %v2298_v40 = vadd.f32 %v7391_v56, %v2259_v37  ;;  %5130 = vrot.lane.b32.xlu1 %v7523_v27, %s5629_s9  ;;  %v7572_v8 = vpack.i.bf16 %v2480_v41, %v2479_v50  ;;  %v2511_v55 = vld [vmem:[#allocation3 + $0x10a] sm:$0xff]  ;;  %v2512_v38 = vld [vmem:[#allocation3 + $0x112] sm:$0xff]  ;;  %v5139_v13 = vpack.i.bf16 %v7581_v18, %v7584_v34  ;;  %v2481_v50 = vld [vmem:[#allocation3 + $0x121] sm:$0xff] }
 0x263   : > { %5085 = vrot.lane.b32.xlu0 %v7527_v60, %s5633_s13  ;;  %v7577_v17 = vpack.i.bf16 %v2512_v38, %v2511_v55 }
 0x264   : > { %2420 = vst.msk [vmem:[#allocation3 + $0x159] sm:$0xff] %vm1746_vm2, %v2332_v42  ;;  %v2330_v2 = vmax.f32 %v2298_v40, 0.0 }
 0x265   : > { %v4291_v46 = vpop.f32.mrf.mxu0 }
 0x266   : > { %2418 = vst.msk [vmem:[#allocation3 + $0x141] sm:$0xff] %vm1746_vm2, %v2330_v2  ;;  %v2264_v54 = vmul.f32 %v4291_v46, %v7386_v44  ;;  %5135 = vrot.lane.b32.xlu1 %v7536_v20, %s5631_s11 }
 0x267   : > { %5090 = vrot.lane.b32.xlu0 %v5089_v16, %s5629_s9  ;;  %v2212_v1 = vpop.f32.mrf.mxu0  ;;  %v2579_v45 = vld [vmem:[#allocation3 + $0x151] sm:$0xff] }
 0x268   : > { %v2303_v39 = vadd.f32 %v7391_v56, %v2264_v54  ;;  %v2262_v58 = vmul.f32 %v7386_v44, %v2212_v1 }
 0x269   : > { %v4292_v4 = vpop.f32.mrf.mxu0  ;;  %v2483_v11 = vld [vmem:[#allocation3 + $0x139] sm:$0xff] }
 0x26a   : > { %v2335_v12 = vmax.f32 %v2303_v39, 0.0  ;;  %v2301_v28 = vadd.f32 %v7391_v56, %v2262_v58  ;;  %v2265_v63 = vmul.f32 %v4292_v4, %v7386_v44  ;;  %5175 = vrot.lane.b32.xlu1 %v5174_v10, %s5633_s13  ;;  %v7616_v58 = vpack.i.bf16 %v2478_v6, %v2477_v57  ;;  %v2509_v4 = vld [vmem:[#allocation3 + $0xf2] sm:$0xff] }
 0x26b   : > { %5095 = vrot.lane.b32.xlu0 %v5094_v29, %s5631_s11  ;;  %v2215_v26 = vpop.f32.mrf.mxu0  ;;  %v2548_v48 = vld [vmem:[#allocation3 + $0x158] sm:$0xff] }
 0x26c   : > { %2423 = vst.msk [vmem:[#allocation3 + $0x181] sm:$0xff] %vm1746_vm2, %v2335_v12  ;;  %v2333_v53 = vmax.f32 %v2301_v28, 0.0  ;;  %v2304_v22 = vadd.f32 %v7391_v56, %v2265_v63  ;;  %v2263_v23 = vmul.f32 %v7386_v44, %v2215_v26  ;;  %v2544_v44 = vld [vmem:[#allocation3 + $0x128] sm:$0xff]  ;;  %v2580_v37 = vld [vmem:[#allocation3 + $0x159] sm:$0xff] }
 0x26d   : > { %v7593_v31 = vpack.i.bf16 %v2580_v37, %v2579_v45  ;;  %v2611_v42 = vld [vmem:[#allocation3 + $0x152] sm:$0xff]  ;;  %v2612_v40 = vld [vmem:[#allocation3 + $0x15a] sm:$0xff]  ;;  %v2516_v0 = vld [vmem:[#allocation3 + $0x142] sm:$0xff] }
 0x26e   : > { %2421 = vst.msk [vmem:[#allocation3 + $0x169] sm:$0xff] %vm1746_vm2, %v2333_v53  ;;  %v2336_v25 = vmax.f32 %v2304_v22, 0.0  ;;  %v2302_v24 = vadd.f32 %v7391_v56, %v2263_v23  ;;  %5180 = vrot.lane.b32.xlu1 %v7552_v5, %s5629_s9  ;;  %v7566_v56 = vpack.i.bf16 %v2544_v44, %v2543_v3  ;;  %v7599_v43 = vpack.i.bf16 %v2612_v40, %v2611_v42  ;;  %v2484_v2 = vld [vmem:[#allocation3 + $0x141] sm:$0xff]  ;;  %v7630_v53 = vld [vmem:[#allocation3 + $0xd8] sm:$0xff]  ;;  %v2482_v44 = vld [vmem:[#allocation3 + $0x129] sm:$0xff] }
 0x26f   : > { %5105 = vrot.lane.b32.xlu0 %v5089_v16, %s5635_s21  ;;  %v7605_v46 = vpack.i.bf16 %v2484_v2, %v2483_v11  ;;  %v2514_v37 = vld [vmem:[#allocation3 + $0x12a] sm:$0xff] }
 0x270   : > { %2424 = vst.msk [vmem:[#allocation3 + $0x189] sm:$0xff] %vm1746_vm2, %v2336_v25  ;;  %v2334_v19 = vmax.f32 %v2302_v24, 0.0  ;;  %v7643_v25 = vpop.permute.xlu1 %4985  ;;  %v7647_v24 = vpop.permute.xlu0 %4970  ;;  %v7668_v2 = vld [vmem:[#allocation3 + $0x110] sm:$0xff] }
 0x271   : > { %8627 = vst [vmem:[#allocation18_spill] sm:$0xff] %v7647_v24 }
 0x272   : > { %2422 = vst.msk [vmem:[#allocation3 + $0x171] sm:$0xff] %vm1746_vm2, %v2334_v19  ;;  %5185 = vrot.lane.b32.xlu1 %v7560_v30, %s5631_s11 }
 0x273   : > { %5110 = vrot.lane.b32.xlu0 %v5094_v29, %s5639_s8  ;;  %v2551_v1 = vld [vmem:[#allocation3 + $0x180] sm:$0xff] }
 0x274   : > { %v2583_v7 = vld [vmem:[#allocation3 + $0x181] sm:$0xff] }
 0x275   : > { %v2487_v3 = vld [vmem:[#allocation3 + $0x169] sm:$0xff] }
 0x276   : > { %5220 = vrot.lane.b32.xlu1 %v7566_v56, %s5633_s13 }
 0x277   : > { %5115 = vrot.lane.b32.xlu0 %v7508_v49, %s5636_s22  ;;  %v2547_v49 = vld [vmem:[#allocation3 + $0x150] sm:$0xff]  ;;  %v2552_v47 = vld [vmem:[#allocation3 + $0x188] sm:$0xff] }
 0x278   : > { %v7586_v32 = vpack.i.bf16 %v2548_v48, %v2547_v49  ;;  %v5284_v39 = vpack.i.bf16 %v2552_v47, %v2551_v1  ;;  %v2584_v10 = vld [vmem:[#allocation3 + $0x189] sm:$0xff]  ;;  %v7656_v48 = vpack.i.bf16 %v2482_v44, %v2481_v50 }
 0x279   : > { %v5289_v12 = vpack.i.bf16 %v2584_v10, %v2583_v7  ;;  %v2615_v63 = vld [vmem:[#allocation3 + $0x182] sm:$0xff]  ;;  %v2616_v26 = vld [vmem:[#allocation3 + $0x18a] sm:$0xff] }
 0x27a   : > { %5225 = vrot.lane.b32.xlu1 %v7572_v8, %s5629_s9  ;;  %v5294_v22 = vpack.i.bf16 %v2616_v26, %v2615_v63  ;;  %v2488_v19 = vld [vmem:[#allocation3 + $0x171] sm:$0xff]  ;;  %v7703_v7 = vld [vmem:[#allocation3 + $0x140] sm:$0xff] }
 0x27b   : > { %5120 = vrot.lane.b32.xlu0 %v5089_v16, %s5637_s23  ;;  %v2515_v16 = vld [vmem:[#allocation3 + $0x13a] sm:$0xff]  ;;  %v5314_v55 = vpack.i.bf16 %v2488_v19, %v2487_v3  ;;  %v2519_v49 = vld [vmem:[#allocation3 + $0x16a] sm:$0xff] }
 0x27c   : > { %v7610_v54 = vpack.i.bf16 %v2516_v0, %v2515_v16  ;;  %v7674_v16 = vld [vmem:[#allocation3 + $0x108] sm:$0xff]  ;;  %v7689_v57 = vld [vmem:[#allocation3 + $0x170] sm:$0xff]  ;;  %v7709_v63 = vld [vmem:[#allocation3 + $0x138] sm:$0xff] }
 0x27d   : > { %v7680_v47 = vpack.i.bf16 %v7668_v2, %v7674_v16 }
 0x27e   : > { %5230 = vrot.lane.b32.xlu1 %v7577_v17, %s5631_s11 }
 0x27f   : > { %5125 = vrot.lane.b32.xlu0 %v5094_v29, %s5638_s26  ;;  %v2510_v29 = vld [vmem:[#allocation3 + $0xfa] sm:$0xff] }
 0x280   : > { %v7621_v28 = vpack.i.bf16 %v2510_v29, %v2509_v4 }
 0x282   : > { %5250 = vrot.lane.b32.xlu1 %v7586_v32, %s5633_s13 }
 0x283   : > { %5140 = vrot.lane.b32.xlu0 %v5139_v13, %s5633_s13 }
 0x286   : > { %5255 = vrot.lane.b32.xlu1 %v7593_v31, %s5635_s21 }
 0x287   : > { %5145 = vrot.lane.b32.xlu0 %v7523_v27, %s5635_s21 }
 0x28a   : > { %5260 = vrot.lane.b32.xlu1 %v7599_v43, %s5639_s8 }
 0x28b   : > { %5150 = vrot.lane.b32.xlu0 %v7536_v20, %s5639_s8 }
 0x28e   : > { %5265 = vrot.lane.b32.xlu1 %v7605_v46, %s5629_s9 }
 0x28f   : > { %5155 = vrot.lane.b32.xlu0 %v5139_v13, %s5636_s22  ;;  %v2513_v13 = vld [vmem:[#allocation3 + $0x122] sm:$0xff] }
 0x290   : > { %v7665_v40 = vpack.i.bf16 %v2514_v37, %v2513_v13 }
 0x292   : > { %5270 = vrot.lane.b32.xlu1 %v7610_v54, %s5631_s11 }
 0x293   : > { %5160 = vrot.lane.b32.xlu0 %v7523_v27, %s5637_s23  ;;  %v7624_v27 = vld [vmem:[#allocation3 + $0xe0] sm:$0xff] }
 0x294   : > { %v5189_v23 = vpack.i.bf16 %v7624_v27, %v7630_v53 }
 0x296   : > { %5285 = vrot.lane.b32.xlu1 %v5284_v39, %s5633_s13 }
 0x297   : > { %5165 = vrot.lane.b32.xlu0 %v7616_v58, %s5629_s9 }
 0x29a   : > { %5290 = vrot.lane.b32.xlu1 %v5289_v12, %s5635_s21 }
 0x29b   : > { %5170 = vrot.lane.b32.xlu0 %v7621_v28, %s5631_s11 }
 0x29e   : > { %5295 = vrot.lane.b32.xlu1 %v5294_v22, %s5639_s8 }
 0x29f   : > { %5190 = vrot.lane.b32.xlu0 %v5189_v23, %s5633_s13 }
 0x2a2   : > { %5300 = vrot.lane.b32.xlu1 %v5284_v39, %s5636_s22  ;;  %v7694_v39 = vld [vmem:[#allocation3 + $0x168] sm:$0xff] }
 0x2a3   : > { %5195 = vrot.lane.b32.xlu0 %v5189_v23, %s5636_s22  ;;  %v5344_v4 = vpack.i.bf16 %v7689_v57, %v7694_v39 }
 0x2a6   : > { %5305 = vrot.lane.b32.xlu1 %v5289_v12, %s5637_s23 }
 0x2a7   : > { %5200 = vrot.lane.b32.xlu0 %v7552_v5, %s5637_s23  ;;  %v2520_v5 = vld [vmem:[#allocation3 + $0x172] sm:$0xff] }
 0x2aa   : > { %5310 = vrot.lane.b32.xlu1 %v5294_v22, %s5638_s26  ;;  %v5274_v22 = vpack.i.bf16 %v7703_v7, %v7709_v63 }
 0x2ab   : > { %5205 = vrot.lane.b32.xlu0 %v7560_v30, %s5638_s26  ;;  %v5319_v30 = vpack.i.bf16 %v2520_v5, %v2519_v49 }
 0x2ac   : > { %v7652_v41 = vpop.permute.xlu1 %5000 }
 0x2ad   : > { %8628 = vst [vmem:[#allocation17_spill] sm:$0xff] %v7652_v41  ;;  %v7654_v38 = vpop.permute.xlu0 %4990 }
 0x2ae   : > { %8629 = vst [vmem:[#allocation19_spill] sm:$0xff] %v7654_v38  ;;  %5315 = vrot.lane.b32.xlu1 %v5314_v55, %s5629_s9 }
 0x2af   : > { %5210 = vrot.lane.b32.xlu0 %v7656_v48, %s5629_s9 }
 0x2b0   : > { %v7661_v45 = vpop.permute.xlu1 %5005 }
 0x2b1   : > { %8630 = vst [vmem:[#allocation20_spill] sm:$0xff] %v7661_v45  ;;  %v7663_v42 = vpop.permute.xlu0 %4995 }
 0x2b2   : > { %8631 = vst [vmem:[#allocation21_spill] sm:$0xff] %v7663_v42  ;;  %5320 = vrot.lane.b32.xlu1 %v5319_v30, %s5631_s11 }
 0x2b3   : > { %5215 = vrot.lane.b32.xlu0 %v7665_v40, %s5631_s11 }
 0x2b4   : > { %v7672_v11 = vpop.permute.xlu1 %5010 }
 0x2b5   : > { %8632 = vst [vmem:[#allocation22_spill] sm:$0xff] %v7672_v11  ;;  %v7676_v0 = vpop.permute.xlu0 %5015 }
 0x2b6   : > { %8633 = vst [vmem:[#allocation23_spill] sm:$0xff] %v7676_v0  ;;  %5335 = vrot.lane.b32.xlu1 %v5314_v55, %s5635_s21 }
 0x2b7   : > { %5235 = vrot.lane.b32.xlu0 %v7680_v47, %s5633_s13 }
 0x2b8   : > { %v7685_v6 = vpop.permute.xlu1 %5030 }
 0x2b9   : > { %v7687_v1 = vpop.permute.xlu0 %5020 }
 0x2ba   : > { %5340 = vrot.lane.b32.xlu1 %v5319_v30, %s5639_s8 }
 0x2bb   : > { %5240 = vrot.lane.b32.xlu0 %v7593_v31, %s5629_s9 }
 0x2bc   : > { %v7696_v10 = vpop.permute.xlu1 %5035 }
 0x2bd   : > { %v7700_v29 = vpop.permute.xlu0 %5025 }
 0x2be   : > { %5345 = vrot.lane.b32.xlu1 %v5344_v4, %s5636_s22 }
 0x2bf   : > { %5245 = vrot.lane.b32.xlu0 %v7599_v43, %s5631_s11 }
 0x2c0   : > { %v7707_v12 = vpop.permute.xlu1 %5040 }
 0x2c1   : > { %v7711_v26 = vpop.permute.xlu0 %5045 }
 0x2c2   : > { %8634 = vst [vmem:[#allocation24_spill] sm:$0xff] %v7711_v26  ;;  %5350 = vrot.lane.b32.xlu1 %v5314_v55, %s5637_s23 }
 0x2c3   : > { %5275 = vrot.lane.b32.xlu0 %v5274_v22, %s5633_s13 }
 0x2c4   : > { %v7717_v23 = vpop.permute.xlu1 %5060 }
 0x2c5   : > { %v7719_v19 = vpop.permute.xlu0 %5050 }
 0x2c6   : > { %5355 = vrot.lane.b32.xlu1 %v5319_v30, %s5638_s26  ;;  %v2559_v30 = vld [vmem:[#allocation3 + $0x61] sm:$0xff] }
 0x2c7   : > { %5280 = vrot.lane.b32.xlu0 %v7536_v20, %s5638_s26 }
 0x2c8   : > { %v7724_v44 = vpop.permute.xlu1 %5075 }
 0x2c9   : > { %v7726_v3 = vpop.permute.xlu0 %5055 }
 0x2ca   : > { %5360 = vrot.lane.b32.xlu1 %v7605_v46, %s5635_s21 }
 0x2cb   : > { %5325 = vrot.lane.b32.xlu0 %v5344_v4, %s5633_s13 }
 0x2cc   : > { %v7731_v50 = vpop.permute.xlu1 %5080 }
 0x2cd   : > { %v7733_v55 = vpop.permute.xlu0 %5065  ;;  %v5083_v45 = vunpack.i.h.bf16 %v7731_v50 }
 0x2ce   : > { %5370 = vrot.lane.b32.xlu1 %v7610_v54, %s5639_s8 }
 0x2cf   : > { %5330 = vrot.lane.b32.xlu0 %v7487_v51, %s5635_s21 }
 0x2d0   : > { %v7739_v20 = vpop.permute.xlu1 %5100 }
 0x2d1   : > { %v7741_v49 = vpop.permute.xlu0 %5070 }
 0x2d2   : > { %5380 = vrot.lane.b32.xlu1 %v7586_v32, %s5636_s22 }
 0x2d3   : > { %5365 = vrot.lane.b32.xlu0 %v7498_v61, %s5639_s8 }
 0x2d4   : > { %v7747_v5 = vpop.permute.xlu1 %5130 }
 0x2d5   : > { %v7749_v13 = vpop.permute.xlu0 %5085 }
 0x2d6   : > { %5390 = vrot.lane.b32.xlu1 %v7593_v31, %s5637_s23  ;;  %v2560_v31 = vld [vmem:[#allocation3 + $0x69] sm:$0xff] }
 0x2d7   : > { %5375 = vrot.lane.b32.xlu0 %v7473_v15, %s5636_s22 }
 0x2d8   : > { %v7755_v51 = vpop.permute.xlu1 %5135 }
 0x2d9   : > { %v7757_v37 = vpop.permute.xlu0 %5090 }
 0x2da   : > { %8635 = vst [vmem:[#allocation25_spill] sm:$0xff] %v7757_v37  ;;  %5400 = vrot.lane.b32.xlu1 %v7599_v43, %s5638_s26  ;;  %v7773_v37 = vpack.i.bf16 %v2560_v31, %v2559_v30 }
 0x2db   : > { %5385 = vrot.lane.b32.xlu0 %v7475_v62, %s5637_s23  ;;  %v2591_v62 = vld [vmem:[#allocation3 + $0x62] sm:$0xff] }
 0x2dc   : > { %v7763_v61 = vpop.permute.xlu1 %5175 }
 0x2dd   : > { %8636 = vst [vmem:[#allocation26_spill] sm:$0xff] %v7763_v61  ;;  %v7765_v32 = vpop.permute.xlu0 %5095 }
 0x2de   : > { %8637 = vst [vmem:[#allocation28_spill] sm:$0xff] %v7765_v32  ;;  %5410 = vrot.lane.b32.xlu1 %v7656_v48, %s5635_s21  ;;  %v2592_v32 = vld [vmem:[#allocation3 + $0x6a] sm:$0xff] }
 0x2df   : > { %5395 = vrot.lane.b32.xlu0 %v7489_v52, %s5638_s26  ;;  %v7781_v41 = vpack.i.bf16 %v2592_v32, %v2591_v62  ;;  %v2689_v62 = vld [vmem:[#allocation3 + $0x82] sm:$0xff] }
 0x2e0   : > { %v5181_v15 = vpop.permute.xlu1 %5180 }
 0x2e1   : > { %v7771_v4 = vpop.permute.xlu0 %5105  ;;  %v5183_v43 = vunpack.i.h.bf16 %v5181_v15  ;;  %v5182_v0 = vunpack.i.l.bf16 %v5181_v15 }
 0x2e2   : > { %5420 = vrot.lane.b32.xlu1 %v7665_v40, %s5639_s8 }
 0x2e3   : > { %5405 = vrot.lane.b32.xlu0 %v7773_v37, %s5635_s21  ;;  %v3756_v31 = vsel %vm1746_vm2, %v7630_v53, %v5182_v0  ;;  %v3757_v15 = vsel %vm1746_vm2, %v7624_v27, %v5183_v43  ;;  %v2657_v53 = vld [vmem:[#allocation3 + $0x81] sm:$0xff]  ;;  %v2656_v0 = vld [vmem:[#allocation3 + $0x79] sm:$0xff] }
 0x2e4   : > { %v5186_v24 = vpop.permute.xlu1 %5185  ;;  %v2688_v43 = vld [vmem:[#allocation3 + $0x7a] sm:$0xff] }
 0x2e5   : > { %v7779_v14 = vpop.permute.xlu0 %5110  ;;  %v5188_v52 = vunpack.i.h.bf16 %v5186_v24  ;;  %v5187_v61 = vunpack.i.l.bf16 %v5186_v24 }
 0x2e6   : > { %5430 = vrot.lane.b32.xlu1 %v5274_v22, %s5636_s22 }
 0x2e7   : > { %v7789_v30 = vsel %vm1812_vm5, %v3756_v31, %v5187_v61  ;;  %v7792_v11 = vsel %vm1812_vm5, %v3757_v15, %v5188_v52  ;;  %5415 = vrot.lane.b32.xlu0 %v7781_v41, %s5639_s8  ;;  %v5434_v61 = vpack.i.bf16 %v2657_v53, %v2656_v0  ;;  %v5077_v15 = vunpack.i.l.bf16 %v7724_v44 }
 0x2e8   : > { %8638 = vst [vmem:[#allocation29_spill] sm:$0xff] %v7789_v30  ;;  %8639 = vst [vmem:[#allocation30_spill] sm:$0xff] %v7792_v11  ;;  %v5221_v24 = vpop.permute.xlu1 %5220  ;;  %v2558_v30 = vld [vmem:[#allocation3 + $0x51] sm:$0xff]  ;;  %v5082_v53 = vunpack.i.l.bf16 %v7731_v50 }
 0x2e9   : > { %v7796_v32 = vpop.permute.xlu0 %5115  ;;  %v5223_v42 = vunpack.i.h.bf16 %v5221_v24  ;;  %v5222_v38 = vunpack.i.l.bf16 %v5221_v24  ;;  %v5052_v24 = vunpack.i.l.bf16 %v7719_v19 }
 0x2ea   : > { %5440 = vrot.lane.b32.xlu1 %v7605_v46, %s5637_s23  ;;  %v5078_v46 = vunpack.i.h.bf16 %v7724_v44  ;;  %v2557_v44 = vld [vmem:[#allocation3 + $0x49] sm:$0xff] }
 0x2eb   : > { %5425 = vrot.lane.b32.xlu0 %v7527_v60, %s5636_s22  ;;  %v5444_v60 = vpack.i.bf16 %v2689_v62, %v2688_v43  ;;  %v5053_v43 = vunpack.i.h.bf16 %v7719_v19 }
 0x2ec   : > { %v5226_v27 = vpop.permute.xlu1 %5225  ;;  %v3749_v19 = vsel %vm1746_vm2, %v7514_v9, %v5078_v46  ;;  %v3750_v9 = vsel %vm1746_vm2, %v7466_v21, %v5052_v24  ;;  %v5072_v21 = vunpack.i.l.bf16 %v7741_v49 }
 0x2ed   : > { %v7802_v22 = vpop.permute.xlu0 %5120  ;;  %v5228_v52 = vunpack.i.h.bf16 %v5226_v27  ;;  %v5227_v31 = vunpack.i.l.bf16 %v5226_v27  ;;  %v3751_v46 = vsel %vm1746_vm2, %v7459_v36, %v5053_v43  ;;  %v2623_v43 = vld [vmem:[#allocation3 + $0x68] sm:$0xff] }
 0x2ee   : > { %5450 = vrot.lane.b32.xlu1 %v7610_v54, %s5638_s26 }
 0x2ef   : > { %5435 = vrot.lane.b32.xlu0 %v5434_v61, %s5637_s23  ;;  %v3760_v54 = vsel %vm1746_vm2, %v7674_v16, %v5227_v31  ;;  %v3761_v61 = vsel %vm1746_vm2, %v7668_v2, %v5228_v52  ;;  %v3748_v16 = vsel %vm1746_vm2, %v7521_v35, %v5077_v15  ;;  %v2589_v52 = vld [vmem:[#allocation3 + $0x4a] sm:$0xff]  ;;  %v5062_v15 = vunpack.i.l.bf16 %v7717_v23 }
 0x2f0   : > { %v5231_v11 = vpop.permute.xlu1 %5230 }
 0x2f1   : > { %v7811_v0 = vpop.permute.xlu0 %5125  ;;  %v5233_v26 = vunpack.i.h.bf16 %v5231_v11  ;;  %v5232_v27 = vunpack.i.l.bf16 %v5231_v11  ;;  %v7823_v11 = vpack.i.bf16 %v2558_v30, %v2557_v44  ;;  %v5057_v30 = vunpack.i.l.bf16 %v7726_v3 }
 0x2f2   : > { %5460 = vrot.lane.b32.xlu1 %v7572_v8, %s5635_s21  ;;  %v2590_v8 = vld [vmem:[#allocation3 + $0x52] sm:$0xff]  ;;  %v5067_v44 = vunpack.i.l.bf16 %v7733_v55 }
 0x2f3   : > { %v3792_v50 = vsel %vm1812_vm5, %v3760_v54, %v5232_v27  ;;  %v3793_v62 = vsel %vm1812_vm5, %v3761_v61, %v5233_v26  ;;  %5445 = vrot.lane.b32.xlu0 %v5444_v60, %s5638_s26  ;;  %v5058_v26 = vunpack.i.h.bf16 %v7726_v3  ;;  %v3780_v60 = vsel %vm1812_vm5, %v3748_v16, %v5082_v53 }
 0x2f4   : > { %v7828_v2 = vpop.permute.xlu1 %5250  ;;  %v7831_v31 = vsel %vm1878_vm7, %v3792_v50, %v5222_v38  ;;  %v7834_v27 = vsel %vm1878_vm7, %v3793_v62, %v5223_v42  ;;  %v3781_v54 = vsel %vm1812_vm5, %v3749_v19, %v5083_v45  ;;  %v5063_v38 = vunpack.i.h.bf16 %v7717_v23 }
 0x2f5   : > { %v5141_v35 = vpop.permute.xlu0 %5140  ;;  %v7848_v3 = vpack.i.bf16 %v2590_v8, %v2589_v52  ;;  %v3812_v45 = vsel %vm1878_vm7, %v3780_v60, %v5062_v15  ;;  %v3783_v23 = vsel %vm1812_vm5, %v3751_v46, %v5058_v26  ;;  %v5068_v16 = vunpack.i.h.bf16 %v7733_v55 }
 0x2f6   : > { %5470 = vrot.lane.b32.xlu1 %v7577_v17, %s5639_s8  ;;  %v5143_v42 = vunpack.i.h.bf16 %v5141_v35  ;;  %v5142_v61 = vunpack.i.l.bf16 %v5141_v35  ;;  %v3782_v17 = vsel %vm1812_vm5, %v3750_v9, %v5057_v30  ;;  %v3813_v50 = vsel %vm1878_vm7, %v3781_v54, %v5063_v38 }
 0x2f7   : > { %5455 = vrot.lane.b32.xlu0 %v7823_v11, %s5635_s21  ;;  %v5073_v52 = vunpack.i.h.bf16 %v7741_v49  ;;  %v3844_v8 = vsel %vm1944_vm9, %v3812_v45, %v5067_v44  ;;  %v3845_v55 = vsel %vm1944_vm9, %v3813_v50, %v5068_v16  ;;  %v5118_v9 = vunpack.i.h.bf16 %v7796_v32 }
 0x2f8   : > { %v7855_v53 = vpop.permute.xlu1 %5255  ;;  %v3815_v26 = vsel %vm1878_vm7, %v3783_v23, %v5143_v42  ;;  %v3814_v30 = vsel %vm1878_vm7, %v3782_v17, %v5142_v61  ;;  %v3877_v54 = vsel %vm3866_vm12, %v3844_v8, %v5072_v21  ;;  %v5117_v46 = vunpack.i.l.bf16 %v7796_v32 }
 0x2f9   : > { %v5146_v62 = vpop.permute.xlu0 %5145  ;;  %v3878_v61 = vsel %vm3866_vm12, %v3845_v55, %v5073_v52  ;;  %v5123_v45 = vunpack.i.h.bf16 %v7802_v22  ;;  %v5122_v17 = vunpack.i.l.bf16 %v7802_v22  ;;  %v5128_v23 = vunpack.i.h.bf16 %v7811_v0 }
 0x2fa   : > { %v5148_v24 = vunpack.i.h.bf16 %v5146_v62  ;;  %v5147_v36 = vunpack.i.l.bf16 %v5146_v62  ;;  %5480 = vrot.lane.b32.xlu1 %v7566_v56, %s5636_s22  ;;  %v2622_v56 = vld [vmem:[#allocation3 + $0x60] sm:$0xff]  ;;  %v5127_v62 = vunpack.i.l.bf16 %v7811_v0  ;;  %v5253_v16 = vunpack.i.h.bf16 %v7828_v2 }
 0x2fb   : > { %5465 = vrot.lane.b32.xlu0 %v7848_v3, %s5639_s8  ;;  %v5474_v15 = vpack.i.bf16 %v2623_v43, %v2622_v56  ;;  %v5252_v55 = vunpack.i.l.bf16 %v7828_v2 }
 0x2fc   : > { %v3846_v19 = vsel %vm1944_vm9, %v3814_v30, %v5147_v36  ;;  %v3847_v60 = vsel %vm1944_vm9, %v3815_v26, %v5148_v24  ;;  %v7874_v35 = vpop.permute.xlu1 %5260 }
 0x2fd   : > { %v5151_v49 = vpop.permute.xlu0 %5150 }
 0x2fe   : > { %v5153_v38 = vunpack.i.h.bf16 %v5151_v49  ;;  %v5152_v42 = vunpack.i.l.bf16 %v5151_v49  ;;  %5490 = vrot.lane.b32.xlu1 %v7656_v48, %s5637_s23  ;;  %v5263_v49 = vunpack.i.h.bf16 %v7874_v35 }
 0x2ff   : > { %5475 = vrot.lane.b32.xlu0 %v5474_v15, %s5636_s22 }
 0x300   : > { %v3879_v44 = vsel %vm3866_vm12, %v3846_v19, %v5152_v42  ;;  %v3880_v50 = vsel %vm3866_vm12, %v3847_v60, %v5153_v38  ;;  %v5266_v48 = vpop.permute.xlu1 %5265  ;;  %v5258_v19 = vunpack.i.h.bf16 %v7855_v53 }
 0x301   : > { %v3912_v21 = vsel %vm3899_vm13, %v3879_v44, %v5117_v46  ;;  %v3913_v32 = vsel %vm3899_vm13, %v3880_v50, %v5118_v9  ;;  %v5156_v24 = vpop.permute.xlu0 %5155  ;;  %v5268_v36 = vunpack.i.h.bf16 %v5266_v48  ;;  %v5267_v43 = vunpack.i.l.bf16 %v5266_v48 }
 0x302   : > { %5500 = vrot.lane.b32.xlu1 %v7665_v40, %s5638_s26  ;;  %v3945_v22 = vsel %vm3932_vm14, %v3912_v21, %v5122_v17  ;;  %v3946_v52 = vsel %vm3932_vm14, %v3913_v32, %v5123_v45  ;;  %v5158_v8 = vunpack.i.h.bf16 %v5156_v24  ;;  %v5157_v26 = vunpack.i.l.bf16 %v5156_v24  ;;  %v2587_v32 = vld [vmem:[#allocation3 + $0x32] sm:$0xff]  ;;  %v2588_v24 = vld [vmem:[#allocation3 + $0x3a] sm:$0xff] }
 0x303   : > { %5485 = vrot.lane.b32.xlu0 %v7773_v37, %s5637_s23  ;;  %v7899_v0 = vsel %vm3965_vm15, %v3945_v22, %v5127_v62  ;;  %v7902_v30 = vsel %vm3965_vm15, %v3946_v52, %v5128_v23  ;;  %v5257_v40 = vunpack.i.l.bf16 %v7855_v53  ;;  %v5262_v37 = vunpack.i.l.bf16 %v7874_v35  ;;  %v2556_v53 = vld [vmem:[#allocation3 + $0x39] sm:$0xff] }
 0x304   : > { %v5271_v60 = vpop.permute.xlu1 %5270  ;;  %v3764_v9 = vsel %vm1746_vm2, %v7709_v63, %v5267_v43  ;;  %v3765_v2 = vsel %vm1746_vm2, %v7703_v7, %v5268_v36  ;;  %v3911_v17 = vsel %vm3899_vm13, %v3878_v61, %v5158_v8  ;;  %v3910_v23 = vsel %vm3899_vm13, %v3877_v54, %v5157_v26  ;;  %v2555_v54 = vld [vmem:[#allocation3 + $0x31] sm:$0xff] }
 0x305   : > { %v5161_v15 = vpop.permute.xlu0 %5160  ;;  %v5273_v38 = vunpack.i.h.bf16 %v5271_v60  ;;  %v5272_v42 = vunpack.i.l.bf16 %v5271_v60  ;;  %v7933_v62 = vpack.i.bf16 %v2556_v53, %v2555_v54  ;;  %v7949_v26 = vpack.i.bf16 %v2588_v24, %v2587_v32 }
 0x306   : > { %v5163_v46 = vunpack.i.h.bf16 %v5161_v15  ;;  %v5162_v45 = vunpack.i.l.bf16 %v5161_v15  ;;  %5510 = vrot.lane.b32.xlu1 %v7616_v58, %s5635_s21  ;;  %v5133_v54 = vunpack.i.h.bf16 %v7747_v5  ;;  %v5137_v32 = vunpack.i.l.bf16 %v7755_v51 }
 0x307   : > { %v3796_v35 = vsel %vm1812_vm5, %v3764_v9, %v5272_v42  ;;  %v3797_v44 = vsel %vm1812_vm5, %v3765_v2, %v5273_v38  ;;  %5495 = vrot.lane.b32.xlu0 %v7781_v41, %s5638_s26  ;;  %v2668_v38 = vld [vmem:[#allocation3 + $0x109] sm:$0xff] }
 0x308   : > { %v7924_v63 = vsel %vm3932_vm14, %v3910_v23, %v5162_v45  ;;  %v7927_v7 = vsel %vm3932_vm14, %v3911_v17, %v5163_v46  ;;  %v3828_v58 = vsel %vm1878_vm7, %v3796_v35, %v5252_v55  ;;  %v3829_v50 = vsel %vm1878_vm7, %v3797_v44, %v5253_v16  ;;  %v7931_v61 = vpop.permute.xlu1 %5285  ;;  %v2669_v55 = vld [vmem:[#allocation3 + $0x111] sm:$0xff] }
 0x309   : > { %v5166_v48 = vpop.permute.xlu0 %5165  ;;  %v3860_v21 = vsel %vm1944_vm9, %v3828_v58, %v5257_v40  ;;  %v3861_v41 = vsel %vm1944_vm9, %v3829_v50, %v5258_v19  ;;  %v7953_v19 = vld [vmem:[#allocation3 + $0xf8] sm:$0xff]  ;;  %v5539_v46 = vpack.i.bf16 %v2669_v55, %v2668_v38  ;;  %v2700_v17 = vld [vmem:[#allocation3 + $0x10a] sm:$0xff]  ;;  %v2570_v50 = vld [vmem:[#allocation3 + $0xe1] sm:$0xff]  ;;  %v5108_v38 = vunpack.i.h.bf16 %v7771_v4 }
 0x30a   : > { %5520 = vrot.lane.b32.xlu1 %v7621_v28, %s5639_s8  ;;  %v7940_v36 = vsel %vm3866_vm12, %v3860_v21, %v5262_v37  ;;  %v7943_v16 = vsel %vm3866_vm12, %v3861_v41, %v5263_v49  ;;  %v5168_v43 = vunpack.i.h.bf16 %v5166_v48  ;;  %v5167_v22 = vunpack.i.l.bf16 %v5166_v48  ;;  %v7951_v28 = vld [vmem:[#allocation3 + $0xf0] sm:$0xff]  ;;  %v2569_v21 = vld [vmem:[#allocation3 + $0xd9] sm:$0xff]  ;;  %v2602_v55 = vld [vmem:[#allocation3 + $0xe2] sm:$0xff] }
 0x30b   : > { %5505 = vrot.lane.b32.xlu0 %v7933_v62, %s5635_s21  ;;  %v2621_v49 = vld [vmem:[#allocation3 + $0x50] sm:$0xff]  ;;  %v5132_v48 = vunpack.i.l.bf16 %v7747_v5  ;;  %v5138_v41 = vunpack.i.h.bf16 %v7755_v51 }
 0x30c   : > { %v7947_v52 = vpop.permute.xlu1 %5290  ;;  %v3758_v37 = vsel %vm1746_vm2, %v7951_v28, %v5167_v22  ;;  %v3759_v15 = vsel %vm1746_vm2, %v7953_v19, %v5168_v43  ;;  %v2701_v23 = vld [vmem:[#allocation3 + $0x112] sm:$0xff]  ;;  %v5559_v43 = vpack.i.bf16 %v2570_v50, %v2569_v21  ;;  %v2554_v22 = vld [vmem:[#allocation3 + $0x21] sm:$0xff]  ;;  %v4977_v21 = vunpack.i.l.bf16 %v7626_v33 }
 0x30d   : > { %v5171_v8 = vpop.permute.xlu0 %5170  ;;  %v5549_v44 = vpack.i.bf16 %v2701_v23, %v2700_v17  ;;  %v3752_v5 = vsel %vm1746_vm2, %v7584_v34, %v5132_v48  ;;  %v2586_v34 = vld [vmem:[#allocation3 + $0x22] sm:$0xff]  ;;  %v2619_v17 = vld [vmem:[#allocation3 + $0x38] sm:$0xff]  ;;  %v5102_v23 = vunpack.i.l.bf16 %v7739_v20  ;;  %v4978_v48 = vunpack.i.h.bf16 %v7626_v33 }
 0x30e   : > { %v5173_v40 = vunpack.i.h.bf16 %v5171_v8  ;;  %v5172_v60 = vunpack.i.l.bf16 %v5171_v8  ;;  %5530 = vrot.lane.b32.xlu1 %v7680_v47, %s5636_s22  ;;  %v2620_v47 = vld [vmem:[#allocation3 + $0x48] sm:$0xff]  ;;  %v2601_v8 = vld [vmem:[#allocation3 + $0xda] sm:$0xff] }
 0x30f   : > { %5515 = vrot.lane.b32.xlu0 %v7949_v26, %s5639_s8  ;;  %v5524_v53 = vpack.i.bf16 %v2621_v49, %v2620_v47  ;;  %v5569_v49 = vpack.i.bf16 %v2602_v55, %v2601_v8  ;;  %v5107_v47 = vunpack.i.l.bf16 %v7771_v4  ;;  %v2666_v55 = vld [vmem:[#allocation3 + $0xf1] sm:$0xff] }
 0x310   : > { %v7964_v42 = vsel %vm1812_vm5, %v3758_v37, %v5172_v60  ;;  %v7967_v9 = vsel %vm1812_vm5, %v3759_v15, %v5173_v40  ;;  %v7969_v2 = vpop.permute.xlu1 %5295  ;;  %v2553_v60 = vld [vmem:[#allocation3 + $0x19] sm:$0xff]  ;;  %v3784_v37 = vsel %vm1812_vm5, %v3752_v5, %v5137_v32 }
 0x311   : > { %v7971_v45 = vpop.permute.xlu0 %5190  ;;  %v5554_v51 = vpack.i.bf16 %v2554_v22, %v2553_v60  ;;  %v2698_v32 = vld [vmem:[#allocation3 + $0xf2] sm:$0xff]  ;;  %v3816_v22 = vsel %vm1878_vm7, %v3784_v37, %v5102_v23 }
 0x312   : > { %5540 = vrot.lane.b32.xlu1 %v5539_v46, %s5637_s23  ;;  %v3848_v60 = vsel %vm1944_vm9, %v3816_v22, %v5107_v47 }
 0x313   : > { %5525 = vrot.lane.b32.xlu0 %v5524_v53, %s5636_s22  ;;  %v2585_v53 = vld [vmem:[#allocation3 + $0x1a] sm:$0xff] }
 0x314   : > { %v7975_v35 = vpop.permute.xlu1 %5300 }
 0x315   : > { %v7977_v58 = vpop.permute.xlu0 %5195 }
 0x316   : > { %5550 = vrot.lane.b32.xlu1 %v5549_v44, %s5638_s26  ;;  %v5112_v44 = vunpack.i.l.bf16 %v7779_v14 }
 0x317   : > { %5535 = vrot.lane.b32.xlu0 %v7823_v11, %s5637_s23  ;;  %v3753_v11 = vsel %vm1746_vm2, %v7581_v18, %v5133_v54  ;;  %v5103_v18 = vunpack.i.h.bf16 %v7739_v20  ;;  %v2667_v54 = vld [vmem:[#allocation3 + $0xf9] sm:$0xff] }
 0x318   : > { %v7986_v24 = vpop.permute.xlu1 %5305  ;;  %v3785_v15 = vsel %vm1812_vm5, %v3753_v11, %v5138_v41  ;;  %v2618_v41 = vld [vmem:[#allocation3 + $0x30] sm:$0xff]  ;;  %v5589_v56 = vpack.i.bf16 %v2667_v54, %v2666_v55  ;;  %v3881_v4 = vsel %vm3866_vm12, %v3848_v60, %v5112_v44 }
 0x319   : > { %v7988_v40 = vpop.permute.xlu0 %5200  ;;  %v3817_v20 = vsel %vm1878_vm7, %v3785_v15, %v5103_v18  ;;  %v5574_v8 = vpack.i.bf16 %v2619_v17, %v2618_v41  ;;  %v5293_v18 = vunpack.i.h.bf16 %v7947_v52  ;;  %v5298_v41 = vunpack.i.h.bf16 %v7969_v2 }
 0x31a   : > { %5560 = vrot.lane.b32.xlu1 %v5559_v43, %s5635_s21  ;;  %v2699_v43 = vld [vmem:[#allocation3 + $0xfa] sm:$0xff]  ;;  %v3849_v5 = vsel %vm1944_vm9, %v3817_v20, %v5108_v38  ;;  %v5288_v38 = vunpack.i.h.bf16 %v7931_v61  ;;  %v5202_v17 = vunpack.i.l.bf16 %v7988_v40 }
 0x31b   : > { %5545 = vrot.lane.b32.xlu0 %v7848_v3, %s5638_s26  ;;  %v5113_v3 = vunpack.i.h.bf16 %v7779_v14  ;;  %v5564_v14 = vpack.i.bf16 %v2586_v34, %v2585_v53  ;;  %v5599_v15 = vpack.i.bf16 %v2699_v43, %v2698_v32  ;;  %v5197_v53 = vunpack.i.l.bf16 %v7977_v58 }
 0x31c   : > { %v8001_v46 = vpop.permute.xlu1 %5310  ;;  %v5297_v32 = vunpack.i.l.bf16 %v7969_v2 }
 0x31d   : > { %v5206_v50 = vpop.permute.xlu0 %5205  ;;  %v3882_v37 = vsel %vm3866_vm12, %v3849_v5, %v5113_v3  ;;  %v5292_v3 = vunpack.i.l.bf16 %v7947_v52 }
 0x31e   : > { %5570 = vrot.lane.b32.xlu1 %v5569_v49, %s5639_s8  ;;  %v5579_v49 = vpack.i.bf16 %v7953_v19, %v7951_v28  ;;  %v5287_v28 = vunpack.i.l.bf16 %v7931_v61  ;;  %v5203_v19 = vunpack.i.h.bf16 %v7988_v40  ;;  %v5208_v44 = vunpack.i.h.bf16 %v5206_v50 }
 0x31f   : > { %5555 = vrot.lane.b32.xlu0 %v5554_v51, %s5635_s21  ;;  %v5198_v51 = vunpack.i.h.bf16 %v7977_v58  ;;  %v5207_v58 = vunpack.i.l.bf16 %v5206_v50  ;;  %v3914_v40 = vsel %vm3899_vm13, %v3881_v4, %v5197_v53 }
 0x320   : > { %v5316_v11 = vpop.permute.xlu1 %5315  ;;  %v3947_v55 = vsel %vm3932_vm14, %v3914_v40, %v5202_v17 }
 0x321   : > { %v8020_v23 = vpop.permute.xlu0 %5210  ;;  %v5318_v47 = vunpack.i.h.bf16 %v5316_v11  ;;  %v5317_v34 = vunpack.i.l.bf16 %v5316_v11  ;;  %v3915_v20 = vsel %vm3899_vm13, %v3882_v37, %v5198_v51  ;;  %v8057_v11 = vld [vmem:[%s8397_s4] sm:$0xf] }
 0x322   : > { %5580 = vrot.lane.b32.xlu1 %v5579_v49, %s5636_s22  ;;  %v3948_v60 = vsel %vm3932_vm14, %v3915_v20, %v5203_v19  ;;  %v4988_v49 = vunpack.i.h.bf16 %v7643_v25  ;;  %4253 = vmatprep.mubr.msk.bf16.mxu1 %vm4015_vm0, %v8057_v11  ;;  %v4987_v19 = vunpack.i.l.bf16 %v7643_v25  ;;  %v5022_v20 = vunpack.i.l.bf16 %v7687_v1 }
 0x323   : > { %5565 = vrot.lane.b32.xlu0 %v5564_v14, %s5639_s8  ;;  %v3768_v14 = vsel %vm1746_vm2, %v7694_v39, %v5317_v34  ;;  %v3769_v52 = vsel %vm1746_vm2, %v7689_v57, %v5318_v47  ;;  %v3980_v57 = vsel %vm3965_vm15, %v3947_v55, %v5207_v58  ;;  %v8640_v58 = vunpack.i.h.bf16 %v7636_v59 }
 0x324   : > { %v5321_v54 = vpop.permute.xlu1 %5320 }
 0x325   : > { %v8034_v43 = vpop.permute.xlu0 %5215  ;;  %v5323_v61 = vunpack.i.h.bf16 %v5321_v54  ;;  %v5322_v22 = vunpack.i.l.bf16 %v5321_v54 }
 0x326   : > { %5590 = vrot.lane.b32.xlu1 %v5589_v56, %s5637_s23  ;;  %v3981_v56 = vsel %vm3965_vm15, %v3948_v60, %v5208_v44  ;;  %v5609_v60 = vld [vmem:[#allocation3 + $0x60] sm:$0xff] }
 0x327   : > { %v3800_v50 = vsel %vm1812_vm5, %v3768_v14, %v5322_v22  ;;  %v3801_v2 = vsel %vm1812_vm5, %v3769_v52, %v5323_v61  ;;  %5575 = vrot.lane.b32.xlu0 %v5574_v8, %s5636_s22  ;;  %v4982_v8 = vunpack.i.l.bf16 %v7636_v59  ;;  %v4108_v61 = vld [vmem:[%s8398_s5] sm:$0xff] }
 0x328   : > { %v3832_v4 = vsel %vm1878_vm7, %v3800_v50, %v5287_v28  ;;  %v3833_v5 = vsel %vm1878_vm7, %v3801_v2, %v5288_v38  ;;  %v8050_v39 = vpop.permute.xlu1 %5335 }
 0x329   : > { %v3864_v37 = vsel %vm1944_vm9, %v3832_v4, %v5292_v3  ;;  %v3865_v51 = vsel %vm1944_vm9, %v3833_v5, %v5293_v18  ;;  %v5236_v53 = vpop.permute.xlu0 %5235  ;;  %v4005_v3 = vpack.c.bf16 %v3981_v56, %v3980_v57  ;;  %v3746_v4 = vsel %vm1746_vm2, %v5609_v60, %v5022_v20  ;;  %v5610_v5 = vld [vmem:[#allocation3 + $0x68] sm:$0xff] }
 0x32a   : > { %v5238_v47 = vunpack.i.h.bf16 %v5236_v53  ;;  %v5237_v34 = vunpack.i.l.bf16 %v5236_v53  ;;  %5600 = vrot.lane.b32.xlu1 %v5599_v15, %s5638_s26  ;;  %v3897_v38 = vsel %vm3866_vm12, %v3864_v37, %v5297_v32  ;;  %v3898_v28 = vsel %vm3866_vm12, %v3865_v51, %v5298_v41 }
 0x32b   : > { %5585 = vrot.lane.b32.xlu0 %v7933_v62, %s5637_s23  ;;  %v3930_v17 = vsel %vm3899_vm13, %v3897_v38, %v4977_v21  ;;  %v3931_v18 = vsel %vm3899_vm13, %v3898_v28, %v4978_v48  ;;  %v4041_v59 = vsel %vm4015_vm0, %v4005_v3, 0  ;;  %v5640_v32 = vmov 0  }
 0x32c   : > { %v8079_v15 = vsel %vm1878_vm7, %v7967_v9, %v5238_v47  ;;  %v8083_v44 = vsel %vm1878_vm7, %v7964_v42, %v5237_v34  ;;  %v8085_v25 = vpop.permute.xlu1 %5340  ;;  %v3963_v62 = vsel %vm3932_vm14, %v3930_v17, %v4982_v8  ;;  %v3964_v21 = vsel %vm3932_vm14, %v3931_v18, %v8640_v58  ;;  %v4116_v42 = vld [vmem:[%s8399_s6] sm:$0xff]  ;;  %5604 = vset.pattern.permute.xlu0 %v5640_v32 }
 0x32d   : > { %v5241_v33 = vpop.permute.xlu0 %5240  ;;  %v3996_v48 = vsel %vm3965_vm15, %v3963_v62, %v4987_v19  ;;  %v3997_v54 = vsel %vm3965_vm15, %v3964_v21, %v4988_v49  ;;  %5605 = vset.pattern.permute.xlu1 %v5640_v32  ;;  %v5028_v56 = vunpack.i.h.bf16 %v7700_v29  ;;  %v5027_v8 = vunpack.i.l.bf16 %v7700_v29 }
 0x32e   : > { %v4013_v41 = vpack.c.bf16 %v3997_v54, %v3996_v48  ;;  %4119 = vperm.xlu1 %5605, %v4116_v42   ;;  %v5243_v49 = vunpack.i.h.bf16 %v5241_v33  ;;  %v5087_v42 = vunpack.i.l.bf16 %v7749_v13 }
 0x32f   : > { %5595 = vrot.lane.b32.xlu0 %v7949_v26, %s5638_s26  ;;  %v5023_v26 = vunpack.i.h.bf16 %v7687_v1  ;;  %v5242_v1 = vunpack.i.l.bf16 %v5241_v33 }
 0x330   : > { %v5346_v9 = vpop.permute.xlu1 %5345  ;;  %4294 = vmatprep.subr.msk.bf16.mxu1 %vm4015_vm0, %v4013_v41  ;;  %v5088_v41 = vunpack.i.h.bf16 %v7749_v13 }
 0x331   : > { %v5246_v22 = vpop.permute.xlu0 %5245  ;;  %4238 = vmatpush3.bf16.xpose.msra.mxu1 %v4041_v59  ;;  %v5348_v14 = vunpack.i.h.bf16 %v5346_v9  ;;  %v5347_v52 = vunpack.i.l.bf16 %v5346_v9  ;;  %v3747_v57 = vsel %vm1746_vm2, %v5610_v5, %v5023_v26  ;;  %v2453_v9 = vld [vmem:[#allocation3 + $0x150] sm:$0xff]  ;;  %v2454_v59 = vld [vmem:[#allocation3 + $0x158] sm:$0xff]  ;;  %v5303_v5 = vunpack.i.h.bf16 %v7975_v35 }
 0x332   : > { %v5248_v3 = vunpack.i.h.bf16 %v5246_v22  ;;  %v5247_v29 = vunpack.i.l.bf16 %v5246_v22  ;;  %v3779_v54 = vsel %vm1812_vm5, %v3747_v57, %v5028_v56  ;;  %v3766_v22 = vsel %vm1746_vm2, %v2453_v9, %v5242_v1 }
 0x333   : > { %4111 = vperm.xlu0 %5604, %v4108_v61   ;;  %v3927_v51 = vsel %vm3899_vm13, %v7943_v16, %v5348_v14  ;;  %v3926_v53 = vsel %vm3899_vm13, %v7940_v36, %v5347_v52  ;;  %v3778_v16 = vsel %vm1812_vm5, %v3746_v4, %v5027_v8  ;;  %v5343_v52 = vunpack.i.h.bf16 %v8085_v25 }
 0x334   : > { %v5351_v40 = vpop.permute.xlu1 %5350  ;;  %v3798_v14 = vsel %vm1812_vm5, %v3766_v22, %v5247_v29  ;;  %v5302_v57 = vunpack.i.l.bf16 %v7975_v35  ;;  %v5307_v1 = vunpack.i.l.bf16 %v7986_v24  ;;  %v3811_v9 = vsel %vm1878_vm7, %v3779_v54, %v5088_v41 }
 0x335   : > { %v8105_v50 = vpop.permute.xlu0 %5275  ;;  %v5353_v2 = vunpack.i.h.bf16 %v5351_v40  ;;  %v5352_v55 = vunpack.i.l.bf16 %v5351_v40  ;;  %v5337_v40 = vunpack.i.l.bf16 %v8050_v39  ;;  %v3810_v22 = vsel %vm1878_vm7, %v3778_v16, %v5087_v42 }
 0x337   : > { %v3959_v28 = vsel %vm3932_vm14, %v3926_v53, %v5352_v55  ;;  %v3960_v19 = vsel %vm3932_vm14, %v3927_v51, %v5353_v2  ;;  %v5342_v2 = vunpack.i.l.bf16 %v8085_v25  ;;  %v5313_v51 = vunpack.i.h.bf16 %v8001_v46 }
 0x338   : > { %v5356_v37 = vpop.permute.xlu1 %5355  ;;  %v5312_v53 = vunpack.i.l.bf16 %v8001_v46 }
 0x339   : > { %v5281_v47 = vpop.permute.xlu0 %5280  ;;  %v5358_v34 = vunpack.i.h.bf16 %v5356_v37  ;;  %v5357_v38 = vunpack.i.l.bf16 %v5356_v37 }
 0x33a   : > { %v5283_v17 = vunpack.i.h.bf16 %v5281_v47  ;;  %v5282_v18 = vunpack.i.l.bf16 %v5281_v47 }
 0x33b   : > { %v8118_v62 = vsel %vm3965_vm15, %v3959_v28, %v5357_v38  ;;  %v8121_v58 = vsel %vm3965_vm15, %v3960_v19, %v5358_v34  ;;  %v5213_v34 = vunpack.i.h.bf16 %v8020_v23  ;;  %v5212_v38 = vunpack.i.l.bf16 %v8020_v23 }
 0x33c   : > { %v4011_v36 = vpack.c.bf16 %v8121_v58, %v8118_v62  ;;  %v8126_v21 = vpop.permute.xlu1 %5360  ;;  %v8130_v33 = vsel %vm3965_vm15, %v7924_v63, %v5282_v18  ;;  %v8134_v48 = vsel %vm3965_vm15, %v7927_v7, %v5283_v17  ;;  %v3767_v63 = vsel %vm1746_vm2, %v2454_v59, %v5243_v49 }
 0x33d   : > { %v5326_v32 = vpop.permute.xlu0 %5325  ;;  %v4003_v61 = vpack.c.bf16 %v8134_v48, %v8130_v33  ;;  %v5338_v7 = vunpack.i.h.bf16 %v8050_v39  ;;  %v3799_v13 = vsel %vm1812_vm5, %v3767_v63, %v5248_v3  ;;  %v5308_v49 = vunpack.i.h.bf16 %v7986_v24  ;;  %v2449_v63 = vld [vmem:[#allocation3 + $0x120] sm:$0xff] }
 0x33e   : > { %v5328_v26 = vunpack.i.h.bf16 %v5326_v32  ;;  %v5327_v20 = vunpack.i.l.bf16 %v5326_v32  ;;  %v5218_v17 = vunpack.i.h.bf16 %v8034_v43  ;;  %v5217_v18 = vunpack.i.l.bf16 %v8034_v43 }
 0x33f   : > { %v5278_v59 = vunpack.i.h.bf16 %v8105_v50  ;;  %v5277_v23 = vunpack.i.l.bf16 %v8105_v50  ;;  %v5362_v43 = vunpack.i.l.bf16 %v8126_v21  ;;  %v3762_v54 = vsel %vm1746_vm2, %v2449_v63, %v5212_v38 }
 0x340   : > { %v3831_v55 = vsel %vm1878_vm7, %v3799_v13, %v5328_v26  ;;  %v3830_v60 = vsel %vm1878_vm7, %v3798_v14, %v5327_v20  ;;  %v5371_v4 = vpop.permute.xlu1 %5370  ;;  %v2450_v26 = vld [vmem:[#allocation3 + $0x128] sm:$0xff]  ;;  %v5363_v20 = vunpack.i.h.bf16 %v8126_v21  ;;  %v3794_v42 = vsel %vm1812_vm5, %v3762_v54, %v5217_v18 }
 0x341   : > { %v3862_v56 = vsel %vm1944_vm9, %v3830_v60, %v5337_v40  ;;  %v3863_v39 = vsel %vm1944_vm9, %v3831_v55, %v5338_v7  ;;  %v8155_v8 = vpop.permute.xlu0 %5330  ;;  %v8641_v7 = vpack.c.bf16 %v7902_v30, %v7899_v0  ;;  %v3763_v41 = vsel %vm1746_vm2, %v2450_v26, %v5213_v34 }
 0x342   : > { %v3895_v25 = vsel %vm3866_vm12, %v3862_v56, %v5342_v2  ;;  %v3896_v37 = vsel %vm3866_vm12, %v3863_v39, %v5343_v52  ;;  %v5373_v14 = vunpack.i.h.bf16 %v5371_v4  ;;  %v5372_v50 = vunpack.i.l.bf16 %v5371_v4 }
 0x343   : > { %v3928_v35 = vsel %vm3899_vm13, %v3895_v25, %v5302_v57  ;;  %v3929_v47 = vsel %vm3899_vm13, %v3896_v37, %v5303_v5  ;;  %v4038_v40 = vsel %vm4015_vm0, %v8641_v7, 0  ;;  %v3795_v13 = vsel %vm1812_vm5, %v3763_v41, %v5218_v17 }
 0x344   : > { %v5381_v28 = vpop.permute.xlu1 %5380  ;;  %v3961_v19 = vsel %vm3932_vm14, %v3928_v35, %v5307_v1  ;;  %v3962_v24 = vsel %vm3932_vm14, %v3929_v47, %v5308_v49  ;;  %v3827_v0 = vsel %vm1878_vm7, %v3795_v13, %v5278_v59  ;;  %v3826_v30 = vsel %vm1878_vm7, %v3794_v42, %v5277_v23 }
 0x345   : > { %v5366_v3 = vpop.permute.xlu0 %5365  ;;  %v3994_v46 = vsel %vm3965_vm15, %v3961_v19, %v5312_v53  ;;  %v3995_v29 = vsel %vm3965_vm15, %v3962_v24, %v5313_v51  ;;  %v5383_v52 = vunpack.i.h.bf16 %v5381_v28  ;;  %v5382_v21 = vunpack.i.l.bf16 %v5381_v28 }
 0x346   : > { %v4012_v32 = vpack.c.bf16 %v3995_v29, %v3994_v46  ;;  %v3859_v4 = vsel %vm1944_vm9, %v3827_v0, %v5363_v20  ;;  %v3858_v5 = vsel %vm1944_vm9, %v3826_v30, %v5362_v43  ;;  %v5333_v57 = vunpack.i.h.bf16 %v8155_v8 }
 0x347   : > { %v5332_v56 = vunpack.i.l.bf16 %v8155_v8  ;;  %v3891_v39 = vsel %vm3866_vm12, %v3858_v5, %v5372_v50  ;;  %v3892_v49 = vsel %vm3866_vm12, %v3859_v4, %v5373_v14  ;;  %v5368_v1 = vunpack.i.h.bf16 %v5366_v3 }
 0x348   : > { %4295 = vmatprep.subr.msk.bf16.mxu1 %vm4015_vm0, %v4012_v32  ;;  %v5391_v16 = vpop.permute.xlu1 %5390  ;;  %v5367_v25 = vunpack.i.l.bf16 %v5366_v3  ;;  %v3924_v51 = vsel %vm3899_vm13, %v3891_v39, %v5382_v21  ;;  %v3925_v62 = vsel %vm3899_vm13, %v3892_v49, %v5383_v52  ;;  %v3843_v17 = vsel %vm1944_vm9, %v3811_v9, %v5333_v57  ;;  %v5611_v52 = vld [vmem:[#allocation3 + $0x48] sm:$0xff] }
 0x349   : > { %v5376_v2 = vpop.permute.xlu0 %5375  ;;  %4240 = vmatpush3.bf16.xpose.msra.mxu1 %v4038_v40  ;;  %v5393_v55 = vunpack.i.h.bf16 %v5391_v16  ;;  %v5392_v60 = vunpack.i.l.bf16 %v5391_v16  ;;  %v3842_v18 = vsel %vm1944_vm9, %v3810_v22, %v5332_v56  ;;  %v4035_v29 = vsel %vm4015_vm0, %v4003_v61, 0 }
 0x34a   : > { %4296 = vmatprep.subr.msk.bf16.mxu1 %vm4015_vm0, %v4011_v36  ;;  %v5378_v35 = vunpack.i.h.bf16 %v5376_v2  ;;  %v5377_v47 = vunpack.i.l.bf16 %v5376_v2  ;;  %v3875_v59 = vsel %vm3866_vm12, %v3842_v18, %v5367_v25  ;;  %v3876_v23 = vsel %vm3866_vm12, %v3843_v17, %v5368_v1  ;;  %v5612_v2 = vld [vmem:[#allocation3 + $0x50] sm:$0xff] }
 0x34b   : > { %v3957_v34 = vsel %vm3932_vm14, %v3924_v51, %v5392_v60  ;;  %v3958_v8 = vsel %vm3932_vm14, %v3925_v62, %v5393_v55  ;;  %v5038_v54 = vunpack.i.h.bf16 %v7696_v10  ;;  %v5037_v41 = vunpack.i.l.bf16 %v7696_v10 }
 0x34c   : > { %v5401_v37 = vpop.permute.xlu1 %5400  ;;  %v3908_v63 = vsel %vm3899_vm13, %v3875_v59, %v5377_v47  ;;  %v3909_v26 = vsel %vm3899_vm13, %v3876_v23, %v5378_v35  ;;  %v5043_v14 = vunpack.i.h.bf16 %v7707_v12  ;;  %v5042_v50 = vunpack.i.l.bf16 %v7707_v12 }
 0x34d   : > { %v5386_v58 = vpop.permute.xlu0 %5385  ;;  %v5403_v36 = vunpack.i.h.bf16 %v5401_v37  ;;  %v5402_v53 = vunpack.i.l.bf16 %v5401_v37  ;;  %v3744_v21 = vsel %vm1746_vm2, %v5611_v52, %v5037_v41  ;;  %v3745_v0 = vsel %vm1746_vm2, %v5612_v2, %v5038_v54 }
 0x34e   : > { %v5388_v38 = vunpack.i.h.bf16 %v5386_v58  ;;  %v5387_v28 = vunpack.i.l.bf16 %v5386_v58  ;;  %v3776_v30 = vsel %vm1812_vm5, %v3744_v21, %v5042_v50  ;;  %v3777_v55 = vsel %vm1812_vm5, %v3745_v0, %v5043_v14  ;;  %v8642_v21 = vld [vmem:[#allocation19_spill] sm:$0xff] }
 0x34f   : > { %v3990_v19 = vsel %vm3965_vm15, %v3957_v34, %v5402_v53  ;;  %v3991_v24 = vsel %vm3965_vm15, %v3958_v8, %v5403_v36  ;;  %v5033_v4 = vunpack.i.h.bf16 %v7685_v6  ;;  %v5032_v12 = vunpack.i.l.bf16 %v7685_v6 }
 0x350   : > { %v4010_v3 = vpack.c.bf16 %v3991_v24, %v3990_v19  ;;  %v5411_v46 = vpop.permute.xlu1 %5410  ;;  %v3941_v22 = vsel %vm3932_vm14, %v3908_v63, %v5387_v28  ;;  %v3942_v33 = vsel %vm3932_vm14, %v3909_v26, %v5388_v38  ;;  %v4993_v2 = vunpack.i.h.bf16 %v8642_v21 }
 0x351   : > { %v5396_v32 = vpop.permute.xlu0 %5395  ;;  %4242 = vmatpush3.bf16.xpose.msra.mxu1 %v4035_v29  ;;  %v5413_v10 = vunpack.i.h.bf16 %v5411_v46  ;;  %v5412_v60 = vunpack.i.l.bf16 %v5411_v46  ;;  %v3808_v25 = vsel %vm1878_vm7, %v3776_v30, %v5032_v12  ;;  %v3809_v37 = vsel %vm1878_vm7, %v3777_v55, %v5033_v4  ;;  %v8643_v55 = vld [vmem:[#allocation21_spill] sm:$0xff]  ;;  %v8644_v12 = vld [vmem:[#allocation24_spill] sm:$0xff] }
 0x352   : > { %v5398_v9 = vunpack.i.h.bf16 %v5396_v32  ;;  %v5397_v20 = vunpack.i.l.bf16 %v5396_v32  ;;  %4297 = vmatprep.subr.msk.bf16.mxu1 %vm4015_vm0, %v4010_v3  ;;  %v4992_v0 = vunpack.i.l.bf16 %v8642_v21 }
 0x353   : > { %v3857_v58 = vsel %vm1944_vm9, %v7834_v27, %v5413_v10  ;;  %v3856_v36 = vsel %vm1944_vm9, %v7831_v31, %v5412_v60  ;;  %v4998_v10 = vunpack.i.h.bf16 %v8643_v55  ;;  %v4997_v60 = vunpack.i.l.bf16 %v8643_v55 }
 0x354   : > { %v5421_v48 = vpop.permute.xlu1 %5420  ;;  %v3974_v61 = vsel %vm3965_vm15, %v3941_v22, %v5397_v20  ;;  %v3975_v43 = vsel %vm3965_vm15, %v3942_v33, %v5398_v9 }
 0x355   : > { %v5406_v7 = vpop.permute.xlu0 %5405  ;;  %v4002_v40 = vpack.c.bf16 %v3975_v43, %v3974_v61  ;;  %v5423_v5 = vunpack.i.h.bf16 %v5421_v48  ;;  %v5422_v57 = vunpack.i.l.bf16 %v5421_v48 }
 0x356   : > { %v5408_v53 = vunpack.i.h.bf16 %v5406_v7  ;;  %v5407_v6 = vunpack.i.l.bf16 %v5406_v7 }
 0x357   : > { %v4032_v16 = vsel %vm4015_vm0, %v4002_v40, 0  ;;  %v3889_v35 = vsel %vm3866_vm12, %v3856_v36, %v5422_v57  ;;  %v3890_v47 = vsel %vm3866_vm12, %v3857_v58, %v5423_v5  ;;  %v5048_v5 = vunpack.i.h.bf16 %v8644_v12 }
 0x358   : > { %v5431_v42 = vpop.permute.xlu1 %5430  ;;  %v3841_v63 = vsel %vm1944_vm9, %v3809_v37, %v5408_v53  ;;  %v3840_v26 = vsel %vm1944_vm9, %v3808_v25, %v5407_v6  ;;  %v5047_v57 = vunpack.i.l.bf16 %v8644_v12  ;;  %v5614_v25 = vld [vmem:[#allocation3 + $0x38] sm:$0xff] }
 0x359   : > { %v5416_v13 = vpop.permute.xlu0 %5415  ;;  %4244 = vmatpush3.bf16.xpose.msra.mxu1 %v4032_v16  ;;  %v5433_v39 = vunpack.i.h.bf16 %v5431_v42  ;;  %v5432_v49 = vunpack.i.l.bf16 %v5431_v42  ;;  %v3743_v37 = vsel %vm1746_vm2, %v5614_v25, %v4993_v2  ;;  %v5615_v25 = vld [vmem:[#allocation3 + $0x18] sm:$0xff] }
 0x35a   : > { %v5418_v34 = vunpack.i.h.bf16 %v5416_v13  ;;  %v5417_v8 = vunpack.i.l.bf16 %v5416_v13  ;;  %v3775_v53 = vsel %vm1812_vm5, %v3743_v37, %v4998_v10  ;;  %v8645_v10 = vld [vmem:[#allocation20_spill] sm:$0xff] }
 0x35b   : > { %v3922_v28 = vsel %vm3899_vm13, %v3889_v35, %v5432_v49  ;;  %v3923_v19 = vsel %vm3899_vm13, %v3890_v47, %v5433_v39  ;;  %v5613_v49 = vld [vmem:[#allocation3 + $0x30] sm:$0xff] }
 0x35c   : > { %v5441_v56 = vpop.permute.xlu1 %5440  ;;  %v3873_v22 = vsel %vm3866_vm12, %v3840_v26, %v5417_v8  ;;  %v3874_v33 = vsel %vm3866_vm12, %v3841_v63, %v5418_v34  ;;  %v3807_v34 = vsel %vm1878_vm7, %v3775_v53, %v5048_v5 }
 0x35d   : > { %v5426_v1 = vpop.permute.xlu0 %5425  ;;  %v5443_v51 = vunpack.i.h.bf16 %v5441_v56  ;;  %v5442_v62 = vunpack.i.l.bf16 %v5441_v56 }
 0x35e   : > { %v5428_v27 = vunpack.i.h.bf16 %v5426_v1  ;;  %v5427_v3 = vunpack.i.l.bf16 %v5426_v1  ;;  %v3742_v1 = vsel %vm1746_vm2, %v5613_v49, %v4992_v0 }
 0x35f   : > { %v3955_v31 = vsel %vm3932_vm14, %v3922_v28, %v5442_v62  ;;  %v3956_v46 = vsel %vm3932_vm14, %v3923_v19, %v5443_v51  ;;  %v3774_v36 = vsel %vm1812_vm5, %v3742_v1, %v4997_v60  ;;  %v5008_v60 = vunpack.i.h.bf16 %v8645_v10 }
 0x360   : > { %v5451_v38 = vpop.permute.xlu1 %5450  ;;  %v3906_v61 = vsel %vm3899_vm13, %v3873_v22, %v5427_v3  ;;  %v3907_v43 = vsel %vm3899_vm13, %v3874_v33, %v5428_v27  ;;  %v3806_v8 = vsel %vm1878_vm7, %v3774_v36, %v5047_v57  ;;  %v8646_v57 = vld [vmem:[#allocation22_spill] sm:$0xff] }
 0x361   : > { %v5436_v24 = vpop.permute.xlu0 %5435  ;;  %v5453_v17 = vunpack.i.h.bf16 %v5451_v38  ;;  %v5452_v18 = vunpack.i.l.bf16 %v5451_v38 }
 0x362   : > { %v5438_v29 = vunpack.i.h.bf16 %v5436_v24  ;;  %v5437_v59 = vunpack.i.l.bf16 %v5436_v24 }
 0x363   : > { %v3988_v23 = vsel %vm3965_vm15, %v3955_v31, %v5452_v18  ;;  %v3989_v32 = vsel %vm3965_vm15, %v3956_v46, %v5453_v17 }
 0x364   : > { %v4009_v9 = vpack.c.bf16 %v3989_v32, %v3988_v23  ;;  %v5461_v20 = vpop.permute.xlu1 %5460  ;;  %v3939_v54 = vsel %vm3932_vm14, %v3906_v61, %v5437_v59  ;;  %v3940_v41 = vsel %vm3932_vm14, %v3907_v43, %v5438_v29 }
 0x365   : > { %v5446_v48 = vpop.permute.xlu0 %5445  ;;  %v5463_v56 = vunpack.i.h.bf16 %v5461_v20  ;;  %v5462_v39 = vunpack.i.l.bf16 %v5461_v20 }
 0x366   : > { %v5448_v7 = vunpack.i.h.bf16 %v5446_v48  ;;  %v5447_v40 = vunpack.i.l.bf16 %v5446_v48  ;;  %4298 = vmatprep.subr.msk.bf16.mxu1 %vm4015_vm0, %v4009_v9 }
 0x367   : > { %v3855_v19 = vsel %vm1944_vm9, %v8079_v15, %v5463_v56  ;;  %v3854_v24 = vsel %vm1944_vm9, %v8083_v44, %v5462_v39  ;;  %v5013_v56 = vunpack.i.h.bf16 %v8646_v57  ;;  %v5012_v39 = vunpack.i.l.bf16 %v8646_v57 }
 0x368   : > { %v5471_v14 = vpop.permute.xlu1 %5470  ;;  %v3972_v50 = vsel %vm3965_vm15, %v3939_v54, %v5447_v40  ;;  %v3973_v16 = vsel %vm3965_vm15, %v3940_v41, %v5448_v7 }
 0x369   : > { %v5456_v42 = vpop.permute.xlu0 %5455  ;;  %v4001_v13 = vpack.c.bf16 %v3973_v16, %v3972_v50  ;;  %v5473_v51 = vunpack.i.h.bf16 %v5471_v14  ;;  %v5472_v62 = vunpack.i.l.bf16 %v5471_v14 }
 0x36a   : > { %v5458_v17 = vunpack.i.h.bf16 %v5456_v42  ;;  %v5457_v18 = vunpack.i.l.bf16 %v5456_v42 }
 0x36b   : > { %v4029_v52 = vsel %vm4015_vm0, %v4001_v13, 0  ;;  %v3887_v27 = vsel %vm3866_vm12, %v3854_v24, %v5472_v62  ;;  %v3888_v3 = vsel %vm3866_vm12, %v3855_v19, %v5473_v51  ;;  %v5616_v51 = vld [vmem:[#allocation3 + $0x20] sm:$0xff] }
 0x36c   : > { %4246 = vmatpush3.bf16.xpose.msra.mxu1 %v4029_v52  ;;  %v5481_v30 = vpop.permute.xlu1 %5480  ;;  %v3839_v43 = vsel %vm1944_vm9, %v3807_v34, %v5458_v17  ;;  %v3838_v7 = vsel %vm1944_vm9, %v3806_v8, %v5457_v18  ;;  %v3741_v62 = vsel %vm1746_vm2, %v5616_v51, %v5008_v60  ;;  %v2426_v51 = vld [vmem:[#allocation3 + $0x8] sm:$0xff] }
 0x36d   : > { %v5466_v4 = vpop.permute.xlu0 %5465  ;;  %v5483_v6 = vunpack.i.h.bf16 %v5481_v30  ;;  %v5482_v35 = vunpack.i.l.bf16 %v5481_v30  ;;  %v3773_v53 = vsel %vm1812_vm5, %v3741_v62, %v5013_v56 }
 0x36e   : > { %v5468_v31 = vunpack.i.h.bf16 %v5466_v4  ;;  %v5467_v46 = vunpack.i.l.bf16 %v5466_v4  ;;  %v5007_v4 = vunpack.i.l.bf16 %v8645_v10 }
 0x36f   : > { %v3920_v59 = vsel %vm3899_vm13, %v3887_v27, %v5482_v35  ;;  %v3921_v23 = vsel %vm3899_vm13, %v3888_v3, %v5483_v6  ;;  %v8647_v6 = vld [vmem:[#allocation17_spill] sm:$0xff] }
 0x370   : > { %v5491_v58 = vpop.permute.xlu1 %5490  ;;  %v3871_v41 = vsel %vm3866_vm12, %v3838_v7, %v5467_v46  ;;  %v3872_v14 = vsel %vm3866_vm12, %v3839_v43, %v5468_v31  ;;  %v3740_v37 = vsel %vm1746_vm2, %v5615_v25, %v5007_v4  ;;  %v5003_v35 = vunpack.i.h.bf16 %v8647_v6 }
 0x371   : > { %v5476_v47 = vpop.permute.xlu0 %5475  ;;  %v5493_v38 = vunpack.i.h.bf16 %v5491_v58  ;;  %v5492_v28 = vunpack.i.l.bf16 %v5491_v58  ;;  %v3772_v36 = vsel %vm1812_vm5, %v3740_v37, %v5012_v39 }
 0x372   : > { %v5478_v15 = vunpack.i.h.bf16 %v5476_v47  ;;  %v5477_v9 = vunpack.i.l.bf16 %v5476_v47  ;;  %v5002_v47 = vunpack.i.l.bf16 %v8647_v6  ;;  %v3805_v3 = vsel %vm1878_vm7, %v3773_v53, %v5003_v35  ;;  %v2425_v53 = vld [vmem:[#allocation3] sm:$0xff] }
 0x373   : > { %v3953_v44 = vsel %vm3932_vm14, %v3920_v59, %v5492_v28  ;;  %v3954_v20 = vsel %vm3932_vm14, %v3921_v23, %v5493_v38  ;;  %v8648_v38 = vld [vmem:[#allocation26_spill] sm:$0xff]  ;;  %v8649_v59 = vld [vmem:[#allocation29_spill] sm:$0xff] }
 0x374   : > { %v5501_v29 = vpop.permute.xlu1 %5500  ;;  %v3904_v16 = vsel %vm3899_vm13, %v3871_v41, %v5477_v9  ;;  %v3905_v42 = vsel %vm3899_vm13, %v3872_v14, %v5478_v15  ;;  %v5178_v28 = vunpack.i.h.bf16 %v8648_v38  ;;  %v5177_v19 = vunpack.i.l.bf16 %v8648_v38 }
 0x375   : > { %v5486_v32 = vpop.permute.xlu0 %5485  ;;  %v5503_v63 = vunpack.i.h.bf16 %v5501_v29  ;;  %v5502_v26 = vunpack.i.l.bf16 %v5501_v29  ;;  %v3804_v27 = vsel %vm1878_vm7, %v3772_v36, %v5002_v47 }
 0x376   : > { %v5488_v22 = vunpack.i.h.bf16 %v5486_v32  ;;  %v5487_v33 = vunpack.i.l.bf16 %v5486_v32  ;;  %v3820_v23 = vsel %vm1878_vm7, %v8649_v59, %v5177_v19  ;;  %v8650_v32 = vld [vmem:[#allocation30_spill] sm:$0xff] }
 0x377   : > { %v3986_v48 = vsel %vm3965_vm15, %v3953_v44, %v5502_v26  ;;  %v3987_v61 = vsel %vm3965_vm15, %v3954_v20, %v5503_v63  ;;  %v3821_v63 = vsel %vm1878_vm7, %v8650_v32, %v5178_v28  ;;  %v8652_v28 = vld [vmem:[#allocation18_spill] sm:$0xff]  ;;  %v8655_v32 = vld [vmem:[#allocation28_spill] sm:$0xff] }
 0x378   : > { %v4008_v40 = vpack.c.bf16 %v3987_v61, %v3986_v48  ;;  %v5511_v54 = vpop.permute.xlu1 %5510  ;;  %v3937_v21 = vsel %vm3932_vm14, %v3904_v16, %v5487_v33  ;;  %v3938_v2 = vsel %vm3932_vm14, %v3905_v42, %v5488_v22  ;;  %v4973_v19 = vunpack.i.h.bf16 %v8652_v28 }
 0x379   : > { %v5496_v50 = vpop.permute.xlu0 %5495  ;;  %v5513_v34 = vunpack.i.h.bf16 %v5511_v54  ;;  %v5512_v8 = vunpack.i.l.bf16 %v5511_v54 }
 0x37a   : > { %v5498_v13 = vunpack.i.h.bf16 %v5496_v50  ;;  %v5497_v52 = vunpack.i.l.bf16 %v5496_v50  ;;  %4299 = vmatprep.subr.msk.bf16.mxu1 %vm4015_vm0, %v4008_v40 }
 0x37b   : > { %v3853_v9 = vsel %vm1944_vm9, %v3821_v63, %v5513_v34  ;;  %v3852_v44 = vsel %vm1944_vm9, %v3820_v23, %v5512_v8  ;;  %v5098_v63 = vunpack.i.h.bf16 %v8655_v32 }
 0x37c   : > { %v5521_v0 = vpop.permute.xlu1 %5520  ;;  %v3970_v30 = vsel %vm3965_vm15, %v3937_v21, %v5497_v52  ;;  %v3971_v55 = vsel %vm3965_vm15, %v3938_v2, %v5498_v13 }
 0x37d   : > { %v5506_v12 = vpop.permute.xlu0 %5505  ;;  %v4000_v5 = vpack.c.bf16 %v3971_v55, %v3970_v30  ;;  %v5523_v24 = vunpack.i.h.bf16 %v5521_v0  ;;  %v5522_v17 = vunpack.i.l.bf16 %v5521_v0 }
 0x37e   : > { %v5508_v20 = vunpack.i.h.bf16 %v5506_v12  ;;  %v5507_v22 = vunpack.i.l.bf16 %v5506_v12  ;;  %v8651_v12 = vld [vmem:[#allocation15_spill] sm:$0xff] }
 0x37f   : > { %v4026_v49 = vsel %vm4015_vm0, %v4000_v5, 0  ;;  %v3885_v33 = vsel %vm3866_vm12, %v3852_v44, %v5522_v17  ;;  %v3886_v48 = vsel %vm3866_vm12, %v3853_v9, %v5523_v24  ;;  %v4968_v5 = vunpack.i.h.bf16 %v8651_v12 }
 0x380   : > { %4248 = vmatpush3.bf16.xpose.msra.mxu1 %v4026_v49  ;;  %v5531_v1 = vpop.permute.xlu1 %5530  ;;  %v3837_v55 = vsel %vm1944_vm9, %v3805_v3, %v5508_v20  ;;  %v3836_v10 = vsel %vm1944_vm9, %v3804_v27, %v5507_v22  ;;  %v4967_v62 = vunpack.i.l.bf16 %v8651_v12  ;;  %v4972_v24 = vunpack.i.l.bf16 %v8652_v28 }
 0x381   : > { %v5516_v58 = vpop.permute.xlu0 %5515  ;;  %v5533_v31 = vunpack.i.h.bf16 %v5531_v1  ;;  %v5532_v46 = vunpack.i.l.bf16 %v5531_v1  ;;  %v3739_v38 = vsel %vm1746_vm2, %v2426_v51, %v4968_v5  ;;  %v5193_v20 = vunpack.i.h.bf16 %v7971_v45 }
 0x382   : > { %v5518_v61 = vunpack.i.h.bf16 %v5516_v58  ;;  %v5517_v43 = vunpack.i.l.bf16 %v5516_v58  ;;  %v3738_v17 = vsel %vm1746_vm2, %v2425_v53, %v4967_v62  ;;  %v3771_v44 = vsel %vm1812_vm5, %v3739_v38, %v4973_v19 }
 0x383   : > { %v3918_v40 = vsel %vm3899_vm13, %v3885_v33, %v5532_v46  ;;  %v3919_v54 = vsel %vm3899_vm13, %v3886_v48, %v5533_v31  ;;  %v8654_v46 = vld [vmem:[#allocation25_spill] sm:$0xff]  ;;  %v3770_v9 = vsel %vm1812_vm5, %v3738_v17, %v4972_v24  ;;  %v5192_v22 = vunpack.i.l.bf16 %v7971_v45 }
 0x384   : > { %v5541_v18 = vpop.permute.xlu1 %5540  ;;  %v3869_v57 = vsel %vm3866_vm12, %v3836_v10, %v5517_v43  ;;  %v3870_v56 = vsel %vm3866_vm12, %v3837_v55, %v5518_v61  ;;  %v5092_v59 = vunpack.i.l.bf16 %v8654_v46 }
 0x385   : > { %v5526_v29 = vpop.permute.xlu0 %5525  ;;  %v5543_v26 = vunpack.i.h.bf16 %v5541_v18  ;;  %v5542_v15 = vunpack.i.l.bf16 %v5541_v18  ;;  %v8653_v18 = vld [vmem:[#allocation23_spill] sm:$0xff] }
 0x386   : > { %v5528_v16 = vunpack.i.h.bf16 %v5526_v29  ;;  %v5527_v42 = vunpack.i.l.bf16 %v5526_v29  ;;  %v5018_v27 = vunpack.i.h.bf16 %v8653_v18  ;;  %v5017_v3 = vunpack.i.l.bf16 %v8653_v18 }
 0x387   : > { %v3951_v13 = vsel %vm3932_vm14, %v3918_v40, %v5542_v15  ;;  %v3952_v52 = vsel %vm3932_vm14, %v3919_v54, %v5543_v26  ;;  %v5093_v29 = vunpack.i.h.bf16 %v8654_v46  ;;  %v5097_v26 = vunpack.i.l.bf16 %v8655_v32  ;;  %v5618_v54 = vld [vmem:[#allocation3 + $0xc8] sm:$0xff] }
 0x388   : > { %v5551_v7 = vpop.permute.xlu1 %5550  ;;  %v3902_v49 = vsel %vm3899_vm13, %v3869_v57, %v5527_v42  ;;  %v3903_v1 = vsel %vm3899_vm13, %v3870_v56, %v5528_v16  ;;  %v3803_v33 = vsel %vm1878_vm7, %v3771_v44, %v5018_v27  ;;  %v3802_v48 = vsel %vm1878_vm7, %v3770_v9, %v5017_v3 }
 0x389   : > { %v5536_v41 = vpop.permute.xlu0 %5535  ;;  %v5553_v14 = vunpack.i.h.bf16 %v5551_v7  ;;  %v5552_v50 = vunpack.i.l.bf16 %v5551_v7  ;;  %v5617_v7 = vld [vmem:[#allocation3 + $0xc0] sm:$0xff] }
 0x38a   : > { %v5538_v21 = vunpack.i.h.bf16 %v5536_v41  ;;  %v5537_v2 = vunpack.i.l.bf16 %v5536_v41  ;;  %v3754_v40 = vsel %vm1746_vm2, %v5617_v7, %v5092_v59  ;;  %v3755_v41 = vsel %vm1746_vm2, %v5618_v54, %v5093_v29 }
 0x38b   : > { %v3984_v0 = vsel %vm3965_vm15, %v3951_v13, %v5552_v50  ;;  %v3985_v30 = vsel %vm3965_vm15, %v3952_v52, %v5553_v14  ;;  %v3786_v42 = vsel %vm1812_vm5, %v3754_v40, %v5097_v26  ;;  %v3787_v13 = vsel %vm1812_vm5, %v3755_v41, %v5098_v63 }
 0x38c   : > { %v4007_v60 = vpack.c.bf16 %v3985_v30, %v3984_v0  ;;  %v5561_v4 = vpop.permute.xlu1 %5560  ;;  %v3935_v58 = vsel %vm3932_vm14, %v3902_v49, %v5537_v2  ;;  %v3936_v36 = vsel %vm3932_vm14, %v3903_v1, %v5538_v21  ;;  %v3819_v2 = vsel %vm1878_vm7, %v3787_v13, %v5193_v20 }
 0x38d   : > { %v5546_v39 = vpop.permute.xlu0 %5545  ;;  %v5563_v61 = vunpack.i.h.bf16 %v5561_v4  ;;  %v5562_v43 = vunpack.i.l.bf16 %v5561_v4  ;;  %v3818_v0 = vsel %vm1878_vm7, %v3786_v42, %v5192_v22 }
 0x38e   : > { %v5548_v25 = vunpack.i.h.bf16 %v5546_v39  ;;  %v5547_v37 = vunpack.i.l.bf16 %v5546_v39  ;;  %4300 = vmatprep.subr.msk.bf16.mxu1 %vm4015_vm0, %v4007_v60 }
 0x38f   : > { %v3851_v10 = vsel %vm1944_vm9, %v3819_v2, %v5563_v61  ;;  %v3850_v60 = vsel %vm1944_vm9, %v3818_v0, %v5562_v43 }
 0x390   : > { %v5571_v6 = vpop.permute.xlu1 %5570  ;;  %v3968_v35 = vsel %vm3965_vm15, %v3935_v58, %v5547_v37  ;;  %v3969_v47 = vsel %vm3965_vm15, %v3936_v36, %v5548_v25 }
 0x391   : > { %v8335_v34 = vpop.permute.xlu0 %5555  ;;  %v3999_v8 = vpack.c.bf16 %v3969_v47, %v3968_v35  ;;  %v5573_v14 = vunpack.i.h.bf16 %v5571_v6  ;;  %v5572_v50 = vunpack.i.l.bf16 %v5571_v6 }
 0x392   : > { %v5558_v4 = vunpack.i.h.bf16 %v8335_v34  ;;  %v5557_v12 = vunpack.i.l.bf16 %v8335_v34 }
 0x393   : > { %v4023_v31 = vsel %vm4015_vm0, %v3999_v8, 0  ;;  %v3883_v5 = vsel %vm3866_vm12, %v3850_v60, %v5572_v50  ;;  %v3884_v57 = vsel %vm3866_vm12, %v3851_v10, %v5573_v14 }
 0x394   : > { %4250 = vmatpush3.bf16.xpose.msra.mxu1 %v4023_v31  ;;  %v5581_v23 = vpop.permute.xlu1 %5580  ;;  %v3835_v38 = vsel %vm1944_vm9, %v3803_v33, %v5558_v4  ;;  %v3834_v28 = vsel %vm1944_vm9, %v3802_v48, %v5557_v12 }
 0x395   : > { %v5566_v15 = vpop.permute.xlu0 %5565  ;;  %v5583_v45 = vunpack.i.h.bf16 %v5581_v23  ;;  %v5582_v52 = vunpack.i.l.bf16 %v5581_v23 }
 0x396   : > { %v5568_v56 = vunpack.i.h.bf16 %v5566_v15  ;;  %v5567_v39 = vunpack.i.l.bf16 %v5566_v15 }
 0x397   : > { %v3916_v1 = vsel %vm3899_vm13, %v3883_v5, %v5582_v52  ;;  %v3917_v25 = vsel %vm3899_vm13, %v3884_v57, %v5583_v45 }
 0x398   : > { %v5591_v16 = vpop.permute.xlu1 %5590  ;;  %v3867_v24 = vsel %vm3866_vm12, %v3834_v28, %v5567_v39  ;;  %v3868_v17 = vsel %vm3866_vm12, %v3835_v38, %v5568_v56 }
 0x399   : > { %v5576_v21 = vpop.permute.xlu0 %5575  ;;  %v5593_v30 = vunpack.i.h.bf16 %v5591_v16  ;;  %v5592_v55 = vunpack.i.l.bf16 %v5591_v16 }
 0x39a   : > { %v5578_v58 = vunpack.i.h.bf16 %v5576_v21  ;;  %v5577_v36 = vunpack.i.l.bf16 %v5576_v21 }
 0x39b   : > { %v3949_v53 = vsel %vm3932_vm14, %v3916_v1, %v5592_v55  ;;  %v3950_v6 = vsel %vm3932_vm14, %v3917_v25, %v5593_v30 }
 0x39c   : > { %v5601_v49 = vpop.permute.xlu1 %5600  ;;  %v3900_v27 = vsel %vm3899_vm13, %v3867_v24, %v5577_v36  ;;  %v3901_v3 = vsel %vm3899_vm13, %v3868_v17, %v5578_v58 }
 0x39d   : > { %v5586_v37 = vpop.permute.xlu0 %5585  ;;  %v5603_v51 = vunpack.i.h.bf16 %v5601_v49  ;;  %v5602_v62 = vunpack.i.l.bf16 %v5601_v49 }
 0x39e   : > { %v5588_v35 = vunpack.i.h.bf16 %v5586_v37  ;;  %v5587_v47 = vunpack.i.l.bf16 %v5586_v37 }
 0x39f   : > { %v3982_v34 = vsel %vm3965_vm15, %v3949_v53, %v5602_v62  ;;  %v3983_v8 = vsel %vm3965_vm15, %v3950_v6, %v5603_v51 }
 0x3a0   : > { %v4006_v19 = vpack.c.bf16 %v3983_v8, %v3982_v34  ;;  %v3933_v29 = vsel %vm3932_vm14, %v3900_v27, %v5587_v47  ;;  %v3934_v59 = vsel %vm3932_vm14, %v3901_v3, %v5588_v35 }
 0x3a1   : > { %v5596_v18 = vpop.permute.xlu0 %5595 }
 0x3a2   : > { %v5598_v31 = vunpack.i.h.bf16 %v5596_v18  ;;  %v5597_v46 = vunpack.i.l.bf16 %v5596_v18  ;;  %4301 = vmatprep.subr.msk.bf16.mxu1 %vm4015_vm0, %v4006_v19 }
 0x3a4   : > { %v3966_v23 = vsel %vm3965_vm15, %v3933_v29, %v5597_v46  ;;  %v3967_v32 = vsel %vm3965_vm15, %v3934_v59, %v5598_v31 }
 0x3a5   : > { %v3998_v63 = vpack.c.bf16 %v3967_v32, %v3966_v23 }
 0x3a7   : > { %v4020_v26 = vsel %vm4015_vm0, %v3998_v63, 0 }
 0x3a8   : > { %4252 = vmatpush3.bf16.xpose.msra.mxu1 %v4020_v26 }
 0x3a9   : > { %v4120_v44 = vpop.permute.xlu1 %4119 }
 0x3ae   : > { %v4112_v15 = vpop.permute.xlu0 %4111 }
 0x3af   : > { %4254 = vmatmul.mubr.msk.bf16.vlgmr.msra.gmra.mxu1 %vm4015_vm0, %v8057_v11 }
 0x46f   : > { %v4101_v9 = vpop.f32.mrf.mxu1 }
 0x470   : > { %v4114_v20 = vmul.f32 %v4112_v15, %v4101_v9 }
 0x471   : > { %v4103_v22 = vpop.f32.mrf.mxu1 }
 0x472   : > { %v4122_v33 = vadd.f32 %v4120_v44, %v4114_v20  ;;  %v4115_v48 = vmul.f32 %v4112_v15, %v4103_v22 }
 0x473   : > { %v4105_v61 = vpop.f32.mrf.mxu1 }
 0x474   : > { %v4124_v43 = vmax.f32 %v4122_v33, 0.0  ;;  %v4123_v7 = vadd.f32 %v4120_v44, %v4115_v48 }
 0x475   : > { %v4106_v40 = vpop.f32.mrf.mxu1 }
 0x476   : > { %4126 = vst [vmem:[%s278_s18] sm:$0xff] %v4124_v43  ;;  %v4125_v54 = vmax.f32 %v4123_v7, 0.0 }
 0x478   : > { %4127 = vst [vmem:[%s278_s18 + $0x8] sm:$0xff] %v4125_v54 }
 0x479 PF: > { %s17_s24 = sadd.s32 1, %s5625_s24  }
 0x47a   : > { %p14_p4 = scmp.ge.s32.totalorder %s17_s24, 4  }
 0x47c   :  { %16 = sbr.rel (!%p14_p4) target bundleno = 1 (0x1), region = 82 }

</bundles_post_ra>
